<compile_context>
chip_gen: v7x
topology: tpu7x:2x2x1
jax: 0.10.0
libtpu: 0.0.40
codegen_flags: <defaults>
</compile_context>

<pallas_src>
import functools

import jax
import jax.numpy as jnp
import numpy as np
from jax.experimental import pallas as pl
from jax.experimental.pallas import tpu as pltpu


def _round_up(v, m):
    return (v + m - 1) // m * m


def _num_tensorcores():
    """Best-effort TensorCore count per JAX device (megacore / v7x -> 2)."""
    try:
        kind = (getattr(jax.devices()[0], "device_kind", "") or "").lower()
    except Exception:
        return 1
    if "v5 lite" in kind or "v5e" in kind or "v6" in kind:
        return 1          # single TensorCore per device (v5e / v6e)
    for tag in ("v4", "v5p", "v7", "7x"):
        if tag in kind:
            return 2      # two TensorCores share "parallel" grid axes
    return 1


def _vmem_capacity_bytes():
    """Physical VMEM per core; falls back to the smallest current part (v7x)."""
    try:
        cap = int(getattr(pltpu.get_tpu_info(), "vmem_capacity_bytes", 0))
        if cap > 0:
            return cap
    except Exception:
        pass
    return 64 * 1024 * 1024


def _pick_tn(N, tile_bytes_fn, budget, num_cores):
    """Largest batch tile TN dividing N that fits the VMEM byte budget.

    Single-core parts: the grid is a sequential loop (~0.35 us fixed overhead
    per step), so simply maximize TN.  Multi-core parts: prefer a TN that keeps
    the grid length a multiple of the core count so every core gets work.
    """
    divisors = [d for d in range(1, N + 1) if N % d == 0]
    fitting = [d for d in divisors if tile_bytes_fn(d) <= budget] or [1]
    if num_cores > 1:
        aligned = [d for d in fitting if (N // d) % num_cores == 0]
        if aligned:
            return max(aligned)
        covering = [d for d in fitting if (N // d) >= num_cores]
        if covering:
            return max(covering)
    return max(fitting)


def _convlstm_kernel(p_ref, w_ref, b_ref, c_ref, hc_ref, *, TN, H, W, CH, KH, Kc):
    # Per grid step (TN batch elements folded into the matmul M dimension):
    #   p_ref  : (TN, H+KH-1, W, Kc) bf16 row patches (dx folded into lanes)
    #   w_ref  : (KH, Kc, 4*CH)      bf16 conv weights, resident across steps
    #   b_ref  : (1, 4*CH)           f32 conv bias
    #   c_ref  : (TN, H*W, CH)       f32 previous cell state
    #   hc_ref : (TN, H*W, 2*CH)     f32 packed output [h_new | c_new]
    HW = H * W
    M = TN * HW

    comb = p_ref[...]                                     # (TN, Hp, W, Kc) bf16

    # Convolution = KH matmuls (K = KW*C, padded to Kc) accumulated in f32 on
    # the MXU.  The vertical (dy) shift is a slice on an OUTER dim (free); the
    # horizontal (dx) taps live in the lane dim already, so no sublane
    # relayouts and no 9x im2col slab in HBM.
    acc = jnp.dot(comb[:, 0:H].reshape(M, Kc), w_ref[0],
                  preferred_element_type=jnp.float32)
    for dy in range(1, KH):
        lhs = comb[:, dy:dy + H].reshape(M, Kc)
        acc = acc + jnp.dot(lhs, w_ref[dy], preferred_element_type=jnp.float32)
    acc = acc + b_ref[...].astype(jnp.float32)            # (M, 4*CH)

    # Gate math in f32.  One sigmoid over the contiguous [i|f|o] 3*CH-lane slab
    # and one tanh over the CH-lane g slab: same 2 EUP pushes per row-group as
    # full-width sigmoid+tanh, but only `acc` stays live at full 128-lane width
    # (less spill pressure at large M).
    sfo = jax.nn.sigmoid(acc[:, 0:3 * CH])
    i = sfo[:, 0:CH]
    f = sfo[:, CH:2 * CH]
    o = sfo[:, 2 * CH:3 * CH]
    g = jnp.tanh(acc[:, 3 * CH:4 * CH])

    c_prev = c_ref[...].reshape(M, CH)
    c_new = f * c_prev + i * g
    h_new = o * jnp.tanh(c_new)

    # Packed [h | c] output (one 2*CH-lane stream); write the halves directly
    # instead of materializing a concatenated temporary.
    hc_ref[:, :, 0:CH] = h_new.reshape(TN, HW, CH)
    hc_ref[:, :, CH:2 * CH] = c_new.reshape(TN, HW, CH)


def prepare_conv_params(weight, bias, compute_dtype=jnp.bfloat16):
    """OIHW conv weight -> (KH, Kc, 4*CH) bf16 matmul weights + f32 bias.

    Rows within each dy slice are (dx, c)-major, matching _row_patches' lane
    order.  K = KW*C is padded only to the bf16 sublane pack (multiple of 16),
    not to 128, trimming dead DMA bytes and MXU depth.
    """
    OC, C, KH, KW = weight.shape
    K = KW * C
    Kc = _round_up(K, 16)
    w = jnp.transpose(weight, (2, 3, 1, 0)).reshape(KH, K, OC)   # (dy,(dx,c),oc)
    w = jnp.pad(w, ((0, 0), (0, Kc - K), (0, 0))).astype(compute_dtype)
    b = bias.reshape(1, OC).astype(jnp.float32)
    return w, b


def _row_patches(comb, KH, KW, Kc):
    """(N, H, W, C) -> (N, H+KH-1, W, Kc) horizontal-only im2col with dy halo.

    Only the KW horizontal taps are expanded into lanes (KW*C per pixel,
    zero-padded to Kc); the KH vertical taps stay implicit as halo rows and are
    accumulated inside the kernel.
    """
    N, H, W, C = comb.shape
    ph, pw = KH // 2, KW // 2
    comb_p = jnp.pad(comb, ((0, 0), (ph, ph), (pw, pw), (0, 0)))
    taps = [comb_p[:, :, dx:dx + W, :] for dx in range(KW)]      # dx-major
    patches = jnp.concatenate(taps, axis=-1)                     # (N,Hp,W,KW*C)
    K = KW * C
    if Kc > K:
        patches = jnp.pad(patches, ((0, 0), (0, 0), (0, 0), (0, Kc - K)))
    return patches


def conv_lstm_cell_nhwc(x_nhwc, h_nhwc, c_nhwc, w_k, b_k, *, KH, KW,
                        h_dtype=jnp.float32):
    """NHWC-native ConvLSTM step (keep recurrent state in NHWC between steps).

    Args:
      x_nhwc : (N, H, W, Cin)  any float dtype (bf16 recommended in a loop)
      h_nhwc : (N, H, W, CH)   any float dtype (bf16 recommended in a loop)
      c_nhwc : (N, H, W, CH)   carried in f32 for accuracy
      w_k    : (KH, Kc, 4*CH)  from prepare_conv_params
      b_k    : (1, 4*CH)
      h_dtype: dtype of the returned h (pass bf16 in a recurrent loop so the
               next step's patch build reads half the h bytes).
    Returns (h_new, c_new); c_new is f32.
    """
    N, H, W, Cin = x_nhwc.shape
    CH = h_nhwc.shape[-1]
    KHw, Kc, OC = w_k.shape
    C = Cin + CH
    assert KHw == KH and OC == 4 * CH and Kc >= KW * C
    # TODO(synk): pad W to a multiple of 8 (and crop outputs) to lift this.
    assert W % 8 == 0, "W must be a multiple of 8 (sublane tile)"
    HW = H * W
    Hp = H + KH - 1
    cdt = w_k.dtype

    comb = jnp.concatenate([x_nhwc.astype(cdt), h_nhwc.astype(cdt)], axis=-1)
    patches = _row_patches(comb, KH, KW, Kc)             # (N, Hp, W, Kc) bf16
    c_flat = c_nhwc.reshape(N, HW, CH).astype(jnp.float32)

    # Generation-aware batch tiling: size the tile from a VMEM byte budget
    # (v7x has 64 MiB/core vs 128 MiB on v5e/v6e) and from the core count.
    def tile_bytes(tn):
        patch_blk = tn * Hp * W * Kc * 2                 # bf16 input block
        c_blk = tn * HW * CH * 4
        hc_blk = tn * HW * 2 * CH * 4
        w_blk = KH * Kc * OC * 2
        live = tn * Hp * W * Kc * 2 + tn * HW * Kc * 2 + tn * HW * OC * 4
        return 2 * (patch_blk + c_blk + hc_blk) + 2 * w_blk + live

    cap = _vmem_capacity_bytes()
    budget = min(int(cap * 0.55), 48 * 1024 * 1024)
    TN = _pick_tn(N, tile_bytes, budget, _num_tensorcores())
    vmem_limit = min(int(cap * 0.9),
                     max(32 * 1024 * 1024, tile_bytes(TN) + (16 << 20)))

    kernel = functools.partial(_convlstm_kernel, TN=TN, H=H, W=W, CH=CH,
                               KH=KH, Kc=Kc)
    hc = pl.pallas_call(
        kernel,
        grid=(N // TN,),
        in_specs=[
            pl.BlockSpec((TN, Hp, W, Kc), lambda n: (n, 0, 0, 0)),
            pl.BlockSpec((KH, Kc, OC), lambda n: (0, 0, 0)),   # resident weights
            pl.BlockSpec((1, OC), lambda n: (0, 0)),
            pl.BlockSpec((TN, HW, CH), lambda n: (n, 0, 0)),
        ],
        out_specs=pl.BlockSpec((TN, HW, 2 * CH), lambda n: (n, 0, 0)),
        out_shape=jax.ShapeDtypeStruct((N, HW, 2 * CH), jnp.float32),
        compiler_params=pltpu.CompilerParams(
            dimension_semantics=("parallel",),
            vmem_limit_bytes=vmem_limit),
    )(patches, w_k, b_k, c_flat)

    h_new = hc[:, :, :CH].reshape(N, H, W, CH).astype(h_dtype)
    c_new = hc[:, :, CH:].reshape(N, H, W, CH)
    return h_new, c_new


def conv_lstm_cell(x, h, c, weight, bias):
    """One ConvLSTMCell step in PyTorch conventions (NCHW / OIHW).

    Semantics (matching the module's forward):
      combined = cat([x, h]); gates = conv(combined); i,f,o,g = split(gates)
      c_new = sigmoid(f)*c + sigmoid(i)*tanh(g); h_new = sigmoid(o)*tanh(c_new)
    """
    KH, KW = weight.shape[2], weight.shape[3]
    w_k, b_k = prepare_conv_params(weight, bias)
    x_ = jnp.transpose(x, (0, 2, 3, 1))
    h_ = jnp.transpose(h, (0, 2, 3, 1))
    c_ = jnp.transpose(c, (0, 2, 3, 1))
    h_new, c_new = conv_lstm_cell_nhwc(x_, h_, c_, w_k, b_k, KH=KH, KW=KW)
    return (jnp.transpose(h_new, (0, 3, 1, 2)),
            jnp.transpose(c_new, (0, 3, 1, 2)))


def conv_lstm_cell_ref(x, h, c, weight, bias):
    """Pure-JAX reference (NCHW), mirroring the PyTorch forward exactly."""
    KH, KW = weight.shape[2], weight.shape[3]
    comb = jnp.concatenate([x, h], axis=1)
    out = jax.lax.conv_general_dilated(
        comb, weight, window_strides=(1, 1),
        padding=((KH // 2, KH // 2), (KW // 2, KW // 2)),
        dimension_numbers=("NCHW", "OIHW", "NCHW")) + bias[None, :, None, None]
    cc_i, cc_f, cc_o, cc_g = jnp.split(out, 4, axis=1)
    i = jax.nn.sigmoid(cc_i)
    f = jax.nn.sigmoid(cc_f)
    o = jax.nn.sigmoid(cc_o)
    g = jnp.tanh(cc_g)
    c_new = f * c + i * g
    h_new = o * jnp.tanh(c_new)
    return h_new, c_new


if __name__ == "__main__":
    # Small shapes consistent with the module: batch=2, input_dim=4,
    # hidden_dim=32, spatial 16x16, kernel_size=(3,3).
    N, Cin, H, W = 2, 4, 16, 16
    CH, KH, KW = 32, 3, 3

    key = jax.random.PRNGKey(0)
    k1, k2, k3 = jax.random.split(key, 3)
    x = jax.random.normal(k1, (N, Cin, H, W), jnp.float32)
    weight = jax.random.normal(k2, (4 * CH, Cin + CH, KH, KW), jnp.float32) * 0.1
    bias = jax.random.normal(k3, (4 * CH,), jnp.float32) * 0.1

    # first_step=True -> initialize(): zero hidden / cell states.
    h0 = jnp.zeros((N, CH, H, W), jnp.float32)
    c0 = jnp.zeros((N, CH, H, W), jnp.float32)

    # PyTorch-convention (NCHW) path: two forward() calls reusing the state.
    cell = jax.jit(conv_lstm_cell)
    h1, c1 = cell(x, h0, c0, weight, bias)
    h2, c2 = cell(x, h1, c1, weight, bias)
    jax.block_until_ready((h2, c2))

    # NHWC-native recurrent path: weights prepared once, x/h carried in bf16
    # between steps (c stays f32), no per-step NCHW<->NHWC transposes.
    w_k, b_k = prepare_conv_params(weight, bias)
    step = jax.jit(functools.partial(conv_lstm_cell_nhwc, KH=KH, KW=KW,
                                     h_dtype=jnp.bfloat16))
    x_n = jnp.transpose(x, (0, 2, 3, 1)).astype(jnp.bfloat16)
    hn = jnp.zeros((N, H, W, CH), jnp.bfloat16)
    cn = jnp.zeros((N, H, W, CH), jnp.float32)
    hn, cn = step(x_n, hn, cn, w_k, b_k)
    hn, cn = step(x_n, hn, cn, w_k, b_k)
    jax.block_until_ready((hn, cn))

    # f32 reference (tolerances loosened: matmul operands are bf16 and the
    # NHWC loop additionally carries x/h in bf16).
    hr1, cr1 = conv_lstm_cell_ref(x, h0, c0, weight, bias)
    hr2, cr2 = conv_lstm_cell_ref(x, hr1, cr1, weight, bias)

    np.testing.assert_allclose(np.asarray(h1), np.asarray(hr1), rtol=5e-2, atol=5e-2)
    np.testing.assert_allclose(np.asarray(h2), np.asarray(hr2), rtol=5e-2, atol=5e-2)
    np.testing.assert_allclose(np.asarray(c2), np.asarray(cr2), rtol=5e-2, atol=5e-2)

    hn_nchw = np.asarray(jnp.transpose(hn.astype(jnp.float32), (0, 3, 1, 2)))
    cn_nchw = np.asarray(jnp.transpose(cn, (0, 3, 1, 2)))
    np.testing.assert_allclose(hn_nchw, np.asarray(hr2), rtol=5e-2, atol=5e-2)
    np.testing.assert_allclose(cn_nchw, np.asarray(cr2), rtol=5e-2, atol=5e-2)
    print("KERNEL_OK")
</pallas_src>

<mosaic_0001>
module attributes {stable_mosaic.version = 11 : i64} {
  func.func @_convlstm_kernel(%arg0: i32, %arg1: memref<2x18x16x112xbf16, #tpu.memory_space<vmem>>, %arg2: memref<3x112x128xbf16, #tpu.memory_space<vmem>>, %arg3: memref<1x128xf32, #tpu.memory_space<vmem>>, %arg4: memref<2x256x32xf32, #tpu.memory_space<vmem>>, %arg5: memref<2x256x64xf32, #tpu.memory_space<vmem>>) attributes {dimension_semantics = [#tpu.dimension_semantics<parallel>], iteration_bounds = array<i64: 1>, scalar_prefetch = 0 : i64, scratch_operands = 0 : i64, tpu.core_type = #tpu.core_type<tc>, window_params = [{transform_indices = @transform_0, window_bounds = array<i64: 2, 18, 16, 112>}, {pipeline_mode = #tpu.pipeline_mode<synchronous>, transform_indices = @transform_1, window_bounds = array<i64: 3, 112, 128>}, {pipeline_mode = #tpu.pipeline_mode<synchronous>, transform_indices = @transform_2, window_bounds = array<i64: 1, 128>}, {transform_indices = @transform_3, window_bounds = array<i64: 2, 256, 32>}, {transform_indices = @transform_4, window_bounds = array<i64: 2, 256, 64>}]} {
    %c0 = arith.constant 0 : index
    %c0_0 = arith.constant 0 : index
    %c0_1 = arith.constant 0 : index
    %c0_2 = arith.constant 0 : index
    %0 = vector.load %arg1[%c0, %c0_0, %c0_1, %c0_2] : memref<2x18x16x112xbf16, #tpu.memory_space<vmem>>, vector<2x18x16x112xbf16>
    %1 = vector.extract_strided_slice %0 {offsets = [0, 0, 0, 0], sizes = [2, 16, 16, 112], strides = [1, 1, 1, 1]} : vector<2x18x16x112xbf16> to vector<2x16x16x112xbf16>
    %2 = vector.shape_cast %1 : vector<2x16x16x112xbf16> to vector<512x112xbf16>
    %c0_3 = arith.constant 0 : index
    %c0_4 = arith.constant 0 : index
    %c0_5 = arith.constant 0 : index
    %3 = vector.load %arg2[%c0_3, %c0_4, %c0_5] : memref<3x112x128xbf16, #tpu.memory_space<vmem>>, vector<1x112x128xbf16>
    %4 = vector.shape_cast %3 : vector<1x112x128xbf16> to vector<112x128xbf16>
    %cst = arith.constant dense<0.000000e+00> : vector<512x128xf32>
    %5 = tpu.matmul %2, %4, %cst {dimension_numbers = #tpu.dot_dimension_numbers<[1], [0], [0], [1], [0, 0, 1, 1], [], []>} : vector<512x112xbf16>, vector<112x128xbf16>, vector<512x128xf32> -> vector<512x128xf32>
    %6 = vector.extract_strided_slice %0 {offsets = [0, 1, 0, 0], sizes = [2, 16, 16, 112], strides = [1, 1, 1, 1]} : vector<2x18x16x112xbf16> to vector<2x16x16x112xbf16>
    %7 = vector.shape_cast %6 : vector<2x16x16x112xbf16> to vector<512x112xbf16>
    %c1 = arith.constant 1 : index
    %c0_6 = arith.constant 0 : index
    %c0_7 = arith.constant 0 : index
    %8 = vector.load %arg2[%c1, %c0_6, %c0_7] : memref<3x112x128xbf16, #tpu.memory_space<vmem>>, vector<1x112x128xbf16>
    %9 = vector.shape_cast %8 : vector<1x112x128xbf16> to vector<112x128xbf16>
    %cst_8 = arith.constant dense<0.000000e+00> : vector<512x128xf32>
    %10 = tpu.matmul %7, %9, %cst_8 {dimension_numbers = #tpu.dot_dimension_numbers<[1], [0], [0], [1], [0, 0, 1, 1], [], []>} : vector<512x112xbf16>, vector<112x128xbf16>, vector<512x128xf32> -> vector<512x128xf32>
    %11 = arith.addf %5, %10 : vector<512x128xf32>
    %12 = vector.extract_strided_slice %0 {offsets = [0, 2, 0, 0], sizes = [2, 16, 16, 112], strides = [1, 1, 1, 1]} : vector<2x18x16x112xbf16> to vector<2x16x16x112xbf16>
    %13 = vector.shape_cast %12 : vector<2x16x16x112xbf16> to vector<512x112xbf16>
    %c2 = arith.constant 2 : index
    %c0_9 = arith.constant 0 : index
    %c0_10 = arith.constant 0 : index
    %14 = vector.load %arg2[%c2, %c0_9, %c0_10] : memref<3x112x128xbf16, #tpu.memory_space<vmem>>, vector<1x112x128xbf16>
    %15 = vector.shape_cast %14 : vector<1x112x128xbf16> to vector<112x128xbf16>
    %cst_11 = arith.constant dense<0.000000e+00> : vector<512x128xf32>
    %16 = tpu.matmul %13, %15, %cst_11 {dimension_numbers = #tpu.dot_dimension_numbers<[1], [0], [0], [1], [0, 0, 1, 1], [], []>} : vector<512x112xbf16>, vector<112x128xbf16>, vector<512x128xf32> -> vector<512x128xf32>
    %17 = arith.addf %11, %16 : vector<512x128xf32>
    %c0_12 = arith.constant 0 : index
    %c0_13 = arith.constant 0 : index
    %18 = vector.load %arg3[%c0_12, %c0_13] : memref<1x128xf32, #tpu.memory_space<vmem>>, vector<1x128xf32>
    %19 = vector.broadcast %18 : vector<1x128xf32> to vector<512x128xf32>
    %20 = arith.addf %17, %19 : vector<512x128xf32>
    %21 = vector.extract_strided_slice %20 {offsets = [0, 0], sizes = [512, 96], strides = [1, 1]} : vector<512x128xf32> to vector<512x96xf32>
    %22 = arith.negf %21 : vector<512x96xf32>
    %23 = math.exp %22 : vector<512x96xf32>
    %cst_14 = arith.constant 1.000000e+00 : f32
    %24 = vector.broadcast %cst_14 : f32 to vector<512x96xf32>
    %25 = arith.addf %24, %23 : vector<512x96xf32>
    %26 = arith.divf %24, %25 : vector<512x96xf32>
    %27 = vector.extract_strided_slice %26 {offsets = [0, 0], sizes = [512, 32], strides = [1, 1]} : vector<512x96xf32> to vector<512x32xf32>
    %28 = vector.extract_strided_slice %26 {offsets = [0, 32], sizes = [512, 32], strides = [1, 1]} : vector<512x96xf32> to vector<512x32xf32>
    %29 = vector.extract_strided_slice %26 {offsets = [0, 64], sizes = [512, 32], strides = [1, 1]} : vector<512x96xf32> to vector<512x32xf32>
    %30 = vector.extract_strided_slice %20 {offsets = [0, 96], sizes = [512, 32], strides = [1, 1]} : vector<512x128xf32> to vector<512x32xf32>
    %31 = math.tanh %30 : vector<512x32xf32>
    %c0_15 = arith.constant 0 : index
    %c0_16 = arith.constant 0 : index
    %c0_17 = arith.constant 0 : index
    %32 = vector.load %arg4[%c0_15, %c0_16, %c0_17] : memref<2x256x32xf32, #tpu.memory_space<vmem>>, vector<2x256x32xf32>
    %33 = vector.shape_cast %32 : vector<2x256x32xf32> to vector<512x32xf32>
    %34 = arith.mulf %28, %33 : vector<512x32xf32>
    %35 = arith.mulf %27, %31 : vector<512x32xf32>
    %36 = arith.addf %34, %35 : vector<512x32xf32>
    %37 = math.tanh %36 : vector<512x32xf32>
    %38 = arith.mulf %29, %37 : vector<512x32xf32>
    %39 = vector.shape_cast %38 : vector<512x32xf32> to vector<2x256x32xf32>
    %c0_18 = arith.constant 0 : index
    %c0_19 = arith.constant 0 : index
    %c0_20 = arith.constant 0 : index
    %40 = vector.load %arg5[%c0_18, %c0_19, %c0_20] : memref<2x256x64xf32, #tpu.memory_space<vmem>>, vector<2x256x32xf32>
    tpu.vector_store %arg5[%c0_18, %c0_19, %c0_20], %39 {strides = array<i32>} : memref<2x256x64xf32, #tpu.memory_space<vmem>>, vector<2x256x32xf32>,
    %41 = vector.shape_cast %36 : vector<512x32xf32> to vector<2x256x32xf32>
    %c0_21 = arith.constant 0 : index
    %c0_22 = arith.constant 0 : index
    %c32 = arith.constant 32 : index
    %42 = vector.load %arg5[%c0_21, %c0_22, %c32] : memref<2x256x64xf32, #tpu.memory_space<vmem>>, vector<2x256x32xf32>
    tpu.vector_store %arg5[%c0_21, %c0_22, %c32], %41 {strides = array<i32>} : memref<2x256x64xf32, #tpu.memory_space<vmem>>, vector<2x256x32xf32>,
    return
  }
  func.func @transform_0(%arg0: i32) -> (i32, i32, i32, i32) {
    %c0_i32 = arith.constant 0 : i32
    %c0_i32_0 = arith.constant 0 : i32
    %c0_i32_1 = arith.constant 0 : i32
    %c0_i32_2 = arith.constant 0 : i32
    return %arg0, %c0_i32, %c0_i32_0, %c0_i32_1 : i32, i32, i32, i32
  }
  func.func @transform_1(%arg0: i32) -> (i32, i32, i32) {
    %c0_i32 = arith.constant 0 : i32
    %c0_i32_0 = arith.constant 0 : i32
    %c0_i32_1 = arith.constant 0 : i32
    %c0_i32_2 = arith.constant 0 : i32
    return %c0_i32, %c0_i32_0, %c0_i32_1 : i32, i32, i32
  }
  func.func @transform_2(%arg0: i32) -> (i32, i32) {
    %c0_i32 = arith.constant 0 : i32
    %c0_i32_0 = arith.constant 0 : i32
    %c0_i32_1 = arith.constant 0 : i32
    return %c0_i32, %c0_i32_0 : i32, i32
  }
  func.func @transform_3(%arg0: i32) -> (i32, i32, i32) {
    %c0_i32 = arith.constant 0 : i32
    %c0_i32_0 = arith.constant 0 : i32
    %c0_i32_1 = arith.constant 0 : i32
    return %arg0, %c0_i32, %c0_i32_0 : i32, i32, i32
  }
  func.func @transform_4(%arg0: i32) -> (i32, i32, i32) {
    %c0_i32 = arith.constant 0 : i32
    %c0_i32_0 = arith.constant 0 : i32
    %c0_i32_1 = arith.constant 0 : i32
    return %arg0, %c0_i32, %c0_i32_0 : i32, i32, i32
  }
}

</mosaic_0001>

<bundles_post_ra>
// kernel: conv_lstm_cell.1
= control target key start
LH: loop header
LB: loop body
LE: loop exit
PB: predicated region body
PF: predicated region fallthrough
CT: control target
= control target key end

     0   :  { %vm321_vm0 = vcmask 916480   ;;  %s5108_s6 = smov 32   ;;  %vm3663_vm1 = vcmask 261120   ;;  %vm3728_vm2 = vcmask 523520   ;;  %s8063_s1 = inlined_call_operand.vmem [shape: bf16[3,112,128], index: 1, kind: input, shape index: {}]   ;;  %s8064_s0 = inlined_call_operand.vmem [shape: bf16[2,18,16,112], index: 0, kind: input, shape index: {}]   ;;  %s8065_s3 = inlined_call_operand.vmem [shape: f32[2,256,32], index: 3, kind: input, shape index: {}]   ;;  %s8066_s2 = inlined_call_operand.vmem [shape: f32[1,128], index: 2, kind: input, shape index: {}]   ;;  %s8067_s4 = inlined_call_operand.vmem [shape: f32[2,256,64], index: 4, kind: output, shape index: {}]  }
   0x1   :  { %v4538_v0 = vld [vmem:[%s8063_s1 + $0x38] sm:$0xff]   ;;  %v4539_v1 = vld [vmem:[%s8063_s1] sm:$0xff]   ;;  %v4541_v3 = vld [vmem:[%s8063_s1 + $0x8] sm:$0xff]  }
   0x2   :  { %4160 = vmatprep.subr.bf16.mxu1 %v4538_v0  ;;  %v4540_v2 = vld [vmem:[%s8063_s1 + $0x40] sm:$0xff]   ;;  %4238 = vmatprep.subr.bf16.mxu0 %v4539_v1  ;;  %v4542_v4 = vld [vmem:[%s8063_s1 + $0x48] sm:$0xff]   ;;  %v5153_v5 = vld [vmem:[%s8063_s1 + $0x10] sm:$0xff]  }
   0x3   :  { %4161 = vmatpush3.bf16.msra.mxu1 %v4538_v0  ;;  %4239 = vmatpush3.bf16.msra.mxu0 %v4539_v1  ;;  %v4544_v6 = vld [vmem:[%s8063_s1 + $0x50] sm:$0xff]   ;;  %v5162_v7 = vld [vmem:[%s8063_s1 + $0x18] sm:$0xff]   ;;  %v5172_v9 = vld [vmem:[%s8063_s1 + $0x20] sm:$0xff]  }
   0x4   :  { %4162 = vmatprep.subr.bf16.mxu1 %v4540_v2  ;;  %4240 = vmatprep.subr.bf16.mxu0 %v4541_v3  ;;  %v4546_v8 = vld [vmem:[%s8063_s1 + $0x58] sm:$0xff]   ;;  %v4552_v10 = vld [vmem:[%s8064_s0 + $0x8] sm:$0xff]   ;;  %v4553_v11 = vld [vmem:[%s8064_s0] sm:$0xff]  }
   0x5   :  { %v4548_v12 = vld [vmem:[%s8063_s1 + $0x60] sm:$0xff]   ;;  %v5188_v13 = vld [vmem:[%s8063_s1 + $0x28] sm:$0xff]   ;;  %4174 = vmatprep.mubr.msk.bf16.mxu1 %vm321_vm0, %v4552_v10  ;;  %4252 = vmatprep.mubr.msk.bf16.mxu0 %vm321_vm0, %v4553_v11  ;;  %v5200_v15 = vld [vmem:[%s8063_s1 + $0x30] sm:$0xff]  }
   0x6   :  { %v4550_v14 = vld [vmem:[%s8063_s1 + $0x68] sm:$0xff]   ;;  %v4555_v16 = vld [vmem:[%s8063_s1 + $0x70] sm:$0xff]   ;;  %v5216_v18 = vld [vmem:[%s8064_s0 + $0x18] sm:$0xff]  }
   0x7   :  { %4163 = vmatpush3.bf16.msra.mxu1 %v4540_v2  ;;  %4241 = vmatpush3.bf16.msra.mxu0 %v4541_v3  ;;  %v5210_v17 = vld [vmem:[%s8064_s0 + $0x10] sm:$0xff]   ;;  %v4558_v19 = vld [vmem:[%s8063_s1 + $0x78] sm:$0xff]   ;;  %v4561_v20 = vld [vmem:[%s8063_s1 + $0x80] sm:$0xff]  }
   0x8   :  { %4164 = vmatprep.subr.bf16.mxu1 %v4542_v4  ;;  %4242 = vmatprep.subr.bf16.mxu0 %v5153_v5  ;;  %v5234_v21 = vld [vmem:[%s8064_s0 + $0x20] sm:$0xff]   ;;  %v5239_v22 = vld [vmem:[%s8064_s0 + $0x28] sm:$0xff]   ;;  %v4567_v24 = vld [vmem:[%s8063_s1 + $0x90] sm:$0xff]  }
   0x9   :  { %v4564_v23 = vld [vmem:[%s8063_s1 + $0x88] sm:$0xff]   ;;  %v5260_v25 = vld [vmem:[%s8064_s0 + $0x30] sm:$0xff]   ;;  %v5266_v26 = vld [vmem:[%s8064_s0 + $0x38] sm:$0xff]  }
   0xa   :  { %v4570_v27 = vld [vmem:[%s8063_s1 + $0x98] sm:$0xff]   ;;  %v4574_v28 = vld [vmem:[%s8063_s1 + $0xa0] sm:$0xff]   ;;  %v5294_v30 = vld [vmem:[%s8064_s0 + $0x48] sm:$0xff]  }
   0xb   :  { %4165 = vmatpush3.bf16.msra.mxu1 %v4542_v4  ;;  %4243 = vmatpush3.bf16.msra.mxu0 %v5153_v5  ;;  %v5288_v29 = vld [vmem:[%s8064_s0 + $0x40] sm:$0xff]   ;;  %v5310_v31 = vld [vmem:[%s8064_s0 + $0x50] sm:$0xff]   ;;  %v5315_v32 = vld [vmem:[%s8064_s0 + $0x58] sm:$0xff]  }
   0xc   :  { %4166 = vmatprep.subr.bf16.mxu1 %v4544_v6  ;;  %4244 = vmatprep.subr.bf16.mxu0 %v5162_v7  ;;  %v1999_v33 = vld [vmem:[%s8065_s3] sm:$0xff]  ;;  %v2001_v34 = vld [vmem:[%s8065_s3 + $0x10] sm:$0xff]  ;;  %v2000_v36 = vld [vmem:[%s8065_s3 + $0x8] sm:$0xff] }
   0xd   :  { %2127 = vrot.lane.b32.xlu0 %v1999_v33, %s5108_s6  ;;  %2131 = vrot.lane.b32.xlu1 %v2001_v34, %s5108_s6  ;;  %v5336_v35 = vld [vmem:[%s8064_s0 + $0x60] sm:$0xff]   ;;  %v5344_v37 = vld [vmem:[%s8064_s0 + $0x68] sm:$0xff]  }
   0xe   :  { %v2002_v38 = vld [vmem:[%s8065_s3 + $0x18] sm:$0xff]  ;;  %v2003_v39 = vld [vmem:[%s8065_s3 + $0x20] sm:$0xff]  ;;  %v2004_v40 = vld [vmem:[%s8065_s3 + $0x28] sm:$0xff] }
   0xf   :  { %4167 = vmatpush3.bf16.msra.mxu1 %v4544_v6  ;;  %4245 = vmatpush3.bf16.msra.mxu0 %v5162_v7  ;;  %v5369_v41 = vld [vmem:[%s8064_s0 + $0x70] sm:$0xff]   ;;  %v5377_v43 = vld [vmem:[%s8064_s0 + $0x78] sm:$0xff]   ;;  %v2007_v45 = vld [vmem:[%s8065_s3 + $0x40] sm:$0xff] }
  0x10   :  { %4168 = vmatprep.subr.bf16.mxu1 %v4546_v8  ;;  %4246 = vmatprep.subr.bf16.mxu0 %v5172_v9  ;;  %v2005_v42 = vld [vmem:[%s8065_s3 + $0x30] sm:$0xff]  ;;  %v2006_v44 = vld [vmem:[%s8065_s3 + $0x38] sm:$0xff]  ;;  %v2008_v46 = vld [vmem:[%s8065_s3 + $0x48] sm:$0xff] }
  0x11   :  { %2129 = vrot.lane.b32.xlu0 %v2000_v36, %s5108_s6  ;;  %2133 = vrot.lane.b32.xlu1 %v2002_v38, %s5108_s6  ;;  %v5403_v47 = vld [vmem:[%s8064_s0 + $0x80] sm:$0xff]   ;;  %v2009_v48 = vld [vmem:[%s8065_s3 + $0x50] sm:$0xff] }
  0x12   :  { %v5411_v49 = vld [vmem:[%s8064_s0 + $0x98] sm:$0xff]   ;;  %v2011_v51 = vld [vmem:[%s8065_s3 + $0x60] sm:$0xff]  ;;  %v2012_v52 = vld [vmem:[%s8065_s3 + $0x68] sm:$0xff] }
  0x13   :  { %4169 = vmatpush3.bf16.msra.mxu1 %v4546_v8  ;;  %4247 = vmatpush3.bf16.msra.mxu0 %v5172_v9  ;;  %v2010_v50 = vld [vmem:[%s8065_s3 + $0x58] sm:$0xff]  ;;  %v5437_v53 = vld [vmem:[%s8064_s0 + $0xa0] sm:$0xff]   ;;  %v2013_v54 = vld [vmem:[%s8065_s3 + $0x70] sm:$0xff] }
  0x14   :  { %4170 = vmatprep.subr.bf16.mxu1 %v4548_v12  ;;  %4248 = vmatprep.subr.bf16.mxu0 %v5188_v13  ;;  %v5445_v55 = vld [vmem:[%s8064_s0 + $0xa8] sm:$0xff]   ;;  %v2014_v56 = vld [vmem:[%s8065_s3 + $0x78] sm:$0xff]  ;;  %v2015_v57 = vld [vmem:[%s8065_s3 + $0x80] sm:$0xff] }
  0x15   :  { %2135 = vrot.lane.b32.xlu0 %v2003_v39, %s5108_s6  ;;  %2137 = vrot.lane.b32.xlu1 %v2004_v40, %s5108_s6  ;;  %v2016_v58 = vld [vmem:[%s8065_s3 + $0x88] sm:$0xff]  ;;  %v5471_v59 = vld [vmem:[%s8064_s0 + $0xb0] sm:$0xff]  }
  0x16   :  { %v2017_v60 = vld [vmem:[%s8065_s3 + $0x90] sm:$0xff]  ;;  %v5479_v61 = vld [vmem:[%s8064_s0 + $0xb8] sm:$0xff]   ;;  %v2019_v63 = vld [vmem:[%s8065_s3 + $0xa0] sm:$0xff] }
  0x17   :  { %4171 = vmatpush3.bf16.msra.mxu1 %v4548_v12  ;;  %4249 = vmatpush3.bf16.msra.mxu0 %v5188_v13  ;;  %v2018_v62 = vld [vmem:[%s8065_s3 + $0x98] sm:$0xff]  ;;  %v2020_v0 = vld [vmem:[%s8065_s3 + $0xa8] sm:$0xff]  ;;  %v2021_v2 = vld [vmem:[%s8065_s3 + $0xb0] sm:$0xff] }
  0x18   :  { %4172 = vmatprep.subr.bf16.mxu1 %v4550_v14  ;;  %4250 = vmatprep.subr.bf16.mxu0 %v5200_v15  ;;  %v2022_v4 = vld [vmem:[%s8065_s3 + $0xb8] sm:$0xff]  ;;  %v5536_v6 = vld [vmem:[%s8064_s0 + $0xd0] sm:$0xff]   ;;  %v2027_v11 = vld [vmem:[%s8065_s3 + $0xe0] sm:$0xff] }
  0x19   :  { %2139 = vrot.lane.b32.xlu0 %v2005_v42, %s5108_s6  ;;  %2141 = vrot.lane.b32.xlu1 %v2006_v44, %s5108_s6  ;;  %v5544_v8 = vld [vmem:[%s8064_s0 + $0xd8] sm:$0xff]   ;;  %v5570_v12 = vld [vmem:[%s8064_s0 + $0xe0] sm:$0xff]  }
  0x1a   :  { %v4593_v33 = vld [vmem:[%s8064_s0 + $0x90] sm:$0xff]   ;;  %v2043_v36 = vld [vmem:[%s8065_s3 + $0x160] sm:$0xff]  ;;  %v2046_v39 = vld [vmem:[%s8065_s3 + $0x178] sm:$0xff] }
  0x1b   :  { %4173 = vmatpush3.bf16.msra.mxu1 %v4550_v14  ;;  %4251 = vmatpush3.bf16.msra.mxu0 %v5200_v15  ;;  %v5578_v14 = vld [vmem:[%s8064_s0 + $0xe8] sm:$0xff]   ;;  %v2041_v34 = vld [vmem:[%s8065_s3 + $0x150] sm:$0xff]  ;;  %v2047_v40 = vld [vmem:[%s8065_s3 + $0x180] sm:$0xff] }
  0x1c   :  { %4394 = vmatprep.subr.bf16.mxu1 %v4539_v1  ;;  %4316 = vmatprep.subr.bf16.mxu0 %v4555_v16  ;;  %v2045_v38 = vld [vmem:[%s8065_s3 + $0x170] sm:$0xff]  ;;  %v2051_v44 = vld [vmem:[%s8065_s3 + $0x1a0] sm:$0xff] }
  0x1d   :  { %2143 = vrot.lane.b32.xlu0 %v2007_v45, %s5108_s6  ;;  %2145 = vrot.lane.b32.xlu1 %v2008_v46, %s5108_s6  ;;  %v2049_v42 = vld [vmem:[%s8065_s3 + $0x190] sm:$0xff]  ;;  %v2052_v45 = vld [vmem:[%s8065_s3 + $0x1a8] sm:$0xff] }
  0x1e   :  { %4175 = vmatmul.mubr.msk.bf16.vlgmr.msra.gmra.mrb[0].mxu1 %vm321_vm0, %v5210_v17  ;;  %4253 = vmatmul.mubr.msk.bf16.vlgmr.msra.gmra.mrb[0].mxu0 %vm321_vm0, %v4552_v10  ;;  %v2026_v10 = vld [vmem:[%s8065_s3 + $0xd8] sm:$0xff]  ;;  %v2053_v46 = vld [vmem:[%s8065_s3 + $0x1b0] sm:$0xff] }
  0x1f   :  { %4401 = vmatpush3.bf16.msra.mxu1 %v4539_v1  ;;  %4317 = vmatpush3.bf16.msra.mxu0 %v4555_v16  ;;  %v5505_v1 = vld [vmem:[%s8064_s0 + $0xc0] sm:$0xff]   ;;  %v2030_v16 = vld [vmem:[%s8065_s3 + $0xf8] sm:$0xff] }
  0x20   :  { %4178 = vmatprep.mubr.msk.bf16.mxu1 %vm321_vm0, %v5216_v18  ;;  %4256 = vmatprep.mubr.msk.bf16.mxu0 %vm321_vm0, %v5210_v17 }
  0x21   :  { %4318 = vmatprep.subr.bf16.mxu0 %v4558_v19  ;;  %4395 = vmatprep.subr.bf16.mxu1 %v4541_v3 }
  0x22   :  { %2147 = vrot.lane.b32.xlu0 %v2009_v48, %s5108_s6  ;;  %2149 = vrot.lane.b32.xlu1 %v2010_v50, %s5108_s6  ;;  %v2055_v48 = vld [vmem:[%s8065_s3 + $0x1c0] sm:$0xff]  ;;  %v2057_v50 = vld [vmem:[%s8065_s3 + $0x1d0] sm:$0xff] }
  0x23   :  { %4402 = vmatpush3.bf16.msra.mxu1 %v4541_v3  ;;  %4319 = vmatpush3.bf16.msra.mxu0 %v4558_v19  ;;  %v5513_v3 = vld [vmem:[%s8064_s0 + $0xc8] sm:$0xff]  }
  0x24   :  { %4396 = vmatprep.subr.bf16.mxu1 %v5153_v5  ;;  %4320 = vmatprep.subr.bf16.mxu0 %v4561_v20  ;;  %v2032_v19 = vld [vmem:[%s8065_s3 + $0x108] sm:$0xff] }
  0x26   :  { %4179 = vmatmul.mubr.msk.bf16.gmra.mrb[4].mxu1 %vm321_vm0, %v5234_v21  ;;  %4257 = vmatmul.mubr.msk.bf16.gmra.mrb[4].mxu0 %vm321_vm0, %v5216_v18 }
  0x27   :  { %4182 = vmatprep.mubr.msk.bf16.mxu1 %vm321_vm0, %v5239_v22  ;;  %4260 = vmatprep.mubr.msk.bf16.mxu0 %vm321_vm0, %v5234_v21 }
  0x28   :  { %4321 = vmatpush3.bf16.msra.mxu0 %v4561_v20  ;;  %4403 = vmatpush3.bf16.msra.mxu1 %v5153_v5  ;;  %v2023_v5 = vld [vmem:[%s8065_s3 + $0xc0] sm:$0xff]  ;;  %v5612_v20 = vld [vmem:[%s8064_s0 + $0xf8] sm:$0xff]  }
  0x29   :  { %4322 = vmatprep.subr.bf16.mxu0 %v4564_v23  ;;  %4397 = vmatprep.subr.bf16.mxu1 %v5162_v7 }
  0x2a   :  { %2151 = vrot.lane.b32.xlu0 %v2011_v51, %s5108_s6  ;;  %2153 = vrot.lane.b32.xlu1 %v2012_v52, %s5108_s6  ;;  %v2058_v51 = vld [vmem:[%s8065_s3 + $0x1d8] sm:$0xff]  ;;  %v2059_v52 = vld [vmem:[%s8065_s3 + $0x1e0] sm:$0xff] }
  0x2c   :  { %4323 = vmatpush3.bf16.msra.mxu0 %v4564_v23  ;;  %4404 = vmatpush3.bf16.msra.mxu1 %v5162_v7  ;;  %v2024_v7 = vld [vmem:[%s8065_s3 + $0xc8] sm:$0xff]  ;;  %v2035_v23 = vld [vmem:[%s8065_s3 + $0x120] sm:$0xff] }
  0x2d   :  { %4324 = vmatprep.subr.bf16.mxu0 %v4567_v24  ;;  %4398 = vmatprep.subr.bf16.mxu1 %v5172_v9 }
  0x2e   :  { %4183 = vmatmul.mubr.msk.bf16.gmra.mrb[8].mxu1 %vm321_vm0, %v5260_v25  ;;  %4261 = vmatmul.mubr.msk.bf16.gmra.mrb[8].mxu0 %vm321_vm0, %v5239_v22 }
  0x2f   :  { %4186 = vmatprep.mubr.msk.bf16.mxu1 %vm321_vm0, %v5266_v26  ;;  %4264 = vmatprep.mubr.msk.bf16.mxu0 %vm321_vm0, %v5260_v25 }
  0x30   :  { %4325 = vmatpush3.bf16.msra.mxu0 %v4567_v24  ;;  %4405 = vmatpush3.bf16.msra.mxu1 %v5172_v9  ;;  %v2025_v9 = vld [vmem:[%s8065_s3 + $0xd0] sm:$0xff]  ;;  %v5638_v24 = vld [vmem:[%s8064_s0 + $0x100] sm:$0xff]  }
  0x31   :  { %4326 = vmatprep.subr.bf16.mxu0 %v4570_v27  ;;  %4399 = vmatprep.subr.bf16.mxu1 %v5188_v13 }
  0x32   :  { %2155 = vrot.lane.b32.xlu0 %v2013_v54, %s5108_s6  ;;  %2157 = vrot.lane.b32.xlu1 %v2014_v56, %s5108_s6  ;;  %v2061_v54 = vld [vmem:[%s8065_s3 + $0x1f0] sm:$0xff]  ;;  %v4594_v56 = vld [vmem:[%s8064_s0 + $0x118] sm:$0xff]  }
  0x34   :  { %4327 = vmatpush3.bf16.msra.mxu0 %v4570_v27  ;;  %4406 = vmatpush3.bf16.msra.mxu1 %v5188_v13  ;;  %v2028_v13 = vld [vmem:[%s8065_s3 + $0xe8] sm:$0xff]  ;;  %v2037_v27 = vld [vmem:[%s8065_s3 + $0x130] sm:$0xff] }
  0x35   :  { %4328 = vmatprep.subr.bf16.mxu0 %v4574_v28  ;;  %4400 = vmatprep.subr.bf16.mxu1 %v5200_v15 }
  0x36   :  { %4187 = vmatmul.mubr.msk.bf16.gmra.mrb[12].mxu1 %vm321_vm0, %v5288_v29  ;;  %4265 = vmatmul.mubr.msk.bf16.gmra.mrb[12].mxu0 %vm321_vm0, %v5266_v26 }
  0x37   :  { %4190 = vmatprep.mubr.msk.bf16.mxu1 %vm321_vm0, %v5294_v30  ;;  %4268 = vmatprep.mubr.msk.bf16.mxu0 %vm321_vm0, %v5288_v29 }
  0x38   :  { %4329 = vmatpush3.bf16.msra.mxu0 %v4574_v28  ;;  %4407 = vmatpush3.bf16.msra.mxu1 %v5200_v15  ;;  %v2029_v15 = vld [vmem:[%s8065_s3 + $0xf0] sm:$0xff]  ;;  %v2038_v28 = vld [vmem:[%s8065_s3 + $0x138] sm:$0xff] }
  0x39   :  { %2159 = vrot.lane.b32.xlu0 %v2015_v57, %s5108_s6  ;;  %2161 = vrot.lane.b32.xlu1 %v2016_v58, %s5108_s6 }
  0x3d   :  { %2163 = vrot.lane.b32.xlu0 %v2017_v60, %s5108_s6  ;;  %2165 = vrot.lane.b32.xlu1 %v2018_v62, %s5108_s6 }
  0x3e   :  { %4191 = vmatmul.mubr.msk.bf16.gmra.mrb[16].mxu1 %vm321_vm0, %v5310_v31  ;;  %4269 = vmatmul.mubr.msk.bf16.gmra.mrb[16].mxu0 %vm321_vm0, %v5294_v30 }
  0x3f   :  { %4194 = vmatprep.mubr.msk.bf16.mxu1 %vm321_vm0, %v5315_v32  ;;  %4272 = vmatprep.mubr.msk.bf16.mxu0 %vm321_vm0, %v5310_v31 }
  0x41   :  { %2167 = vrot.lane.b32.xlu0 %v2019_v63, %s5108_s6  ;;  %2169 = vrot.lane.b32.xlu1 %v2020_v0, %s5108_s6 }
  0x45   :  { %2171 = vrot.lane.b32.xlu0 %v2021_v2, %s5108_s6  ;;  %2173 = vrot.lane.b32.xlu1 %v2022_v4, %s5108_s6 }
  0x46   :  { %4195 = vmatmul.mubr.msk.bf16.gmra.mrb[20].mxu1 %vm321_vm0, %v5336_v35  ;;  %4273 = vmatmul.mubr.msk.bf16.gmra.mrb[20].mxu0 %vm321_vm0, %v5315_v32 }
  0x47   :  { %4198 = vmatprep.mubr.msk.bf16.mxu1 %vm321_vm0, %v5344_v37  ;;  %4276 = vmatprep.mubr.msk.bf16.mxu0 %vm321_vm0, %v5336_v35 }
  0x49   :  { %2175 = vrot.lane.b32.xlu0 %v2023_v5, %s5108_s6  ;;  %2177 = vrot.lane.b32.xlu1 %v2024_v7, %s5108_s6 }
  0x4d   :  { %2179 = vrot.lane.b32.xlu0 %v2025_v9, %s5108_s6  ;;  %2181 = vrot.lane.b32.xlu1 %v2026_v10, %s5108_s6 }
  0x4e   :  { %4199 = vmatmul.mubr.msk.bf16.gmra.mrb[24].mxu1 %vm321_vm0, %v5369_v41  ;;  %4277 = vmatmul.mubr.msk.bf16.gmra.mrb[24].mxu0 %vm321_vm0, %v5344_v37 }
  0x4f   :  { %4202 = vmatprep.mubr.msk.bf16.mxu1 %vm321_vm0, %v5377_v43  ;;  %4280 = vmatprep.mubr.msk.bf16.mxu0 %vm321_vm0, %v5369_v41 }
  0x51   :  { %2183 = vrot.lane.b32.xlu0 %v2027_v11, %s5108_s6  ;;  %2185 = vrot.lane.b32.xlu1 %v2028_v13, %s5108_s6 }
  0x55   :  { %2187 = vrot.lane.b32.xlu0 %v2029_v15, %s5108_s6  ;;  %2189 = vrot.lane.b32.xlu1 %v2030_v16, %s5108_s6 }
  0x56   :  { %4203 = vmatmul.mubr.msk.bf16.gmra.mrb[28].mxu1 %vm321_vm0, %v5403_v47  ;;  %4281 = vmatmul.mubr.msk.bf16.gmra.mrb[28].mxu0 %vm321_vm0, %v5377_v43 }
  0x57   :  { %4206 = vmatprep.mubr.msk.bf16.mxu1 %vm321_vm0, %v5411_v49  ;;  %4330 = vmatprep.mubr.msk.bf16.mxu0 %vm321_vm0, %v5210_v17  ;;  %v2031_v17 = vld [vmem:[%s8065_s3 + $0x100] sm:$0xff] }
  0x59   :  { %2191 = vrot.lane.b32.xlu0 %v2031_v17, %s5108_s6  ;;  %2193 = vrot.lane.b32.xlu1 %v2032_v19, %s5108_s6 }
  0x5e   :  { %4207 = vmatmul.mubr.msk.bf16.gmra.mrb[32].mxu1 %vm321_vm0, %v5437_v53  ;;  %4331 = vmatmul.mubr.msk.bf16.vlgmr.msra.gmra.mrb[0].mxu0 %vm321_vm0, %v5216_v18  ;;  %v5604_v18 = vld [vmem:[%s8064_s0 + $0xf0] sm:$0xff]  }
  0x5f   :  { %4210 = vmatprep.mubr.msk.bf16.mxu1 %vm321_vm0, %v5445_v55  ;;  %4334 = vmatprep.mubr.msk.bf16.mxu0 %vm321_vm0, %v5234_v21  ;;  %v2033_v21 = vld [vmem:[%s8065_s3 + $0x110] sm:$0xff] }
  0x60   :  { %2195 = vrot.lane.b32.xlu0 %v2033_v21, %s5108_s6 }
  0x64   :  { %2199 = vrot.lane.b32.xlu0 %v2035_v23, %s5108_s6 }
  0x66   :  { %4211 = vmatmul.mubr.msk.bf16.gmra.mrb[36].mxu1 %vm321_vm0, %v5471_v59  ;;  %4335 = vmatmul.mubr.msk.bf16.gmra.mrb[4].mxu0 %vm321_vm0, %v5239_v22  ;;  %v2034_v22 = vld [vmem:[%s8065_s3 + $0x118] sm:$0xff] }
  0x67   :  { %4214 = vmatprep.mubr.msk.bf16.mxu1 %vm321_vm0, %v5479_v61  ;;  %4338 = vmatprep.mubr.msk.bf16.mxu0 %vm321_vm0, %v5260_v25  ;;  %v2036_v25 = vld [vmem:[%s8065_s3 + $0x128] sm:$0xff] }
  0x68   :  { %2197 = vrot.lane.b32.xlu1 %v2034_v22, %s5108_s6  ;;  %2203 = vrot.lane.b32.xlu0 %v2037_v27, %s5108_s6 }
  0x6c   :  { %2201 = vrot.lane.b32.xlu1 %v2036_v25, %s5108_s6 }
  0x6e   :  { %4215 = vmatmul.mubr.msk.bf16.gmra.mrb[40].mxu1 %vm321_vm0, %v5505_v1  ;;  %4339 = vmatmul.mubr.msk.bf16.gmra.mrb[8].mxu0 %vm321_vm0, %v5266_v26  ;;  %v5646_v26 = vld [vmem:[%s8064_s0 + $0x108] sm:$0xff]  }
  0x6f   :  { %4218 = vmatprep.mubr.msk.bf16.mxu1 %vm321_vm0, %v5513_v3  ;;  %4342 = vmatprep.mubr.msk.bf16.mxu0 %vm321_vm0, %v5288_v29  ;;  %v2039_v29 = vld [vmem:[%s8065_s3 + $0x140] sm:$0xff] }
  0x70   :  { %2205 = vrot.lane.b32.xlu1 %v2038_v28, %s5108_s6  ;;  %2207 = vrot.lane.b32.xlu0 %v2039_v29, %s5108_s6 }
  0x74   :  { %2211 = vrot.lane.b32.xlu0 %v2041_v34, %s5108_s6 }
  0x76   :  { %4219 = vmatmul.mubr.msk.bf16.gmra.mrb[44].mxu1 %vm321_vm0, %v5536_v6  ;;  %4343 = vmatmul.mubr.msk.bf16.gmra.mrb[12].mxu0 %vm321_vm0, %v5294_v30  ;;  %v5672_v30 = vld [vmem:[%s8064_s0 + $0x110] sm:$0xff]  }
  0x77   :  { %4222 = vmatprep.mubr.msk.bf16.mxu1 %vm321_vm0, %v5544_v8  ;;  %4346 = vmatprep.mubr.msk.bf16.mxu0 %vm321_vm0, %v5310_v31  ;;  %v2040_v31 = vld [vmem:[%s8065_s3 + $0x148] sm:$0xff] }
  0x78   :  { %2209 = vrot.lane.b32.xlu1 %v2040_v31, %s5108_s6  ;;  %2215 = vrot.lane.b32.xlu0 %v2043_v36, %s5108_s6 }
  0x7c   :  { %2219 = vrot.lane.b32.xlu0 %v2045_v38, %s5108_s6 }
  0x7e   :  { %4223 = vmatmul.mubr.msk.bf16.gmra.mrb[48].mxu1 %vm321_vm0, %v5570_v12  ;;  %4347 = vmatmul.mubr.msk.bf16.gmra.mrb[16].mxu0 %vm321_vm0, %v5315_v32  ;;  %v4592_v32 = vld [vmem:[%s8064_s0 + $0x88] sm:$0xff]  }
  0x7f   :  { %4226 = vmatprep.mubr.msk.bf16.mxu1 %vm321_vm0, %v5578_v14  ;;  %4350 = vmatprep.mubr.msk.bf16.mxu0 %vm321_vm0, %v5336_v35  ;;  %v2042_v35 = vld [vmem:[%s8065_s3 + $0x158] sm:$0xff]  ;;  %v5840_v57 = vpop.permute.xlu0 %2127  ;;  %v5842_v58 = vpop.permute.xlu1 %2131 }
  0x80   :  { %2213 = vrot.lane.b32.xlu1 %v2042_v35, %s5108_s6  ;;  %2223 = vrot.lane.b32.xlu0 %v2047_v40, %s5108_s6  ;;  %8190 = vst [vmem:[#allocation2_spill] sm:$0xff] %v5840_v57  ;;  %8191 = vst [vmem:[#allocation3_spill] sm:$0xff] %v5842_v58 }
  0x83   :  { %v5846_v62 = vpop.permute.xlu1 %2133 }
  0x84   :  { %2227 = vrot.lane.b32.xlu0 %v2049_v42, %s5108_s6  ;;  %8193 = vst [vmem:[#allocation5_spill] sm:$0xff] %v5846_v62 }
  0x86   :  { %4227 = vmatmul.mubr.msk.bf16.gmra.mrb[52].mxu1 %vm321_vm0, %v5604_v18  ;;  %4351 = vmatmul.mubr.msk.bf16.gmra.mrb[20].mxu0 %vm321_vm0, %v5344_v37  ;;  %v2044_v37 = vld [vmem:[%s8065_s3 + $0x168] sm:$0xff] }
  0x87   :  { %4230 = vmatprep.mubr.msk.bf16.mxu1 %vm321_vm0, %v5612_v20  ;;  %4354 = vmatprep.mubr.msk.bf16.mxu0 %vm321_vm0, %v5369_v41  ;;  %v2048_v41 = vld [vmem:[%s8065_s3 + $0x188] sm:$0xff]  ;;  %v5850_v2 = vpop.permute.xlu1 %2137 }
  0x88   :  { %2217 = vrot.lane.b32.xlu1 %v2044_v37, %s5108_s6  ;;  %2231 = vrot.lane.b32.xlu0 %v2051_v44, %s5108_s6  ;;  %8195 = vst [vmem:[#allocation7_spill] sm:$0xff] %v5850_v2 }
  0x8c   :  { %2221 = vrot.lane.b32.xlu1 %v2046_v39, %s5108_s6  ;;  %2235 = vrot.lane.b32.xlu0 %v2053_v46, %s5108_s6 }
  0x8e   :  { %4231 = vmatmul.mubr.msk.bf16.gmra.mrb[56].mxu1 %vm321_vm0, %v5638_v24  ;;  %4355 = vmatmul.mubr.msk.bf16.gmra.mrb[24].mxu0 %vm321_vm0, %v5377_v43  ;;  %v2050_v43 = vld [vmem:[%s8065_s3 + $0x198] sm:$0xff] }
  0x8f   :  { %4234 = vmatprep.mubr.msk.bf16.mxu1 %vm321_vm0, %v5646_v26  ;;  %4358 = vmatprep.mubr.msk.bf16.mxu0 %vm321_vm0, %v5403_v47  ;;  %v2054_v47 = vld [vmem:[%s8065_s3 + $0x1b8] sm:$0xff] }
  0x90   :  { %2225 = vrot.lane.b32.xlu1 %v2048_v41, %s5108_s6  ;;  %2239 = vrot.lane.b32.xlu0 %v2055_v48, %s5108_s6 }
  0x94   :  { %2229 = vrot.lane.b32.xlu1 %v2050_v43, %s5108_s6  ;;  %2243 = vrot.lane.b32.xlu0 %v2057_v50, %s5108_s6 }
  0x96   :  { %4235 = vmatmul.mubr.msk.bf16.gmra.mrb[60].mxu1 %vm321_vm0, %v5672_v30  ;;  %4359 = vmatmul.mubr.msk.bf16.gmra.mrb[28].mxu0 %vm321_vm0, %v4592_v32 }
  0x97   :  { %4284 = vmatprep.mubr.msk.bf16.mxu1 %vm321_vm0, %v4593_v33  ;;  %4362 = vmatprep.mubr.msk.bf16.mxu0 %vm321_vm0, %v5437_v53 }
  0x98   :  { %2233 = vrot.lane.b32.xlu1 %v2052_v45, %s5108_s6  ;;  %2247 = vrot.lane.b32.xlu0 %v2059_v52, %s5108_s6 }
  0x9c   :  { %2237 = vrot.lane.b32.xlu1 %v2054_v47, %s5108_s6  ;;  %2251 = vrot.lane.b32.xlu0 %v2061_v54, %s5108_s6 }
  0x9e   :  { %4285 = vmatmul.mubr.msk.bf16.vlgmr.msra.gmra.mrb[32].mxu1 %vm321_vm0, %v5411_v49  ;;  %4363 = vmatmul.mubr.msk.bf16.gmra.mrb[32].mxu0 %vm321_vm0, %v5445_v55  ;;  %v2056_v49 = vld [vmem:[%s8065_s3 + $0x1c8] sm:$0xff] }
  0x9f   :  { %4288 = vmatprep.mubr.msk.bf16.mxu1 %vm321_vm0, %v5437_v53  ;;  %4366 = vmatprep.mubr.msk.bf16.mxu0 %vm321_vm0, %v5471_v59  ;;  %v2060_v53 = vld [vmem:[%s8065_s3 + $0x1e8] sm:$0xff] }
  0xa0   :  { %2241 = vrot.lane.b32.xlu1 %v2056_v49, %s5108_s6 }
  0xa4   :  { %2245 = vrot.lane.b32.xlu1 %v2058_v51, %s5108_s6  ;;  %v5949_v51 = vld [vmem:[%s8066_s2] ss:$0 sm:$0xff] }
  0xa6   :  { %4289 = vmatmul.mubr.msk.bf16.gmra.mrb[36].mxu1 %vm321_vm0, %v5445_v55  ;;  %4367 = vmatmul.mubr.msk.bf16.gmra.mrb[36].mxu0 %vm321_vm0, %v5479_v61  ;;  %v2062_v55 = vld [vmem:[%s8065_s3 + $0x1f8] sm:$0xff] }
  0xa7   :  { %4292 = vmatprep.mubr.msk.bf16.mxu1 %vm321_vm0, %v5471_v59  ;;  %4370 = vmatprep.mubr.msk.bf16.mxu0 %vm321_vm0, %v5505_v1  ;;  %v5844_v59 = vpop.permute.xlu0 %2129 }
  0xa8   :  { %2249 = vrot.lane.b32.xlu1 %v2060_v53, %s5108_s6  ;;  %8192 = vst [vmem:[#allocation4_spill] sm:$0xff] %v5844_v59 }
  0xab   :  { %v5848_v0 = vpop.permute.xlu0 %2135 }
  0xac   :  { %2253 = vrot.lane.b32.xlu1 %v2062_v55, %s5108_s6  ;;  %8194 = vst [vmem:[#allocation6_spill] sm:$0xff] %v5848_v0 }
  0xae   :  { %4293 = vmatmul.mubr.msk.bf16.gmra.mrb[40].mxu1 %vm321_vm0, %v5479_v61  ;;  %4371 = vmatmul.mubr.msk.bf16.gmra.mrb[40].mxu0 %vm321_vm0, %v5513_v3 }
  0xaf   :  { %4296 = vmatprep.mubr.msk.bf16.mxu1 %vm321_vm0, %v5505_v1  ;;  %4374 = vmatprep.mubr.msk.bf16.mxu0 %vm321_vm0, %v5536_v6  ;;  %v5854_v4 = vpop.permute.xlu0 %2139 }
  0xb0   :  { %8196 = vst [vmem:[#allocation8_spill] sm:$0xff] %v5854_v4 }
  0xb3   :  { %v5864_v9 = vpop.permute.xlu0 %2143 }
  0xb4   :  { %8198 = vst [vmem:[#allocation10_spill] sm:$0xff] %v5864_v9 }
  0xb6   :  { %4297 = vmatmul.mubr.msk.bf16.gmra.mrb[44].mxu1 %vm321_vm0, %v5513_v3  ;;  %4375 = vmatmul.mubr.msk.bf16.gmra.mrb[44].mxu0 %vm321_vm0, %v5544_v8 }
  0xb7   :  { %4300 = vmatprep.mubr.msk.bf16.mxu1 %vm321_vm0, %v5536_v6  ;;  %4378 = vmatprep.mubr.msk.bf16.mxu0 %vm321_vm0, %v5570_v12  ;;  %v5876_v15 = vpop.permute.xlu0 %2147 }
  0xb8   :  { %8200 = vst [vmem:[#allocation12_spill] sm:$0xff] %v5876_v15 }
  0xbe   :  { %4301 = vmatmul.mubr.msk.bf16.gmra.mrb[48].mxu1 %vm321_vm0, %v5544_v8  ;;  %4379 = vmatmul.mubr.msk.bf16.gmra.mrb[48].mxu0 %vm321_vm0, %v5578_v14  ;;  %v5862_v8 = vpop.permute.xlu1 %2141 }
  0xbf   :  { %4304 = vmatprep.mubr.msk.bf16.mxu1 %vm321_vm0, %v5570_v12  ;;  %4382 = vmatprep.mubr.msk.bf16.mxu0 %vm321_vm0, %v5604_v18  ;;  %8197 = vst [vmem:[#allocation9_spill] sm:$0xff] %v5862_v8 }
  0xc6   :  { %4305 = vmatmul.mubr.msk.bf16.gmra.mrb[52].mxu1 %vm321_vm0, %v5578_v14  ;;  %4383 = vmatmul.mubr.msk.bf16.gmra.mrb[52].mxu0 %vm321_vm0, %v5612_v20  ;;  %v5874_v14 = vpop.permute.xlu1 %2145 }
  0xc7   :  { %4308 = vmatprep.mubr.msk.bf16.mxu1 %vm321_vm0, %v5604_v18  ;;  %4386 = vmatprep.mubr.msk.bf16.mxu0 %vm321_vm0, %v5638_v24  ;;  %8199 = vst [vmem:[#allocation11_spill] sm:$0xff] %v5874_v14 }
  0xca   :  { %v5882_v18 = vpop.permute.xlu1 %2149 }
  0xcb   :  { %8201 = vst [vmem:[#allocation13_spill] sm:$0xff] %v5882_v18 }
  0xce   :  { %4309 = vmatmul.mubr.msk.bf16.gmra.mrb[56].mxu1 %vm321_vm0, %v5612_v20  ;;  %4387 = vmatmul.mubr.msk.bf16.gmra.mrb[56].mxu0 %vm321_vm0, %v5646_v26  ;;  %v5886_v20 = vpop.permute.xlu0 %2151  ;;  %v5890_v22 = vpop.permute.xlu1 %2153 }
  0xcf   :  { %4312 = vmatprep.mubr.msk.bf16.mxu1 %vm321_vm0, %v5638_v24  ;;  %4390 = vmatprep.mubr.msk.bf16.mxu0 %vm321_vm0, %v5672_v30  ;;  %8202 = vst [vmem:[#allocation14_spill] sm:$0xff] %v5886_v20  ;;  %8203 = vst [vmem:[#allocation15_spill] sm:$0xff] %v5890_v22 }
  0xd2   :  { %v5894_v24 = vpop.permute.xlu0 %2155  ;;  %v5902_v28 = vpop.permute.xlu1 %2157 }
  0xd3   :  { %8204 = vst [vmem:[#allocation16_spill] sm:$0xff] %v5894_v24  ;;  %8205 = vst [vmem:[#allocation17_spill] sm:$0xff] %v5902_v28 }
  0xd6   :  { %4313 = vmatmul.mubr.msk.bf16.gmra.mrb[60].mxu1 %vm321_vm0, %v5646_v26  ;;  %4391 = vmatmul.mubr.msk.bf16.gmra.mrb[60].mxu0 %vm321_vm0, %v4594_v56  ;;  %v5904_v29 = vpop.permute.xlu0 %2159  ;;  %v5914_v34 = vpop.permute.xlu1 %2161 }
  0xd7   :  { %8206 = vst [vmem:[#allocation18_spill] sm:$0xff] %v5904_v29  ;;  %8207 = vst [vmem:[#allocation19_spill] sm:$0xff] %v5914_v34 }
  0xda   :  { %v5916_v35 = vpop.permute.xlu0 %2163  ;;  %v5922_v38 = vpop.permute.xlu1 %2165 }
  0xdb   :  { %8208 = vst [vmem:[#allocation20_spill] sm:$0xff] %v5916_v35  ;;  %8209 = vst [vmem:[#allocation21_spill] sm:$0xff] %v5922_v38 }
  0xde   :  { %v5926_v40 = vpop.permute.xlu0 %2167  ;;  %v5930_v42 = vpop.permute.xlu1 %2169 }
  0xdf   :  { %8210 = vst [vmem:[#allocation22_spill] sm:$0xff] %v5926_v40  ;;  %8211 = vst [vmem:[#allocation23_spill] sm:$0xff] %v5930_v42 }
  0xe2   :  { %v5934_v44 = vpop.permute.xlu0 %2171  ;;  %v5942_v48 = vpop.permute.xlu1 %2173 }
  0xe3   :  { %8212 = vst [vmem:[#allocation24_spill] sm:$0xff] %v5934_v44  ;;  %8213 = vst [vmem:[#allocation25_spill] sm:$0xff] %v5942_v48 }
  0xe6   :  { %v5944_v49 = vpop.permute.xlu0 %2175  ;;  %v5951_v56 = vpop.permute.xlu1 %2177 }
  0xe7   :  { %8214 = vst [vmem:[#allocation26_spill] sm:$0xff] %v5944_v49  ;;  %8215 = vst [vmem:[#allocation27_spill] sm:$0xff] %v5951_v56 }
  0xea   :  { %v5956_v48 = vpop.permute.xlu0 %2179 }
  0xeb   :  { %8216 = vst [vmem:[#allocation28_spill] sm:$0xff] %v5956_v48 }
  0xf1   :  { %v4176_v60 = vpop.f32.mrb[0].mxu1 }
  0xf2   :  { %v452_v61 = vpop.f32.mrb[1].mxu1 }
  0xf3   :  { %v4177_v63 = vpop.f32.mrb[2].mxu1 }
  0xf4   :  { %v455_v1 = vpop.f32.mrb[3].mxu1 }
  0xf9   :  { %v5852_v3 = vpop.f32.mrb[4].mxu1 }
  0xfa   :  { %v5856_v5 = vpop.f32.mrb[5].mxu1 }
  0xfb   :  { %v5858_v6 = vpop.f32.mrb[6].mxu1 }
  0xfc   :  { %v5860_v7 = vpop.f32.mrb[7].mxu1 }
 0x101   :  { %v5866_v10 = vpop.f32.mrb[8].mxu1 }
 0x102   :  { %v5868_v11 = vpop.f32.mrb[9].mxu1 }
 0x103   :  { %v5870_v12 = vpop.f32.mrb[10].mxu1 }
 0x104   :  { %v5872_v13 = vpop.f32.mrb[11].mxu1 }
 0x109   :  { %v5878_v16 = vpop.f32.mrb[12].mxu1 }
 0x10a   :  { %v5880_v17 = vpop.f32.mrb[13].mxu1 }
 0x10b   :  { %v5884_v19 = vpop.f32.mrb[14].mxu1 }
 0x10c   :  { %v5888_v21 = vpop.f32.mrb[15].mxu1 }
 0x111   :  { %v5892_v23 = vpop.f32.mrb[16].mxu1 }
 0x112   :  { %v5896_v25 = vpop.f32.mrb[17].mxu1 }
 0x113   :  { %v5898_v26 = vpop.f32.mrb[18].mxu1 }
 0x114   :  { %v5900_v27 = vpop.f32.mrb[19].mxu1 }
 0x119   :  { %v5906_v30 = vpop.f32.mrb[20].mxu1 }
 0x11a   :  { %v5908_v31 = vpop.f32.mrb[21].mxu1 }
 0x11b   :  { %v5910_v32 = vpop.f32.mrb[22].mxu1 }
 0x11c   :  { %v5912_v33 = vpop.f32.mrb[23].mxu1 }
 0x121   :  { %v5918_v36 = vpop.f32.mrb[24].mxu1 }
 0x122   :  { %v5920_v37 = vpop.f32.mrb[25].mxu1 }
 0x123   :  { %v5924_v39 = vpop.f32.mrb[26].mxu1 }
 0x124   :  { %v5928_v41 = vpop.f32.mrb[27].mxu1 }
 0x129   :  { %v5932_v43 = vpop.f32.mrb[28].mxu1 }
 0x12a   :  { %v5936_v45 = vpop.f32.mrb[29].mxu1 }
 0x12b   :  { %v5938_v46 = vpop.f32.mrb[30].mxu1 }
 0x12c   :  { %v5940_v47 = vpop.f32.mrb[31].mxu1 }
 0x131   :  { %v4332_v50 = vpop.f32.mrb[0].mxu0 }
 0x132   :  { %v4408_v52 = vadd.f32 %v4332_v50, %v4176_v60  ;;  %v1161_v53 = vpop.f32.mrb[1].mxu0  ;;  %v5965_v50 = vpop.permute.xlu1 %2181 }
 0x133   :  { %v4409_v54 = vadd.f32 %v1161_v53, %v452_v61  ;;  %v4333_v55 = vpop.f32.mrb[2].mxu0  ;;  %8217 = vst [vmem:[#allocation29_spill] sm:$0xff] %v5965_v50  ;;  %v5969_v53 = vpop.permute.xlu0 %2183 }
 0x134   :  { %v5954_v42 = vadd.f32 %v4408_v52, %v5949_v51  ;;  %v4410_v40 = vadd.f32 %v4333_v55, %v4177_v63  ;;  %v1164_v34 = vpop.f32.mrb[3].mxu0  ;;  %8218 = vst [vmem:[#allocation30_spill] sm:$0xff] %v5969_v53 }
 0x135   :  { %v4411_v49 = vadd.f32 %v1164_v34, %v455_v1  ;;  %v5960_v44 = vadd.f32 %v4409_v54, %v5949_v51 }
 0x136   :  { %4595 = vtanh.f32 %v5954_v42  ;;  %v5963_v60 = vadd.f32 %v4410_v40, %v5949_v51 }
 0x137   :  { %4597 = vtanh.f32 %v5960_v44  ;;  %v5973_v1 = vadd.f32 %v4411_v49, %v5949_v51 }
 0x138   :  { %4599 = vtanh.f32 %v5963_v60 }
 0x139   :  { %v4336_v61 = vpop.f32.mrb[4].mxu0 }
 0x13a   :  { %v4412_v52 = vadd.f32 %v4336_v61, %v5852_v3  ;;  %v1177_v63 = vpop.f32.mrb[5].mxu0 }
 0x13b   :  { %v4413_v34 = vadd.f32 %v1177_v63, %v5856_v5  ;;  %v4337_v54 = vpop.f32.mrb[6].mxu0  ;;  %v5989_v5 = vpop.permute.xlu1 %2185 }
 0x13c   :  { %v5977_v40 = vadd.f32 %v4412_v52, %v5949_v51  ;;  %v4414_v55 = vadd.f32 %v4337_v54, %v5858_v6  ;;  %v1180_v56 = vpop.f32.mrb[7].mxu0  ;;  %8219 = vst [vmem:[#allocation31_spill] sm:$0xff] %v5989_v5  ;;  %v5991_v52 = vpop.permute.xlu0 %2187 }
 0x13d   :  { %v4415_v50 = vadd.f32 %v1180_v56, %v5860_v7  ;;  %v5983_v3 = vadd.f32 %v4413_v34, %v5949_v51  ;;  %8220 = vst [vmem:[#allocation32_spill] sm:$0xff] %v5991_v52 }
 0x13e   :  { %4601 = vtanh.f32 %v5977_v40  ;;  %v5987_v49 = vadd.f32 %v4414_v55, %v5949_v51 }
 0x13f   :  { %4603 = vtanh.f32 %v5973_v1  ;;  %v5999_v55 = vadd.f32 %v4415_v50, %v5949_v51  ;;  %v6004_v48 = vpop.permute.xlu1 %2189 }
 0x140   :  { %v4596_v61 = vpop.eup %4595  ;;  %4605 = vtanh.f32 %v5983_v3  ;;  %8221 = vst [vmem:[#allocation33_spill] sm:$0xff] %v6004_v48 }
 0x141   :  { %2451 = vrot.lane.b32.xlu0 %v4596_v61, %s5108_s6  ;;  %v4340_v6 = vpop.f32.mrb[8].mxu0  ;;  %4607 = vtanh.f32 %v5987_v49  ;;  %v4598_v54 = vpop.eup %4597 }
 0x142   :  { %v4416_v7 = vadd.f32 %v4340_v6, %v5866_v10  ;;  %v1193_v56 = vpop.f32.mrb[9].mxu0  ;;  %v4600_v52 = vpop.eup %4599  ;;  %4609 = vtanh.f32 %v5999_v55 }
 0x143   :  { %v4417_v63 = vadd.f32 %v1193_v56, %v5868_v11  ;;  %v4341_v34 = vpop.f32.mrb[10].mxu0  ;;  %2453 = vrot.lane.b32.xlu1 %v4600_v52, %s5108_s6  ;;  %v6007_v10 = vpop.permute.xlu0 %2191 }
 0x144   :  { %v4418_v5 = vadd.f32 %v4341_v34, %v5870_v12  ;;  %v1196_v53 = vpop.f32.mrb[11].mxu0  ;;  %8222 = vst [vmem:[#allocation34_spill] sm:$0xff] %v6007_v10  ;;  %v6010_v11 = vadd.f32 %v4416_v7, %v5949_v51  ;;  %v6018_v34 = vpop.permute.xlu1 %2193 }
 0x145   :  { %v4419_v61 = vadd.f32 %v1196_v53, %v5872_v13  ;;  %2447 = vrot.lane.b32.xlu0 %v4598_v54, %s5108_s6  ;;  %8223 = vst [vmem:[#allocation35_spill] sm:$0xff] %v6018_v34  ;;  %v6021_v54 = vadd.f32 %v4417_v63, %v5949_v51 }
 0x146   :  { %4611 = vtanh.f32 %v6010_v11 }
 0x147   :  { %v6024_v48 = vpop.permute.xlu0 %2195  ;;  %4613 = vtanh.f32 %v6021_v54 }
 0x148   :  { %v4602_v6 = vpop.eup %4601  ;;  %8224 = vst [vmem:[#allocation36_spill] sm:$0xff] %v6024_v48  ;;  %v6033_v63 = vpop.permute.xlu1 %2197 }
 0x149   :  { %v4604_v50 = vpop.eup %4603  ;;  %2459 = vrot.lane.b32.xlu0 %v4602_v6, %s5108_s6  ;;  %v4344_v12 = vpop.f32.mrb[12].mxu0  ;;  %8225 = vst [vmem:[#allocation37_spill] sm:$0xff] %v6033_v63 }
 0x14a   :  { %2449 = vrot.lane.b32.xlu1 %v4604_v50, %s5108_s6  ;;  %v4420_v13 = vadd.f32 %v4344_v12, %v5878_v16  ;;  %v1209_v53 = vpop.f32.mrb[13].mxu0  ;;  %v4606_v7 = vpop.eup %4605 }
 0x14b   :  { %v4421_v52 = vadd.f32 %v1209_v53, %v5880_v17  ;;  %v4345_v56 = vpop.f32.mrb[14].mxu0  ;;  %v4608_v50 = vpop.eup %4607  ;;  %v6030_v17 = vadd.f32 %v4418_v5, %v5949_v51 }
 0x14c   :  { %v4422_v10 = vadd.f32 %v4345_v56, %v5884_v19  ;;  %v1212_v6 = vpop.f32.mrb[15].mxu0  ;;  %v4610_v53 = vpop.eup %4609 }
 0x14d   :  { %v4423_v16 = vadd.f32 %v1212_v6, %v5888_v21  ;;  %2455 = vrot.lane.b32.xlu0 %v4606_v7, %s5108_s6  ;;  %v6036_v34 = vpop.permute.xlu0 %2199  ;;  %4615 = vtanh.f32 %v6030_v17  ;;  %v6040_v21 = vadd.f32 %v4419_v61, %v5949_v51  ;;  %v6045_v6 = vadd.f32 %v4420_v13, %v5949_v51  ;;  %v6051_v61 = vpop.permute.xlu1 %2201 }
 0x14e   :  { %2461 = vrot.lane.b32.xlu1 %v4608_v50, %s5108_s6  ;;  %8226 = vst [vmem:[#allocation38_spill] sm:$0xff] %v6036_v34  ;;  %8227 = vst [vmem:[#allocation39_spill] sm:$0xff] %v6051_v61  ;;  %v6060_v13 = vadd.f32 %v4422_v10, %v5949_v51 }
 0x14f   :  { %4617 = vtanh.f32 %v6040_v21  ;;  %v6069_v10 = vadd.f32 %v4423_v16, %v5949_v51 }
 0x150   :  { %4619 = vtanh.f32 %v6045_v6 }
 0x151   :  { %v4348_v12 = vpop.f32.mrb[16].mxu0 }
 0x152   :  { %v4424_v19 = vadd.f32 %v4348_v12, %v5892_v23  ;;  %v1225_v56 = vpop.f32.mrb[17].mxu0  ;;  %2457 = vrot.lane.b32.xlu1 %v4610_v53, %s5108_s6  ;;  %v4612_v23 = vpop.eup %4611 }
 0x153   :  { %v4425_v5 = vadd.f32 %v1225_v56, %v5896_v25  ;;  %v4349_v7 = vpop.f32.mrb[18].mxu0  ;;  %2467 = vrot.lane.b32.xlu0 %v4612_v23, %s5108_s6  ;;  %v6055_v25 = vadd.f32 %v4421_v52, %v5949_v51  ;;  %v6057_v53 = vpop.permute.xlu0 %2203 }
 0x154   :  { %v4426_v50 = vadd.f32 %v4349_v7, %v5898_v26  ;;  %v1228_v63 = vpop.f32.mrb[19].mxu0  ;;  %8228 = vst [vmem:[#allocation40_spill] sm:$0xff] %v6057_v53  ;;  %v4614_v56 = vpop.eup %4613 }
 0x155   :  { %v4427_v12 = vadd.f32 %v1228_v63, %v5900_v27  ;;  %4621 = vtanh.f32 %v6055_v25 }
 0x156   :  { %4623 = vtanh.f32 %v6060_v13 }
 0x157   :  { %2463 = vrot.lane.b32.xlu0 %v4614_v56, %s5108_s6  ;;  %v4616_v34 = vpop.eup %4615  ;;  %4625 = vtanh.f32 %v6069_v10 }
 0x158   :  { %2469 = vrot.lane.b32.xlu1 %v4616_v34, %s5108_s6 }
 0x159   :  { %v4352_v26 = vpop.f32.mrb[20].mxu0 }
 0x15a   :  { %v4428_v27 = vadd.f32 %v4352_v26, %v5906_v30  ;;  %v1241_v63 = vpop.f32.mrb[21].mxu0  ;;  %v6074_v30 = vpop.permute.xlu1 %2205  ;;  %v6080_v26 = vadd.f32 %v4424_v19, %v5949_v51  ;;  %v6093_v19 = vadd.f32 %v4425_v5, %v5949_v51 }
 0x15b   :  { %v4429_v7 = vadd.f32 %v1241_v63, %v5908_v31  ;;  %v4353_v23 = vpop.f32.mrb[22].mxu0  ;;  %8229 = vst [vmem:[#allocation41_spill] sm:$0xff] %v6074_v30  ;;  %v6077_v31 = vpop.permute.xlu0 %2207 }
 0x15c   :  { %v4430_v52 = vadd.f32 %v4353_v23, %v5910_v32  ;;  %v1244_v61 = vpop.f32.mrb[23].mxu0  ;;  %8230 = vst [vmem:[#allocation42_spill] sm:$0xff] %v6077_v31  ;;  %v4618_v32 = vpop.eup %4617  ;;  %4627 = vtanh.f32 %v6080_v26 }
 0x15d   :  { %v6072_v53 = vadd.f32 %v1244_v61, %v5912_v33  ;;  %v4620_v63 = vpop.eup %4619  ;;  %2465 = vrot.lane.b32.xlu1 %v4618_v32, %s5108_s6  ;;  %4629 = vtanh.f32 %v6093_v19 }
 0x15e   :  { %2475 = vrot.lane.b32.xlu0 %v4620_v63, %s5108_s6  ;;  %v6089_v23 = vpop.permute.xlu1 %2209 }
 0x15f   :  { %8231 = vst [vmem:[#allocation43_spill] sm:$0xff] %v6089_v23  ;;  %v6098_v30 = vpop.permute.xlu0 %2211 }
 0x160   :  { %8232 = vst [vmem:[#allocation44_spill] sm:$0xff] %v6098_v30 }
 0x161   :  { %v4356_v56 = vpop.f32.mrb[24].mxu0 }
 0x162   :  { %v4432_v16 = vadd.f32 %v4356_v56, %v5918_v36  ;;  %v1257_v33 = vpop.f32.mrb[25].mxu0  ;;  %v4622_v56 = vpop.eup %4621 }
 0x163   :  { %v6087_v61 = vadd.f32 %v1257_v33, %v5920_v37  ;;  %v4357_v34 = vpop.f32.mrb[26].mxu0  ;;  %v6104_v37 = vadd.f32 %v4426_v50, %v5949_v51  ;;  %v4624_v63 = vpop.eup %4623  ;;  %2471 = vrot.lane.b32.xlu0 %v4622_v56, %s5108_s6  ;;  %v6113_v33 = vadd.f32 %v4427_v12, %v5949_v51 }
 0x164   :  { %v6096_v31 = vadd.f32 %v4357_v34, %v5924_v39  ;;  %v1260_v32 = vpop.f32.mrb[27].mxu0  ;;  %2477 = vrot.lane.b32.xlu1 %v4624_v63, %s5108_s6  ;;  %v6109_v39 = vpop.permute.xlu1 %2213  ;;  %v6124_v63 = vadd.f32 %v4428_v27, %v5949_v51  ;;  %v6139_v27 = vadd.f32 %v4429_v7, %v5949_v51 }
 0x165   :  { %v6101_v36 = vadd.f32 %v1260_v32, %v5928_v41  ;;  %8233 = vst [vmem:[#allocation45_spill] sm:$0xff] %v6109_v39  ;;  %4631 = vtanh.f32 %v6104_v37  ;;  %v6118_v34 = vpop.permute.xlu0 %2215  ;;  %v4626_v32 = vpop.eup %4625 }
 0x166   :  { %8234 = vst [vmem:[#allocation46_spill] sm:$0xff] %v6118_v34  ;;  %4633 = vtanh.f32 %v6113_v33 }
 0x167   :  { %4635 = vtanh.f32 %v6124_v63 }
 0x168   :  { %2473 = vrot.lane.b32.xlu1 %v4626_v32, %s5108_s6  ;;  %4637 = vtanh.f32 %v6139_v27 }
 0x169   :  { %v4360_v5 = vpop.f32.mrb[28].mxu0  ;;  %v6141_v32 = vpop.permute.xlu0 %2219 }
 0x16a   :  { %v6116_v41 = vadd.f32 %v4360_v5, %v5932_v43  ;;  %v1273_v50 = vpop.f32.mrb[29].mxu0  ;;  %v4628_v5 = vpop.eup %4627  ;;  %8236 = vst [vmem:[#allocation48_spill] sm:$0xff] %v6141_v32 }
 0x16b   :  { %v6121_v56 = vadd.f32 %v1273_v50, %v5936_v45  ;;  %v4361_v23 = vpop.f32.mrb[30].mxu0  ;;  %2483 = vrot.lane.b32.xlu0 %v4628_v5, %s5108_s6  ;;  %v6135_v45 = vpop.permute.xlu1 %2217 }
 0x16c   :  { %v6128_v39 = vadd.f32 %v4361_v23, %v5938_v46  ;;  %v1276_v12 = vpop.f32.mrb[31].mxu0  ;;  %8235 = vst [vmem:[#allocation47_spill] sm:$0xff] %v6135_v45  ;;  %v4630_v34 = vpop.eup %4629 }
 0x16d   :  { %v6131_v43 = vadd.f32 %v1276_v12, %v5940_v47  ;;  %v6144_v47 = vadd.f32 %v4430_v52, %v5949_v51 }
 0x16f   :  { %2479 = vrot.lane.b32.xlu0 %v4630_v34, %s5108_s6  ;;  %v4632_v38 = vpop.eup %4631  ;;  %4639 = vtanh.f32 %v6144_v47 }
 0x170   :  { %2485 = vrot.lane.b32.xlu1 %v4632_v38, %s5108_s6  ;;  %v4634_v34 = vpop.eup %4633 }
 0x171   :  { %v4286_v50 = vpop.f32.mrb[32].mxu1  ;;  %v4364_v46 = vpop.f32.mrb[32].mxu0 }
 0x172   :  { %v927_v23 = vpop.f32.mrb[33].mxu1  ;;  %v6146_v12 = vadd.f32 %v4364_v46, %v4286_v50  ;;  %v1289_v30 = vpop.f32.mrb[33].mxu0  ;;  %v6160_v50 = vadd.f32 %v6072_v53, %v5949_v51  ;;  %v6165_v46 = vadd.f32 %v4432_v16, %v5949_v51 }
 0x173   :  { %v4287_v5 = vpop.f32.mrb[34].mxu1  ;;  %v6149_v45 = vadd.f32 %v1289_v30, %v927_v23  ;;  %v4365_v48 = vpop.f32.mrb[34].mxu0 }
 0x174   :  { %v930_v7 = vpop.f32.mrb[35].mxu1  ;;  %v6152_v32 = vadd.f32 %v4365_v48, %v4287_v5  ;;  %v1292_v29 = vpop.f32.mrb[35].mxu0  ;;  %2481 = vrot.lane.b32.xlu1 %v4634_v34, %s5108_s6  ;;  %4641 = vtanh.f32 %v6160_v50  ;;  %v6179_v34 = vadd.f32 %v6087_v61, %v5949_v51 }
 0x175   :  { %v6155_v52 = vadd.f32 %v1292_v29, %v930_v7  ;;  %v6162_v30 = vpop.permute.xlu1 %2221  ;;  %v6167_v48 = vpop.permute.xlu0 %2223  ;;  %4643 = vtanh.f32 %v6165_v46 }
 0x176   :  { %8237 = vst [vmem:[#allocation49_spill] sm:$0xff] %v6162_v30  ;;  %8238 = vst [vmem:[#allocation50_spill] sm:$0xff] %v6167_v48  ;;  %v4636_v5 = vpop.eup %4635  ;;  %4645 = vtanh.f32 %v6179_v34 }
 0x177   :  { %2491 = vrot.lane.b32.xlu0 %v4636_v5, %s5108_s6 }
 0x179   :  { %v4290_v23 = vpop.f32.mrb[36].mxu1  ;;  %v4368_v38 = vpop.f32.mrb[36].mxu0 }
 0x17a   :  { %v943_v29 = vpop.f32.mrb[37].mxu1  ;;  %v6171_v7 = vadd.f32 %v4368_v38, %v4290_v23  ;;  %v1305_v53 = vpop.f32.mrb[37].mxu0  ;;  %v6187_v38 = vadd.f32 %v6096_v31, %v5949_v51 }
 0x17b   :  { %v4291_v22 = vpop.f32.mrb[38].mxu1  ;;  %v6174_v30 = vadd.f32 %v1305_v53, %v943_v29  ;;  %v4369_v16 = vpop.f32.mrb[38].mxu0 }
 0x17c   :  { %v946_v35 = vpop.f32.mrb[39].mxu1  ;;  %v6181_v48 = vadd.f32 %v4369_v16, %v4291_v22  ;;  %v1308_v28 = vpop.f32.mrb[39].mxu0  ;;  %4647 = vtanh.f32 %v6187_v38 }
 0x17d   :  { %v6183_v20 = vadd.f32 %v1308_v28, %v946_v35  ;;  %v4638_v23 = vpop.eup %4637  ;;  %v6190_v29 = vpop.permute.xlu1 %2225  ;;  %v6199_v35 = vadd.f32 %v6101_v36, %v5949_v51 }
 0x17e   :  { %2487 = vrot.lane.b32.xlu0 %v4638_v23, %s5108_s6  ;;  %8239 = vst [vmem:[#allocation51_spill] sm:$0xff] %v6190_v29  ;;  %v4640_v5 = vpop.eup %4639  ;;  %v6193_v61 = vpop.permute.xlu0 %2227 }
 0x17f   :  { %8240 = vst [vmem:[#allocation52_spill] sm:$0xff] %v6193_v61  ;;  %2493 = vrot.lane.b32.xlu1 %v4640_v5, %s5108_s6  ;;  %v4642_v18 = vpop.eup %4641  ;;  %v6207_v5 = vadd.f32 %v6116_v41, %v5949_v51  ;;  %4649 = vtanh.f32 %v6199_v35  ;;  %v6221_v41 = vadd.f32 %v6121_v56, %v5949_v51 }
 0x181   :  { %v4294_v53 = vpop.f32.mrb[40].mxu1  ;;  %v4372_v22 = vpop.f32.mrb[40].mxu0  ;;  %4651 = vtanh.f32 %v6207_v5  ;;  %8242 = vst [vmem:[#allocation54_spill] sm:$0xff] %v6221_v41 }
 0x182   :  { %v959_v28 = vpop.f32.mrb[41].mxu1  ;;  %v6201_v31 = vadd.f32 %v4372_v22, %v4294_v53  ;;  %v1321_v16 = vpop.f32.mrb[41].mxu0  ;;  %4653 = vtanh.f32 %v6221_v41 }
 0x183   :  { %v4295_v23 = vpop.f32.mrb[42].mxu1  ;;  %v6203_v29 = vadd.f32 %v1321_v16, %v959_v28  ;;  %v4373_v14 = vpop.f32.mrb[42].mxu0  ;;  %2489 = vrot.lane.b32.xlu1 %v4642_v18, %s5108_s6 }
 0x184   :  { %v962_v24 = vpop.f32.mrb[43].mxu1  ;;  %v6209_v61 = vadd.f32 %v4373_v14, %v4295_v23  ;;  %v1324_v9 = vpop.f32.mrb[43].mxu0 }
 0x185   :  { %v6212_v36 = vadd.f32 %v1324_v9, %v962_v24  ;;  %v4644_v53 = vpop.eup %4643  ;;  %v6216_v22 = vpop.permute.xlu1 %2229  ;;  %v6227_v24 = vadd.f32 %v6128_v39, %v5949_v51 }
 0x186   :  { %2499 = vrot.lane.b32.xlu0 %v4644_v53, %s5108_s6  ;;  %8241 = vst [vmem:[#allocation53_spill] sm:$0xff] %v6216_v22  ;;  %v6223_v28 = vpop.permute.xlu0 %2231  ;;  %v4646_v9 = vpop.eup %4645 }
 0x187   :  { %8243 = vst [vmem:[#allocation55_spill] sm:$0xff] %v6223_v28  ;;  %8244 = vst [vmem:[#allocation56_spill] sm:$0xff] %v6227_v24  ;;  %v4648_v8 = vpop.eup %4647  ;;  %4655 = vtanh.f32 %v6227_v24 }
 0x188   :  { %2501 = vrot.lane.b32.xlu1 %v4648_v8, %s5108_s6 }
 0x189   :  { %v4298_v14 = vpop.f32.mrb[44].mxu1  ;;  %v4376_v16 = vpop.f32.mrb[44].mxu0 }
 0x18a   :  { %v975_v18 = vpop.f32.mrb[45].mxu1  ;;  %v6229_v23 = vadd.f32 %v4376_v16, %v4298_v14  ;;  %v1337_v53 = vpop.f32.mrb[45].mxu0  ;;  %2495 = vrot.lane.b32.xlu0 %v4646_v9, %s5108_s6  ;;  %v6243_v14 = vadd.f32 %v6131_v43, %v5949_v51  ;;  %v6249_v9 = vadd.f32 %v6146_v12, %v5949_v51 }
 0x18b   :  { %v4299_v22 = vpop.f32.mrb[46].mxu1  ;;  %v6232_v2 = vadd.f32 %v1337_v53, %v975_v18  ;;  %v4377_v56 = vpop.f32.mrb[46].mxu0 }
 0x18c   :  { %v978_v15 = vpop.f32.mrb[47].mxu1  ;;  %v6235_v28 = vadd.f32 %v4377_v56, %v4299_v22  ;;  %v1340_v0 = vpop.f32.mrb[47].mxu0  ;;  %8245 = vst [vmem:[#allocation57_spill] sm:$0xff] %v6243_v14  ;;  %8247 = vst [vmem:[#allocation59_spill] sm:$0xff] %v6249_v9  ;;  %4657 = vtanh.f32 %v6243_v14 }
 0x18d   :  { %v6238_v39 = vadd.f32 %v1340_v0, %v978_v15  ;;  %v6245_v16 = vpop.permute.xlu1 %2233  ;;  %v4650_v18 = vpop.eup %4649  ;;  %4659 = vtanh.f32 %v6249_v9 }
 0x18e   :  { %8246 = vst [vmem:[#allocation58_spill] sm:$0xff] %v6245_v16  ;;  %v6251_v53 = vpop.permute.xlu0 %2235  ;;  %2497 = vrot.lane.b32.xlu1 %v4650_v18, %s5108_s6  ;;  %v4652_v15 = vpop.eup %4651  ;;  %v6263_v18 = vadd.f32 %v6149_v45, %v5949_v51 }
 0x18f   :  { %8248 = vst [vmem:[#allocation60_spill] sm:$0xff] %v6251_v53  ;;  %2507 = vrot.lane.b32.xlu0 %v4652_v15, %s5108_s6 }
 0x190   :  { %8249 = vst [vmem:[#allocation61_spill] sm:$0xff] %v6263_v18  ;;  %4661 = vtanh.f32 %v6263_v18 }
 0x191   :  { %v4302_v22 = vpop.f32.mrb[48].mxu1  ;;  %v4380_v0 = vpop.f32.mrb[48].mxu0 }
 0x192   :  { %v991_v8 = vpop.f32.mrb[49].mxu1  ;;  %v6255_v56 = vadd.f32 %v4380_v0, %v4302_v22  ;;  %v1353_v43 = vpop.f32.mrb[49].mxu0  ;;  %v6271_v0 = vadd.f32 %v6152_v32, %v5949_v51 }
 0x193   :  { %v4303_v4 = vpop.f32.mrb[50].mxu1  ;;  %v6258_v16 = vadd.f32 %v1353_v43, %v991_v8  ;;  %v4381_v12 = vpop.f32.mrb[50].mxu0 }
 0x194   :  { %v994_v59 = vpop.f32.mrb[51].mxu1  ;;  %v6265_v53 = vadd.f32 %v4381_v12, %v4303_v4  ;;  %v1356_v62 = vpop.f32.mrb[51].mxu0  ;;  %8250 = vst [vmem:[#allocation62_spill] sm:$0xff] %v6271_v0  ;;  %4663 = vtanh.f32 %v6271_v0 }
 0x195   :  { %v6267_v57 = vadd.f32 %v1356_v62, %v994_v59  ;;  %v4654_v22 = vpop.eup %4653  ;;  %v6274_v8 = vpop.permute.xlu1 %2237  ;;  %v6283_v62 = vadd.f32 %v6155_v52, %v5949_v51 }
 0x196   :  { %2503 = vrot.lane.b32.xlu0 %v4654_v22, %s5108_s6  ;;  %8251 = vst [vmem:[#allocation63_spill] sm:$0xff] %v6274_v8  ;;  %v4656_v15 = vpop.eup %4655  ;;  %v6277_v45 = vpop.permute.xlu0 %2239 }
 0x197   :  { %8252 = vst [vmem:[#allocation64_spill] sm:$0xff] %v6277_v45  ;;  %2509 = vrot.lane.b32.xlu1 %v4656_v15, %s5108_s6  ;;  %8253 = vst [vmem:[#allocation65_spill] sm:$0xff] %v6283_v62  ;;  %v4658_v14 = vpop.eup %4657  ;;  %v6291_v15 = vadd.f32 %v6171_v7, %v5949_v51  ;;  %4665 = vtanh.f32 %v6283_v62  ;;  %v6305_v7 = vadd.f32 %v6174_v30, %v5949_v51 }
 0x199   :  { %v4306_v43 = vpop.f32.mrb[52].mxu1  ;;  %v4384_v4 = vpop.f32.mrb[52].mxu0  ;;  %8254 = vst [vmem:[#allocation66_spill] sm:$0xff] %v6291_v15  ;;  %4667 = vtanh.f32 %v6291_v15  ;;  %8256 = vst [vmem:[#allocation68_spill] sm:$0xff] %v6305_v7 }
 0x19a   :  { %v1007_v59 = vpop.f32.mrb[53].mxu1  ;;  %v6285_v32 = vadd.f32 %v4384_v4, %v4306_v43  ;;  %v1369_v12 = vpop.f32.mrb[53].mxu0  ;;  %4669 = vtanh.f32 %v6305_v7 }
 0x19b   :  { %v4307_v22 = vpop.f32.mrb[54].mxu1  ;;  %v6287_v8 = vadd.f32 %v1369_v12, %v1007_v59  ;;  %v4385_v58 = vpop.f32.mrb[54].mxu0  ;;  %2505 = vrot.lane.b32.xlu1 %v4658_v14, %s5108_s6 }
 0x19c   :  { %v1010_v18 = vpop.f32.mrb[55].mxu1  ;;  %v6293_v45 = vadd.f32 %v4385_v58, %v4307_v22  ;;  %v1372_v0 = vpop.f32.mrb[55].mxu0 }
 0x19d   :  { %v6296_v52 = vadd.f32 %v1372_v0, %v1010_v18  ;;  %v4660_v43 = vpop.eup %4659  ;;  %v6300_v4 = vpop.permute.xlu1 %2241  ;;  %v6311_v0 = vadd.f32 %v6181_v48, %v5949_v51 }
 0x19e   :  { %2515 = vrot.lane.b32.xlu0 %v4660_v43, %s5108_s6  ;;  %8255 = vst [vmem:[#allocation67_spill] sm:$0xff] %v6300_v4  ;;  %v6307_v59 = vpop.permute.xlu0 %2243  ;;  %v4662_v18 = vpop.eup %4661 }
 0x19f   :  { %8257 = vst [vmem:[#allocation69_spill] sm:$0xff] %v6307_v59  ;;  %8258 = vst [vmem:[#allocation70_spill] sm:$0xff] %v6311_v0  ;;  %v4664_v9 = vpop.eup %4663  ;;  %4671 = vtanh.f32 %v6311_v0 }
 0x1a0   :  { %2517 = vrot.lane.b32.xlu1 %v4664_v9, %s5108_s6 }
 0x1a1   :  { %v4310_v58 = vpop.f32.mrb[56].mxu1  ;;  %v4388_v12 = vpop.f32.mrb[56].mxu0 }
 0x1a2   :  { %v1023_v14 = vpop.f32.mrb[57].mxu1  ;;  %v6313_v22 = vadd.f32 %v4388_v12, %v4310_v58  ;;  %v1385_v43 = vpop.f32.mrb[57].mxu0  ;;  %2511 = vrot.lane.b32.xlu0 %v4662_v18, %s5108_s6  ;;  %v6327_v58 = vadd.f32 %v6183_v20, %v5949_v51 }
 0x1a3   :  { %v4311_v4 = vpop.f32.mrb[58].mxu1  ;;  %v6316_v62 = vadd.f32 %v1385_v43, %v1023_v14  ;;  %v4389_v30 = vpop.f32.mrb[58].mxu0 }
 0x1a4   :  { %v1026_v15 = vpop.f32.mrb[59].mxu1  ;;  %v6319_v59 = vadd.f32 %v4389_v30, %v4311_v4  ;;  %v1388_v24 = vpop.f32.mrb[59].mxu0  ;;  %8259 = vst [vmem:[#allocation71_spill] sm:$0xff] %v6327_v58  ;;  %v6335_v4 = vadd.f32 %v6201_v31, %v5949_v51  ;;  %4673 = vtanh.f32 %v6327_v58  ;;  %v6347_v31 = vadd.f32 %v6203_v29, %v5949_v51 }
 0x1a5   :  { %v6322_v48 = vadd.f32 %v1388_v24, %v1026_v15  ;;  %v6329_v12 = vpop.permute.xlu1 %2245  ;;  %v6331_v14 = vpop.permute.xlu0 %2247  ;;  %v6367_v29 = vadd.f32 %v6212_v36, %v5949_v51  ;;  %v6385_v36 = vadd.f32 %v6232_v2, %v5949_v51  ;;  %v6401_v2 = vadd.f32 %v6238_v39, %v5949_v51 }
 0x1a6   :  { %8260 = vst [vmem:[#allocation72_spill] sm:$0xff] %v6329_v12  ;;  %8261 = vst [vmem:[#allocation73_spill] sm:$0xff] %v6331_v14  ;;  %v4666_v18 = vpop.eup %4665  ;;  %4675 = vtanh.f32 %v6335_v4  ;;  %v6417_v39 = vadd.f32 %v6258_v16, %v5949_v51  ;;  %v6433_v16 = vadd.f32 %v6267_v57, %v5949_v51 }
 0x1a7   :  { %2513 = vrot.lane.b32.xlu1 %v4666_v18, %s5108_s6  ;;  %v4668_v15 = vpop.eup %4667  ;;  %4677 = vtanh.f32 %v6347_v31  ;;  %8265 = vst [vmem:[#allocation77_spill] sm:$0xff] %v6385_v36  ;;  %8267 = vst [vmem:[#allocation79_spill] sm:$0xff] %v6401_v2 }
 0x1a8   :  { %2523 = vrot.lane.b32.xlu0 %v4668_v15, %s5108_s6  ;;  %v4670_v15 = vpop.eup %4669  ;;  %8269 = vst [vmem:[#allocation81_spill] sm:$0xff] %v6417_v39  ;;  %8271 = vst [vmem:[#allocation83_spill] sm:$0xff] %v6433_v16 }
 0x1a9   :  { %v4314_v43 = vpop.f32.mrb[60].mxu1  ;;  %v4392_v24 = vpop.f32.mrb[60].mxu0 }
 0x1aa   :  { %v1039_v9 = vpop.f32.mrb[61].mxu1  ;;  %v6339_v30 = vadd.f32 %v4392_v24, %v4314_v43  ;;  %v1401_v20 = vpop.f32.mrb[61].mxu0 }
 0x1ab   :  { %v4315_v0 = vpop.f32.mrb[62].mxu1  ;;  %v6342_v14 = vadd.f32 %v1401_v20, %v1039_v9  ;;  %v4393_v12 = vpop.f32.mrb[62].mxu0  ;;  %v6359_v9 = vadd.f32 %v6209_v61, %v5949_v51  ;;  %v6375_v61 = vadd.f32 %v6229_v23, %v5949_v51  ;;  %v6391_v23 = vadd.f32 %v6235_v28, %v5949_v51 }
 0x1ac   :  { %v1042_v7 = vpop.f32.mrb[63].mxu1  ;;  %v6349_v18 = vadd.f32 %v4393_v12, %v4315_v0  ;;  %v1404_v41 = vpop.f32.mrb[63].mxu0  ;;  %2519 = vrot.lane.b32.xlu0 %v4670_v15, %s5108_s6  ;;  %v6407_v28 = vadd.f32 %v6255_v56, %v5949_v51  ;;  %v6423_v56 = vadd.f32 %v6265_v53, %v5949_v51  ;;  %v3981_v53 = vmul.f32 -1.442695, %v5954_v42 }
 0x1ad   :  { %v6351_v58 = vpop.permute.xlu1 %2249  ;;  %v6353_v43 = vadd.f32 %v1404_v41, %v1042_v7  ;;  %v6355_v24 = vpop.permute.xlu0 %2251  ;;  %4679 = vtanh.f32 %v6359_v9  ;;  %8266 = vst [vmem:[#allocation78_spill] sm:$0xff] %v6391_v23  ;;  %v6451_v42 = vadd.f32 %v6287_v8, %v5949_v51 }
 0x1ae   :  { %8262 = vst [vmem:[#allocation74_spill] sm:$0xff] %v6351_v58  ;;  %8263 = vst [vmem:[#allocation75_spill] sm:$0xff] %v6355_v24  ;;  %v4672_v20 = vpop.eup %4671  ;;  %4681 = vtanh.f32 %v6367_v29 }
 0x1af   :  { %2525 = vrot.lane.b32.xlu1 %v4672_v20, %s5108_s6  ;;  %v4674_v0 = vpop.eup %4673  ;;  %4683 = vtanh.f32 %v6375_v61  ;;  %8268 = vst [vmem:[#allocation80_spill] sm:$0xff] %v6407_v28  ;;  %8270 = vst [vmem:[#allocation82_spill] sm:$0xff] %v6423_v56 }
 0x1b0   :  { %v4676_v12 = vpop.eup %4675  ;;  %4685 = vtanh.f32 %v6385_v36 }
 0x1b1   :  { %v6369_v41 = vpop.permute.xlu1 %2253  ;;  %2531 = vrot.lane.b32.xlu0 %v4676_v12, %s5108_s6  ;;  %v4678_v58 = vpop.eup %4677  ;;  %4687 = vtanh.f32 %v6391_v23 }
 0x1b2   :  { %8264 = vst [vmem:[#allocation76_spill] sm:$0xff] %v6369_v41  ;;  %4689 = vtanh.f32 %v6401_v2 }
 0x1b3   :  { %v6371_v7 = vpop.permute.xlu0 %2451  ;;  %2521 = vrot.lane.b32.xlu1 %v4674_v0, %s5108_s6  ;;  %4691 = vtanh.f32 %v6407_v28 }
 0x1b4   :  { %4693 = vtanh.f32 %v6417_v39 }
 0x1b5   :  { %v6387_v20 = vpop.permute.xlu1 %2453  ;;  %2527 = vrot.lane.b32.xlu0 %v4678_v58, %s5108_s6  ;;  %4695 = vtanh.f32 %v6423_v56  ;;  %v3979_v56 = vmul.f32 -1.442695, %v5960_v44  ;;  %v3982_v44 = vmul.f32 -1.442695, %v5963_v60 }
 0x1b6   :  { %4697 = vtanh.f32 %v6433_v16 }
 0x1b7   :  { %v6380_v15 = vpop.permute.xlu0 %2447  ;;  %v4680_v0 = vpop.eup %4679  ;;  %4699 = vpow2.f32 %v3981_v53 }
 0x1b8   :  { %2533 = vrot.lane.b32.xlu1 %v4680_v0, %s5108_s6  ;;  %v4682_v24 = vpop.eup %4681 }
 0x1b9   :  { %v4684_v58 = vpop.eup %4683 }
 0x1ba   :  { %2539 = vrot.lane.b32.xlu0 %v4684_v58, %s5108_s6  ;;  %v4686_v36 = vpop.eup %4685 }
 0x1bb   :  { %v6396_v12 = vpop.permute.xlu0 %2459 }
 0x1bc   :  { %v6403_v41 = vpop.permute.xlu1 %2449  ;;  %2529 = vrot.lane.b32.xlu1 %v4682_v24, %s5108_s6  ;;  %v4688_v24 = vpop.eup %4687 }
 0x1bd   :  { %v4690_v28 = vpop.eup %4689 }
 0x1be   :  { %2535 = vrot.lane.b32.xlu0 %v4686_v36, %s5108_s6  ;;  %v6440_v36 = vadd.f32 %v6285_v32, %v5949_v51 }
 0x1bf   :  { %v6412_v0 = vpop.permute.xlu0 %2455 }
 0x1c0   :  { %v6419_v23 = vpop.permute.xlu1 %2461  ;;  %2541 = vrot.lane.b32.xlu1 %v4688_v24, %s5108_s6  ;;  %v4692_v24 = vpop.eup %4691  ;;  %4701 = vtanh.f32 %v6440_v36 }
 0x1c1   :  { %v4694_v39 = vpop.eup %4693  ;;  %4703 = vpow2.f32 %v3979_v56 }
 0x1c2   :  { %2547 = vrot.lane.b32.xlu0 %v4692_v24, %s5108_s6  ;;  %v4696_v53 = vpop.eup %4695  ;;  %4705 = vtanh.f32 %v6451_v42  ;;  %v3980_v24 = vmul.f32 -1.442695, %v5973_v1  ;;  %v3985_v1 = vmul.f32 -1.442695, %v5977_v40 }
 0x1c3   :  { %v4698_v60 = vpop.eup %4697 }
 0x1c4   :  { %v6435_v2 = vpop.permute.xlu1 %2457  ;;  %2537 = vrot.lane.b32.xlu1 %v4690_v28, %s5108_s6  ;;  %v6457_v28 = vadd.f32 %v6293_v45, %v5949_v51  ;;  %v6471_v45 = vadd.f32 %v6296_v52, %v5949_v51  ;;  %v4700_v56 = vpop.eup %4699 }
 0x1c5   :  { %v6428_v58 = vpop.permute.xlu0 %2467 }
 0x1c6   :  { %8272 = vst [vmem:[#allocation84_spill] sm:$0xff] %v6457_v28  ;;  %2543 = vrot.lane.b32.xlu0 %v4694_v39, %s5108_s6  ;;  %4707 = vtanh.f32 %v6457_v28  ;;  %8273 = vst [vmem:[#allocation85_spill] sm:$0xff] %v6471_v45  ;;  %v6475_v39 = vadd.f32 %v6313_v22, %v5949_v51  ;;  %v3983_v28 = vmul.f32 -1.442695, %v5983_v3  ;;  %v6489_v22 = vadd.f32 %v6316_v62, %v5949_v51 }
 0x1c7   :  { %4709 = vpow2.f32 %v3982_v44  ;;  %v3986_v3 = vmul.f32 -1.442695, %v5987_v49 }
 0x1c8   :  { %2549 = vrot.lane.b32.xlu1 %v4696_v53, %s5108_s6  ;;  %8274 = vst [vmem:[#allocation86_spill] sm:$0xff] %v6475_v39  ;;  %4711 = vpow2.f32 %v3980_v24  ;;  %8275 = vst [vmem:[#allocation87_spill] sm:$0xff] %v6489_v22  ;;  %v1745_v24 = vadd.f32 1.0, %v4700_v56 }
 0x1c9   :  { %v6446_v57 = vpop.permute.xlu0 %2463  ;;  %4713 = vtanh.f32 %v6471_v45  ;;  %v6493_v45 = vadd.f32 %v6319_v59, %v5949_v51  ;;  %v6506_v59 = vadd.f32 %v6322_v48, %v5949_v51  ;;  %v3987_v48 = vmul.f32 -1.442695, %v6021_v54 }
 0x1ca   :  { %v6453_v32 = vpop.permute.xlu1 %2469  ;;  %v4702_v53 = vpop.eup %4701  ;;  %4715 = vtanh.f32 %v6475_v39  ;;  %v3988_v54 = vmul.f32 -1.442695, %v6040_v21 }
 0x1cb   :  { %2555 = vrot.lane.b32.xlu0 %v4702_v53, %s5108_s6  ;;  %v4704_v40 = vpop.eup %4703  ;;  %4717 = vpow2.f32 %v3985_v1  ;;  %8276 = vst [vmem:[#allocation88_spill] sm:$0xff] %v6493_v45 }
 0x1cc   :  { %2545 = vrot.lane.b32.xlu1 %v4698_v60, %s5108_s6  ;;  %v4706_v60 = vpop.eup %4705  ;;  %4719 = vpow2.f32 %v3983_v28  ;;  %v1743_v62 = vadd.f32 1.0, %v4704_v40  ;;  %v3984_v28 = vmul.f32 -1.442695, %v5999_v55  ;;  %v3989_v40 = vmul.f32 -1.442695, %v6010_v11 }
 0x1cd   :  { %4721 = vtanh.f32 %v6489_v22  ;;  %v6520_v11 = vadd.f32 %v6339_v30, %v5949_v51  ;;  %v6530_v30 = vadd.f32 %v6342_v14, %v5949_v51 }
 0x1ce   :  { %4723 = vrcp.f32 %v1745_v24 }
 0x1cf   :  { %v6464_v8 = vpop.permute.xlu1 %2465  ;;  %2551 = vrot.lane.b32.xlu0 %v4706_v60, %s5108_s6  ;;  %4725 = vtanh.f32 %v6493_v45 }
 0x1d0   :  { %v6466_v16 = vpop.permute.xlu0 %2475  ;;  %v4708_v53 = vpop.eup %4707  ;;  %4727 = vpow2.f32 %v3986_v3 }
 0x1d1   :  { %v4710_v39 = vpop.eup %4709  ;;  %2557 = vrot.lane.b32.xlu1 %v4708_v53, %s5108_s6  ;;  %4729 = vrcp.f32 %v1743_v62  ;;  %v3990_v62 = vmul.f32 -1.442695, %v6030_v17  ;;  %v3993_v17 = vmul.f32 -1.442695, %v6045_v6 }
 0x1d2   :  { %v4712_v49 = vpop.eup %4711  ;;  %v1746_v22 = vadd.f32 1.0, %v4710_v39  ;;  %4731 = vtanh.f32 %v6506_v59 }
 0x1d3   :  { %v4714_v60 = vpop.eup %4713  ;;  %v1744_v53 = vadd.f32 1.0, %v4712_v49  ;;  %4733 = vpow2.f32 %v3984_v28 }
 0x1d4   :  { %v4716_v24 = vpop.eup %4715  ;;  %4735 = vrcp.f32 %v1746_v22 }
 0x1d5   :  { %v6484_v44 = vpop.permute.xlu0 %2471  ;;  %2553 = vrot.lane.b32.xlu1 %v4714_v60, %s5108_s6  ;;  %v4718_v45 = vpop.eup %4717  ;;  %2563 = vrot.lane.b32.xlu0 %v4716_v24, %s5108_s6  ;;  %4737 = vpow2.f32 %v3989_v40 }
 0x1d6   :  { %v6482_v52 = vpop.permute.xlu1 %2477  ;;  %v4720_v39 = vpop.eup %4719  ;;  %4739 = vrcp.f32 %v1744_v53  ;;  %v1749_v28 = vadd.f32 1.0, %v4718_v45  ;;  %v6542_v53 = vadd.f32 %v6349_v18, %v5949_v51  ;;  %v5107_v18 = vld [vmem:[%s8066_s2] ss:$0 sm:$0xff]  ;;  %s5109_s2 = smov 64  }
 0x1d7   :  { %v4722_v49 = vpop.eup %4721  ;;  %4741 = vpow2.f32 %v3987_v48  ;;  %v1747_v48 = vadd.f32 1.0, %v4720_v39  ;;  %v6559_v39 = vadd.f32 %v5107_v18, %v6353_v43  ;;  %v3997_v43 = vmul.f32 -1.442695, %v6080_v26 }
 0x1d8   :  { %v6523_v60 = vpop.eup %4723  ;;  %4743 = vtanh.f32 %v6520_v11 }
 0x1d9   :  { %2559 = vrot.lane.b32.xlu0 %v4722_v49, %s5108_s6  ;;  %v4726_v24 = vpop.eup %4725  ;;  %4745 = vpow2.f32 %v3990_v62  ;;  %v2641_v45 = vmul.f32 %v6523_v60, %v6371_v7  ;;  %v3991_v49 = vmul.f32 -1.442695, %v6055_v25  ;;  %v3994_v25 = vmul.f32 -1.442695, %v6060_v13 }
 0x1da   :  { %v6499_v56 = vpop.permute.xlu1 %2473  ;;  %v4728_v22 = vpop.eup %4727  ;;  %2565 = vrot.lane.b32.xlu1 %v4726_v24, %s5108_s6  ;;  %4747 = vrcp.f32 %v1749_v28 }
 0x1db   :  { %v6544_v14 = vpop.eup %4729  ;;  %4749 = vpow2.f32 %v3988_v54  ;;  %v1750_v62 = vadd.f32 1.0, %v4728_v22 }
 0x1dc   :  { %8277 = vst [vmem:[#allocation89_spill] sm:$0xff] %v6544_v14  ;;  %v4732_v6 = vpop.eup %4731  ;;  %4751 = vtanh.f32 %v6530_v30  ;;  %v2639_v28 = vmul.f32 %v6544_v14, %v6380_v15 }
 0x1dd   :  { %v6501_v1 = vpop.permute.xlu0 %2483  ;;  %2771 = vrot.lane.b32.xlu0 %v2641_v45, %s5108_s6  ;;  %v4734_v7 = vpop.eup %4733  ;;  %4753 = vpow2.f32 %v3993_v17 }
 0x1de   :  { %2561 = vrot.lane.b32.xlu1 %v4732_v6, %s5108_s6  ;;  %v6552_v51 = vpop.eup %4735  ;;  %4755 = vtanh.f32 %v6542_v53  ;;  %v1748_v45 = vadd.f32 1.0, %v4734_v7 }
 0x1df   :  { %v4738_v54 = vpop.eup %4737  ;;  %4757 = vrcp.f32 %v1747_v48  ;;  %v2642_v15 = vmul.f32 %v6552_v51, %v6387_v20 }
 0x1e0   :  { %v6569_v17 = vpop.eup %4739  ;;  %4759 = vrcp.f32 %v1750_v62  ;;  %v1753_v48 = vadd.f32 1.0, %v4738_v54 }
 0x1e1   :  { %v6516_v55 = vpop.permute.xlu0 %2479  ;;  %2767 = vrot.lane.b32.xlu0 %v2639_v28, %s5108_s6  ;;  %v4742_v6 = vpop.eup %4741  ;;  %4761 = vpow2.f32 %v3991_v49  ;;  %v3992_v28 = vmul.f32 -1.442695, %v6069_v10  ;;  %v2640_v18 = vmul.f32 %v6569_v17, %v6403_v41  ;;  %v3995_v49 = vmul.f32 -1.442695, %v6093_v19 }
 0x1e2   :  { %v6514_v3 = vpop.permute.xlu1 %2485  ;;  %2773 = vrot.lane.b32.xlu1 %v2642_v15, %s5108_s6  ;;  %v4744_v13 = vpop.eup %4743  ;;  %4763 = vtanh.f32 %v6559_v39  ;;  %v1751_v7 = vadd.f32 1.0, %v4742_v6  ;;  %v4001_v19 = vmul.f32 -1.442695, %v6124_v63 }
 0x1e3   :  { %v4746_v20 = vpop.eup %4745  ;;  %4765 = vpow2.f32 %v3994_v25 }
 0x1e4   :  { %v6578_v62 = vpop.eup %4747  ;;  %4767 = vrcp.f32 %v1748_v45  ;;  %v1754_v15 = vadd.f32 1.0, %v4746_v20 }
 0x1e5   :  { %2571 = vrot.lane.b32.xlu0 %v4744_v13, %s5108_s6  ;;  %v4750_v26 = vpop.eup %4749  ;;  %4769 = vpow2.f32 %v3997_v43  ;;  %v3998_v13 = vmul.f32 -1.442695, %v6104_v37 }
 0x1e6   :  { %v6536_v40 = vpop.permute.xlu1 %2481  ;;  %2769 = vrot.lane.b32.xlu1 %v2640_v18, %s5108_s6  ;;  %v4752_v10 = vpop.eup %4751  ;;  %4771 = vrcp.f32 %v1753_v48  ;;  %v1752_v6 = vadd.f32 1.0, %v4750_v26  ;;  %v2645_v18 = vmul.f32 %v6578_v62, %v6396_v12  ;;  %v3999_v12 = vmul.f32 -1.442695, %v6139_v27 }
 0x1e7   :  { %v4754_v41 = vpop.eup %4753  ;;  %4773 = vpow2.f32 %v3992_v28  ;;  %v3996_v28 = vmul.f32 -1.442695, %v6113_v33 }
 0x1e8   :  { %v4756_v45 = vpop.eup %4755  ;;  %4775 = vrcp.f32 %v1751_v7  ;;  %v1757_v20 = vadd.f32 1.0, %v4754_v41 }
 0x1e9   :  { %v6538_v21 = vpop.permute.xlu0 %2491  ;;  %2567 = vrot.lane.b32.xlu0 %v4752_v10, %s5108_s6  ;;  %v6588_v43 = vpop.eup %4757  ;;  %4777 = vpow2.f32 %v3995_v49  ;;  %v4002_v10 = vmul.f32 -1.442695, %v6144_v47 }
 0x1ea   :  { %2573 = vrot.lane.b32.xlu1 %v4756_v45, %s5108_s6  ;;  %v6594_v48 = vpop.eup %4759  ;;  %4779 = vrcp.f32 %v1754_v15  ;;  %v2643_v15 = vmul.f32 %v6588_v43, %v6412_v0  ;;  %v4000_v45 = vmul.f32 -1.442695, %v6160_v50 }
 0x1eb   :  { %8278 = vst [vmem:[#allocation90_spill] sm:$0xff] %v6594_v48  ;;  %v4762_v37 = vpop.eup %4761  ;;  %4781 = vpow2.f32 %v3998_v13  ;;  %v2646_v27 = vmul.f32 %v6594_v48, %v6419_v23 }
 0x1ec   :  { %v4764_v63 = vpop.eup %4763  ;;  %4783 = vrcp.f32 %v1752_v6  ;;  %v1755_v41 = vadd.f32 1.0, %v4762_v37 }
 0x1ed   :  { %2779 = vrot.lane.b32.xlu0 %v2645_v18, %s5108_s6  ;;  %v4766_v49 = vpop.eup %4765  ;;  %4785 = vpow2.f32 %v4001_v19  ;;  %v4005_v19 = vmul.f32 -1.442695, %v6165_v46 }
 0x1ee   :  { %2569 = vrot.lane.b32.xlu1 %v4764_v63, %s5108_s6  ;;  %v6607_v33 = vpop.eup %4767  ;;  %4787 = vrcp.f32 %v1757_v20  ;;  %v1758_v47 = vadd.f32 1.0, %v4766_v49  ;;  %v4003_v63 = vmul.f32 -1.442695, %v6179_v34 }
 0x1ef   :  { %v4770_v13 = vpop.eup %4769  ;;  %4789 = vpow2.f32 %v3996_v28  ;;  %v2644_v46 = vmul.f32 %v6607_v33, %v6435_v2 }
 0x1f0   :  { %v6567_v22 = vpop.permute.xlu0 %2487  ;;  %v6613_v6 = vpop.eup %4771  ;;  %4791 = vpow2.f32 %v3999_v12  ;;  %v1761_v37 = vadd.f32 1.0, %v4770_v13  ;;  %v4004_v13 = vmul.f32 -1.442695, %v6199_v35 }
 0x1f1   :  { %v6565_v24 = vpop.permute.xlu1 %2493  ;;  %2775 = vrot.lane.b32.xlu0 %v2643_v15, %s5108_s6  ;;  %v4774_v0 = vpop.eup %4773  ;;  %4793 = vpow2.f32 %v4002_v10  ;;  %v2649_v18 = vmul.f32 %v6613_v6, %v6428_v58  ;;  %v4006_v10 = vmul.f32 -1.442695, %v6187_v38 }
 0x1f2   :  { %2781 = vrot.lane.b32.xlu1 %v2646_v27, %s5108_s6  ;;  %v6623_v23 = vpop.eup %4775  ;;  %4795 = vrcp.f32 %v1755_v41  ;;  %v1756_v12 = vadd.f32 1.0, %v4774_v0 }
 0x1f3   :  { %v4778_v28 = vpop.eup %4777  ;;  %4797 = vpow2.f32 %v4000_v45  ;;  %v2647_v15 = vmul.f32 %v6623_v23, %v6446_v57 }
 0x1f4   :  { %v6629_v58 = vpop.eup %4779  ;;  %4799 = vrcp.f32 %v1758_v47  ;;  %v1759_v34 = vadd.f32 1.0, %v4778_v28  ;;  %v8279_v28 = vld [vmem:[#allocation54_spill] sm:$0xff] }
 0x1f5   :  { %v6582_v54 = vpop.permute.xlu1 %2489  ;;  %2787 = vrot.lane.b32.xlu0 %v2649_v18, %s5108_s6  ;;  %v4782_v49 = vpop.eup %4781  ;;  %4801 = vpow2.f32 %v4005_v19  ;;  %v2650_v45 = vmul.f32 %v6629_v58, %v6453_v32  ;;  %v4009_v19 = vmul.f32 -1.442695, %v6207_v5 }
 0x1f6   :  { %2777 = vrot.lane.b32.xlu1 %v2644_v46, %s5108_s6  ;;  %v6635_v41 = vpop.eup %4783  ;;  %4803 = vrcp.f32 %v1761_v37  ;;  %v1762_v47 = vadd.f32 1.0, %v4782_v49 }
 0x1f7   :  { %v4786_v2 = vpop.eup %4785  ;;  %4805 = vpow2.f32 %v4003_v63  ;;  %v4007_v63 = vmul.f32 -1.442695, %v8279_v28  ;;  %v2648_v46 = vmul.f32 %v6635_v41, %v6464_v8 }
 0x1f8   :  { %v6584_v25 = vpop.permute.xlu0 %2499  ;;  %v6645_v57 = vpop.eup %4787  ;;  %4807 = vrcp.f32 %v1756_v12  ;;  %v1765_v18 = vadd.f32 1.0, %v4786_v2 }
 0x1f9   :  { %2783 = vrot.lane.b32.xlu0 %v2647_v15, %s5108_s6  ;;  %v4790_v0 = vpop.eup %4789  ;;  %4809 = vpow2.f32 %v4006_v10  ;;  %v2653_v35 = vmul.f32 %v6645_v57, %v6466_v16 }
 0x1fa   :  { %v6598_v7 = vpop.permute.xlu1 %2501  ;;  %2789 = vrot.lane.b32.xlu1 %v2650_v45, %s5108_s6  ;;  %v4792_v32 = vpop.eup %4791  ;;  %4811 = vrcp.f32 %v1759_v34  ;;  %v1760_v5 = vadd.f32 1.0, %v4790_v0  ;;  %v8280_v45 = vld [vmem:[#allocation56_spill] sm:$0xff] }
 0x1fb   :  { %v4794_v37 = vpop.eup %4793  ;;  %4813 = vpow2.f32 %v4004_v13  ;;  %v1763_v16 = vadd.f32 1.0, %v4792_v32  ;;  %v8281_v32 = vld [vmem:[#allocation59_spill] sm:$0xff] }
 0x1fc   :  { %v6600_v26 = vpop.permute.xlu0 %2495  ;;  %v6655_v12 = vpop.eup %4795  ;;  %4815 = vrcp.f32 %v1762_v47  ;;  %v1766_v8 = vadd.f32 1.0, %v4794_v37  ;;  %v4010_v47 = vmul.f32 -1.442695, %v8280_v45  ;;  %v4013_v28 = vmul.f32 -1.442695, %v8281_v32 }
 0x1fd   :  { %2795 = vrot.lane.b32.xlu0 %v2653_v35, %s5108_s6  ;;  %v4798_v49 = vpop.eup %4797  ;;  %4817 = vpow2.f32 %v4009_v19  ;;  %v2651_v10 = vmul.f32 %v6655_v12, %v6484_v44 }
 0x1fe   :  { %2785 = vrot.lane.b32.xlu1 %v2648_v46, %s5108_s6  ;;  %v6664_v2 = vpop.eup %4799  ;;  %4819 = vrcp.f32 %v1765_v18  ;;  %v1764_v19 = vadd.f32 1.0, %v4798_v49  ;;  %v8283_v46 = vld [vmem:[#allocation57_spill] sm:$0xff] }
 0x1ff   :  { %v4802_v13 = vpop.eup %4801  ;;  %4821 = vpow2.f32 %v4007_v63  ;;  %v2654_v0 = vmul.f32 %v6664_v2, %v6482_v52 }
 0x200   :  { %v6619_v20 = vpop.permute.xlu1 %2497  ;;  %v6670_v44 = vpop.eup %4803  ;;  %4823 = vrcp.f32 %v1760_v5  ;;  %v1769_v63 = vadd.f32 1.0, %v4802_v13 }
 0x201   :  { %v6621_v50 = vpop.permute.xlu0 %2507  ;;  %2791 = vrot.lane.b32.xlu0 %v2651_v10, %s5108_s6  ;;  %v4806_v35 = vpop.eup %4805  ;;  %4825 = vrcp.f32 %v1763_v16  ;;  %v2657_v18 = vmul.f32 %v6670_v44, %v6501_v1  ;;  %v4008_v10 = vmul.f32 -1.442695, %v8283_v46  ;;  %v8287_v46 = vld [vmem:[#allocation62_spill] sm:$0xff] }
 0x202   :  { %2797 = vrot.lane.b32.xlu1 %v2654_v0, %s5108_s6  ;;  %v6676_v37 = vpop.eup %4807  ;;  %4827 = vrcp.f32 %v1766_v8  ;;  %v1767_v45 = vadd.f32 1.0, %v4806_v35  ;;  %v8285_v8 = vld [vmem:[#allocation61_spill] sm:$0xff] }
 0x203   :  { %8282 = vst [vmem:[#allocation54_spill] sm:$0xff] %v6676_v37  ;;  %v4810_v52 = vpop.eup %4809  ;;  %4829 = vpow2.f32 %v4010_v47  ;;  %v2652_v5 = vmul.f32 %v6676_v37, %v6499_v56  ;;  %v4011_v13 = vmul.f32 -1.442695, %v8285_v8  ;;  %v4014_v37 = vmul.f32 -1.442695, %v8287_v46 }
 0x204   :  { %v6686_v1 = vpop.eup %4811  ;;  %4831 = vrcp.f32 %v1764_v19  ;;  %v1770_v32 = vadd.f32 1.0, %v4810_v52 }
 0x205   :  { %2803 = vrot.lane.b32.xlu0 %v2657_v18, %s5108_s6  ;;  %8284 = vst [vmem:[#allocation56_spill] sm:$0xff] %v6686_v1  ;;  %v4814_v0 = vpop.eup %4813  ;;  %4833 = vpow2.f32 %v4013_v28  ;;  %v2655_v47 = vmul.f32 %v6686_v1, %v6516_v55 }
 0x206   :  { %2793 = vrot.lane.b32.xlu1 %v2652_v5, %s5108_s6  ;;  %v6692_v56 = vpop.eup %4815  ;;  %4835 = vrcp.f32 %v1769_v63  ;;  %v1768_v28 = vadd.f32 1.0, %v4814_v0  ;;  %v8289_v5 = vld [vmem:[#allocation66_spill] sm:$0xff] }
 0x207   :  { %8286 = vst [vmem:[#allocation59_spill] sm:$0xff] %v6692_v56  ;;  %v4818_v18 = vpop.eup %4817  ;;  %4837 = vpow2.f32 %v4008_v10  ;;  %v2658_v19 = vmul.f32 %v6692_v56, %v6514_v3  ;;  %v4017_v8 = vmul.f32 -1.442695, %v8289_v5 }
 0x208   :  { %v6643_v38 = vpop.permute.xlu0 %2503  ;;  %v6698_v35 = vpop.eup %4819  ;;  %4839 = vrcp.f32 %v1767_v45  ;;  %v8291_v45 = vld [vmem:[#allocation65_spill] sm:$0xff] }
 0x209   :  { %v6641_v27 = vpop.permute.xlu1 %2509  ;;  %2799 = vrot.lane.b32.xlu0 %v2655_v47, %s5108_s6  ;;  %8288 = vst [vmem:[#allocation57_spill] sm:$0xff] %v6698_v35  ;;  %v4822_v55 = vpop.eup %4821  ;;  %4841 = vpow2.f32 %v4011_v13  ;;  %v2661_v63 = vmul.f32 %v6698_v35, %v6538_v21  ;;  %v1773_v47 = vadd.f32 1.0, %v4818_v18  ;;  %v4012_v0 = vmul.f32 -1.442695, %v8291_v45  ;;  %v8292_v35 = vld [vmem:[#allocation68_spill] sm:$0xff]  ;;  %v8293_v18 = vld [vmem:[#allocation70_spill] sm:$0xff] }
 0x20a   :  { %2805 = vrot.lane.b32.xlu1 %v2658_v19, %s5108_s6  ;;  %v6708_v3 = vpop.eup %4823  ;;  %4843 = vrcp.f32 %v1770_v32  ;;  %v1771_v19 = vadd.f32 1.0, %v4822_v55  ;;  %v4015_v56 = vmul.f32 -1.442695, %v8292_v35 }
 0x20b   :  { %8290 = vst [vmem:[#allocation61_spill] sm:$0xff] %v6708_v3  ;;  %v6710_v46 = vpop.eup %4825  ;;  %4845 = vpow2.f32 %v4014_v37  ;;  %v2656_v13 = vmul.f32 %v6708_v3, %v6536_v40  ;;  %v4018_v40 = vmul.f32 -1.442695, %v8293_v18 }
 0x20c   :  { %v6716_v21 = vpop.eup %4827  ;;  %4847 = vrcp.f32 %v1768_v28  ;;  %v2659_v32 = vmul.f32 %v6710_v46, %v6567_v22 }
 0x20d   :  { %v6660_v15 = vpop.permute.xlu1 %2505  ;;  %2811 = vrot.lane.b32.xlu0 %v2661_v63, %s5108_s6  ;;  %v4830_v5 = vpop.eup %4829  ;;  %4849 = vpow2.f32 %v4017_v8  ;;  %v8294_v63 = vld [vmem:[#allocation71_spill] sm:$0xff]  ;;  %v2662_v28 = vmul.f32 %v6716_v21, %v6565_v24 }
 0x20e   :  { %2801 = vrot.lane.b32.xlu1 %v2656_v13, %s5108_s6  ;;  %v6722_v37 = vpop.eup %4831  ;;  %4851 = vrcp.f32 %v1773_v47  ;;  %v4016_v3 = vmul.f32 -1.442695, %v8294_v63  ;;  %v1774_v8 = vadd.f32 1.0, %v4830_v5  ;;  %v4021_v13 = vmul.f32 -1.442695, %v6335_v4 }
 0x20f   :  { %v4834_v45 = vpop.eup %4833  ;;  %4853 = vpow2.f32 %v4012_v0  ;;  %v4019_v63 = vmul.f32 -1.442695, %v6347_v31  ;;  %v4022_v5 = vmul.f32 -1.442695, %v6359_v9 }
 0x210   :  { %v6662_v34 = vpop.permute.xlu0 %2515  ;;  %v6733_v22 = vpop.eup %4835  ;;  %4855 = vrcp.f32 %v1771_v19  ;;  %v2660_v19 = vmul.f32 %v6722_v37, %v6582_v54 }
 0x211   :  { %2807 = vrot.lane.b32.xlu0 %v2659_v32, %s5108_s6  ;;  %v4838_v47 = vpop.eup %4837  ;;  %4857 = vpow2.f32 %v4015_v56  ;;  %v2665_v0 = vmul.f32 %v6733_v22, %v6584_v25  ;;  %v1777_v32 = vadd.f32 1.0, %v4834_v45 }
 0x212   :  { %v6682_v49 = vpop.permute.xlu1 %2517  ;;  %2813 = vrot.lane.b32.xlu1 %v2662_v28, %s5108_s6  ;;  %v6739_v24 = vpop.eup %4839  ;;  %4859 = vpow2.f32 %v4018_v40  ;;  %v1772_v4 = vadd.f32 1.0, %v4838_v47 }
 0x213   :  { %v4842_v18 = vpop.eup %4841  ;;  %4861 = vpow2.f32 %v4016_v3  ;;  %v2663_v40 = vmul.f32 %v6739_v24, %v6600_v26 }
 0x214   :  { %v6684_v16 = vpop.permute.xlu0 %2511  ;;  %v6745_v56 = vpop.eup %4843  ;;  %4863 = vrcp.f32 %v1774_v8  ;;  %v1775_v45 = vadd.f32 1.0, %v4842_v18  ;;  %v4020_v8 = vmul.f32 -1.442695, %v6367_v29 }
 0x215   :  { %2819 = vrot.lane.b32.xlu0 %v2665_v0, %s5108_s6  ;;  %v4846_v25 = vpop.eup %4845  ;;  %4865 = vpow2.f32 %v4021_v13  ;;  %v2666_v9 = vmul.f32 %v6745_v56, %v6598_v7  ;;  %v4025_v0 = vmul.f32 -1.442695, %v6375_v61 }
 0x216   :  { %2809 = vrot.lane.b32.xlu1 %v2660_v19, %s5108_s6  ;;  %v6755_v54 = vpop.eup %4847  ;;  %4867 = vrcp.f32 %v1777_v32  ;;  %v1778_v47 = vadd.f32 1.0, %v4846_v25 }
 0x217   :  { %8295 = vst [vmem:[#allocation62_spill] sm:$0xff] %v6755_v54  ;;  %v4850_v28 = vpop.eup %4849  ;;  %4869 = vpow2.f32 %v4019_v63  ;;  %v8297_v63 = vld [vmem:[#allocation77_spill] sm:$0xff] }
 0x218   :  { %v6761_v26 = vpop.eup %4851  ;;  %4871 = vrcp.f32 %v1772_v4  ;;  %v1781_v29 = vadd.f32 1.0, %v4850_v28  ;;  %v4023_v19 = vmul.f32 -1.442695, %v8297_v63  ;;  %v2664_v4 = vmul.f32 %v6755_v54, %v6619_v20 }
 0x219   :  { %v6704_v52 = vpop.permute.xlu1 %2513  ;;  %2815 = vrot.lane.b32.xlu0 %v2663_v40, %s5108_s6  ;;  %v4854_v13 = vpop.eup %4853  ;;  %4873 = vpow2.f32 %v4022_v5  ;;  %v2669_v32 = vmul.f32 %v6761_v26, %v6621_v50 }
 0x21a   :  { %v6706_v10 = vpop.permute.xlu0 %2523  ;;  %2821 = vrot.lane.b32.xlu1 %v2666_v9, %s5108_s6  ;;  %v6767_v18 = vpop.eup %4855  ;;  %4875 = vrcp.f32 %v1775_v45  ;;  %v1776_v5 = vadd.f32 1.0, %v4854_v13  ;;  %v8298_v45 = vld [vmem:[#allocation78_spill] sm:$0xff] }
 0x21b   :  { %8296 = vst [vmem:[#allocation66_spill] sm:$0xff] %v6767_v18  ;;  %v4858_v7 = vpop.eup %4857  ;;  %4877 = vpow2.f32 %v4020_v8  ;;  %v4026_v28 = vmul.f32 -1.442695, %v8298_v45  ;;  %v2667_v8 = vmul.f32 %v6767_v18, %v6643_v38  ;;  %v8301_v38 = vld [vmem:[#allocation80_spill] sm:$0xff] }
 0x21c   :  { %v4860_v50 = vpop.eup %4859  ;;  %4879 = vrcp.f32 %v1778_v47  ;;  %v1779_v20 = vadd.f32 1.0, %v4858_v7 }
 0x21d   :  { %2827 = vrot.lane.b32.xlu0 %v2669_v32, %s5108_s6  ;;  %v4862_v40 = vpop.eup %4861  ;;  %4881 = vpow2.f32 %v4025_v0  ;;  %v1782_v63 = vadd.f32 1.0, %v4860_v50 }
 0x21e   :  { %v6731_v55 = vpop.permute.xlu0 %2519  ;;  %2817 = vrot.lane.b32.xlu1 %v2664_v4, %s5108_s6  ;;  %v6781_v9 = vpop.eup %4863  ;;  %4883 = vrcp.f32 %v1781_v29  ;;  %v1780_v0 = vadd.f32 1.0, %v4862_v40  ;;  %v4029_v4 = vmul.f32 -1.442695, %v8301_v38 }
 0x21f   :  { %8299 = vst [vmem:[#allocation65_spill] sm:$0xff] %v6781_v9  ;;  %v4866_v32 = vpop.eup %4865  ;;  %4885 = vpow2.f32 %v4023_v19  ;;  %v2670_v47 = vmul.f32 %v6781_v9, %v6641_v27 }
 0x220   :  { %v6786_v13 = vpop.eup %4867  ;;  %4887 = vrcp.f32 %v1776_v5  ;;  %v1785_v50 = vadd.f32 1.0, %v4866_v32  ;;  %v8303_v5 = vld [vmem:[#allocation79_spill] sm:$0xff] }
 0x221   :  { %v6729_v35 = vpop.permute.xlu1 %2525  ;;  %2823 = vrot.lane.b32.xlu0 %v2667_v8, %s5108_s6  ;;  %8300 = vst [vmem:[#allocation68_spill] sm:$0xff] %v6786_v13  ;;  %v4870_v45 = vpop.eup %4869  ;;  %4889 = vpow2.f32 %v4026_v28  ;;  %v2673_v29 = vmul.f32 %v6786_v13, %v6662_v34  ;;  %v4024_v40 = vmul.f32 -1.442695, %v8303_v5  ;;  %v8304_v13 = vld [vmem:[#allocation81_spill] sm:$0xff] }
 0x222   :  { %2829 = vrot.lane.b32.xlu1 %v2670_v47, %s5108_s6  ;;  %v6796_v27 = vpop.eup %4871  ;;  %4891 = vrcp.f32 %v1779_v20  ;;  %v1783_v47 = vadd.f32 1.0, %v4870_v45  ;;  %v4027_v9 = vmul.f32 -1.442695, %v8304_v13 }
 0x223   :  { %v6753_v31 = vpop.permute.xlu0 %2531  ;;  %8302 = vst [vmem:[#allocation70_spill] sm:$0xff] %v6796_v27  ;;  %v4874_v8 = vpop.eup %4873  ;;  %4893 = vrcp.f32 %v1782_v63  ;;  %v2668_v28 = vmul.f32 %v6796_v27, %v6660_v15 }
 0x224   :  { %v6802_v34 = vpop.eup %4875  ;;  %4895 = vrcp.f32 %v1780_v0  ;;  %v1786_v63 = vadd.f32 1.0, %v4874_v8 }
 0x225   :  { %v6751_v3 = vpop.permute.xlu1 %2521  ;;  %2835 = vrot.lane.b32.xlu0 %v2673_v29, %s5108_s6  ;;  %v4878_v38 = vpop.eup %4877  ;;  %4897 = vpow2.f32 %v4029_v4  ;;  %v2671_v20 = vmul.f32 %v6802_v34, %v6684_v16  ;;  %v8306_v29 = vld [vmem:[#allocation82_spill] sm:$0xff] }
 0x226   :  { %2825 = vrot.lane.b32.xlu1 %v2668_v28, %s5108_s6  ;;  %v6808_v32 = vpop.eup %4879  ;;  %4899 = vrcp.f32 %v1785_v50  ;;  %v4030_v5 = vmul.f32 -1.442695, %v8306_v29  ;;  %v1784_v4 = vadd.f32 1.0, %v4878_v38  ;;  %v4033_v50 = vmul.f32 -1.442695, %v6440_v36  ;;  %v8308_v29 = vld [vmem:[#allocation83_spill] sm:$0xff] }
 0x227   :  { %v6775_v61 = vpop.permute.xlu0 %2527  ;;  %8305 = vst [vmem:[#allocation71_spill] sm:$0xff] %v6808_v32  ;;  %v4882_v15 = vpop.eup %4881  ;;  %4901 = vpow2.f32 %v4024_v40  ;;  %v2674_v0 = vmul.f32 %v6808_v32, %v6682_v49  ;;  %v4028_v32 = vmul.f32 -1.442695, %v8308_v29  ;;  %v4031_v38 = vmul.f32 -1.442695, %v6451_v42 }
 0x228   :  { %v6818_v16 = vpop.eup %4883  ;;  %4903 = vrcp.f32 %v1783_v47  ;;  %v1789_v40 = vadd.f32 1.0, %v4882_v15 }
 0x229   :  { %2831 = vrot.lane.b32.xlu0 %v2671_v20, %s5108_s6  ;;  %v4886_v28 = vpop.eup %4885  ;;  %4905 = vpow2.f32 %v4027_v9  ;;  %v2677_v8 = vmul.f32 %v6818_v16, %v6706_v10 }
 0x22a   :  { %v6773_v25 = vpop.permute.xlu1 %2533  ;;  %2837 = vrot.lane.b32.xlu1 %v2674_v0, %s5108_s6  ;;  %v6824_v49 = vpop.eup %4887  ;;  %4907 = vrcp.f32 %v1786_v63  ;;  %v1787_v36 = vadd.f32 1.0, %v4886_v28  ;;  %v8312_v28 = vld [vmem:[#allocation84_spill] sm:$0xff] }
 0x22b   :  { %8307 = vst [vmem:[#allocation77_spill] sm:$0xff] %v6824_v49  ;;  %v4890_v20 = vpop.eup %4889  ;;  %4909 = vpow2.f32 %v4030_v5  ;;  %v2672_v47 = vmul.f32 %v6824_v49, %v6704_v52 }
 0x22c   :  { %v6794_v19 = vpop.permute.xlu0 %2539  ;;  %v6830_v9 = vpop.eup %4891  ;;  %4911 = vrcp.f32 %v1784_v4  ;;  %v1790_v0 = vadd.f32 1.0, %v4890_v20 }
 0x22d   :  { %2843 = vrot.lane.b32.xlu0 %v2677_v8, %s5108_s6  ;;  %8309 = vst [vmem:[#allocation78_spill] sm:$0xff] %v6830_v9  ;;  %v6832_v10 = vpop.eup %4893  ;;  %4913 = vpow2.f32 %v4033_v50  ;;  %v2675_v63 = vmul.f32 %v6830_v9, %v6731_v55  ;;  %v4034_v8 = vmul.f32 -1.442695, %v8312_v28  ;;  %v8314_v50 = vld [vmem:[#allocation86_spill] sm:$0xff] }
 0x22e   :  { %v6792_v7 = vpop.permute.xlu1 %2529  ;;  %8310 = vst [vmem:[#allocation80_spill] sm:$0xff] %v6832_v10  ;;  %2833 = vrot.lane.b32.xlu1 %v2672_v47, %s5108_s6  ;;  %v6842_v52 = vpop.eup %4895  ;;  %4915 = vrcp.f32 %v1789_v40  ;;  %v2678_v42 = vmul.f32 %v6832_v10, %v6729_v35  ;;  %v4037_v29 = vmul.f32 -1.442695, %v8314_v50  ;;  %v8315_v35 = vld [vmem:[#allocation85_spill] sm:$0xff] }
 0x22f   :  { %8311 = vst [vmem:[#allocation79_spill] sm:$0xff] %v6842_v52  ;;  %v4898_v4 = vpop.eup %4897  ;;  %4917 = vpow2.f32 %v4028_v32 }
 0x230   :  { %v6816_v13 = vpop.permute.xlu0 %2535  ;;  %v6848_v55 = vpop.eup %4899  ;;  %4919 = vrcp.f32 %v1787_v36  ;;  %v1793_v20 = vadd.f32 1.0, %v4898_v4  ;;  %v2676_v36 = vmul.f32 %v6842_v52, %v6751_v3  ;;  %v8317_v52 = vld [vmem:[#allocation88_spill] sm:$0xff] }
 0x231   :  { %2839 = vrot.lane.b32.xlu0 %v2675_v63, %s5108_s6  ;;  %8313 = vst [vmem:[#allocation81_spill] sm:$0xff] %v6848_v55  ;;  %v4902_v47 = vpop.eup %4901  ;;  %4921 = vpow2.f32 %v4031_v38  ;;  %v2681_v40 = vmul.f32 %v6848_v55, %v6753_v31  ;;  %v4032_v63 = vmul.f32 -1.442695, %v8315_v35  ;;  %v4038_v10 = vmul.f32 -1.442695, %v8317_v52 }
 0x232   :  { %v6814_v45 = vpop.permute.xlu1 %2541  ;;  %2845 = vrot.lane.b32.xlu1 %v2678_v42, %s5108_s6  ;;  %v6854_v32 = vpop.eup %4903  ;;  %4923 = vrcp.f32 %v1790_v0  ;;  %v1788_v42 = vadd.f32 1.0, %v4902_v47  ;;  %v8316_v0 = vld [vmem:[#allocation87_spill] sm:$0xff] }
 0x233   :  { %v4906_v28 = vpop.eup %4905  ;;  %4925 = vpow2.f32 %v4034_v8  ;;  %v4035_v4 = vmul.f32 -1.442695, %v8316_v0  ;;  %v2679_v8 = vmul.f32 %v6854_v32, %v6775_v61 }
 0x234   :  { %v6840_v5 = vpop.permute.xlu0 %2547  ;;  %v6864_v31 = vpop.eup %4907  ;;  %4927 = vpow2.f32 %v4037_v29  ;;  %v1791_v3 = vadd.f32 1.0, %v4906_v28 }
 0x235   :  { %2851 = vrot.lane.b32.xlu0 %v2681_v40, %s5108_s6  ;;  %v4910_v55 = vpop.eup %4909  ;;  %4929 = vrcp.f32 %v1793_v20  ;;  %v2682_v47 = vmul.f32 %v6864_v31, %v6773_v25 }
 0x236   :  { %v6838_v15 = vpop.permute.xlu1 %2537  ;;  %2841 = vrot.lane.b32.xlu1 %v2676_v36, %s5108_s6  ;;  %v6870_v35 = vpop.eup %4911  ;;  %4931 = vpow2.f32 %v4032_v63  ;;  %v1794_v0 = vadd.f32 1.0, %v4910_v55  ;;  %v4041_v36 = vmul.f32 -1.442695, %v6520_v11  ;;  %v4036_v55 = vmul.f32 -1.442695, %v6506_v59 }
 0x237   :  { %v4914_v40 = vpop.eup %4913  ;;  %4933 = vrcp.f32 %v1788_v42  ;;  %v2680_v42 = vmul.f32 %v6870_v35, %v6792_v7  ;;  %v4042_v7 = vmul.f32 -1.442695, %v6542_v53 }
 0x238   :  { %v6862_v38 = vpop.permute.xlu0 %2543  ;;  %v6876_v29 = vpop.eup %4915  ;;  %4935 = vpow2.f32 %v4035_v4  ;;  %v1797_v25 = vadd.f32 1.0, %v4914_v40 }
 0x239   :  { %2847 = vrot.lane.b32.xlu0 %v2679_v8, %s5108_s6  ;;  %v4918_v61 = vpop.eup %4917  ;;  %v2685_v20 = vmul.f32 %v6876_v29, %v6794_v19  ;;  %4937 = vrcp.f32 %v1791_v3 }
 0x23a   :  { %v6860_v50 = vpop.permute.xlu1 %2549  ;;  %2853 = vrot.lane.b32.xlu1 %v2682_v47, %s5108_s6  ;;  %v6884_v63 = vpop.eup %4919  ;;  %4939 = vpow2.f32 %v4038_v10  ;;  %v1792_v19 = vadd.f32 1.0, %v4918_v61  ;;  %v4039_v47 = vmul.f32 -1.442695, %v6530_v30 }
 0x23b   :  { %v4922_v8 = vpop.eup %4921  ;;  %4941 = vrcp.f32 %v1794_v0  ;;  %v2683_v3 = vmul.f32 %v6884_v63, %v6816_v13 }
 0x23c   :  { %v6890_v11 = vpop.eup %4923  ;;  %4943 = vpow2.f32 %v4041_v36  ;;  %v1795_v59 = vadd.f32 1.0, %v4922_v8 }
 0x23d   :  { %v2556_v52 = vpop.permute.xlu0 %2555  ;;  %2859 = vrot.lane.b32.xlu0 %v2685_v20, %s5108_s6  ;;  %v4926_v4 = vpop.eup %4925  ;;  %4945 = vrcp.f32 %v1797_v25  ;;  %v2686_v40 = vmul.f32 %v6890_v11, %v6814_v45  ;;  %v4040_v45 = vmul.f32 -1.442695, %v6559_v39 }
 0x23e   :  { %v6882_v28 = vpop.permute.xlu1 %2545  ;;  %2849 = vrot.lane.b32.xlu1 %v2680_v42, %s5108_s6  ;;  %v4928_v10 = vpop.eup %4927  ;;  %4947 = vpow2.f32 %v4036_v55  ;;  %v1798_v30 = vadd.f32 1.0, %v4926_v4 }
 0x23f   :  { %v6900_v36 = vpop.eup %4929  ;;  %4949 = vrcp.f32 %v1792_v19  ;;  %v1801_v20 = vadd.f32 1.0, %v4928_v10 }
 0x240   :  { %v4932_v13 = vpop.eup %4931  ;;  %4951 = vpow2.f32 %v4039_v47  ;;  %v2689_v25 = vmul.f32 %v6900_v36, %v6840_v5 }
 0x241   :  { %2855 = vrot.lane.b32.xlu0 %v2683_v3, %s5108_s6  ;;  %v2552_v61 = vpop.permute.xlu0 %2551  ;;  %v6905_v53 = vpop.eup %4933  ;;  %4953 = vrcp.f32 %v1795_v59  ;;  %v1796_v19 = vadd.f32 1.0, %v4932_v13 }
 0x242   :  { %2861 = vrot.lane.b32.xlu1 %v2686_v40, %s5108_s6  ;;  %v4936_v8 = vpop.eup %4935  ;;  %4955 = vpow2.f32 %v4042_v7  ;;  %v2684_v55 = vmul.f32 %v6905_v53, %v6838_v15 }
 0x243   :  { %v2558_v0 = vpop.permute.xlu1 %2557  ;;  %v6911_v42 = vpop.eup %4937  ;;  %4957 = vrcp.f32 %v1798_v30  ;;  %v1799_v10 = vadd.f32 1.0, %v4936_v8 }
 0x244   :  { %v4940_v4 = vpop.eup %4939  ;;  %4959 = vrcp.f32 %v1801_v20  ;;  %v2687_v5 = vmul.f32 %v6911_v42, %v6862_v38 }
 0x245   :  { %2867 = vrot.lane.b32.xlu0 %v2689_v25, %s5108_s6  ;;  %v6916_v3 = vpop.eup %4941  ;;  %4961 = vpow2.f32 %v4040_v45  ;;  %v1802_v40 = vadd.f32 1.0, %v4940_v4 }
 0x246   :  { %2857 = vrot.lane.b32.xlu1 %v2684_v55, %s5108_s6  ;;  %8318 = vst [vmem:[#allocation82_spill] sm:$0xff] %v6916_v3  ;;  %v4944_v15 = vpop.eup %4943  ;;  %v2690_v59 = vmul.f32 %v6916_v3, %v6860_v50  ;;  %4963 = vrcp.f32 %v1796_v19 }
 0x247   :  { %v2554_v47 = vpop.permute.xlu1 %2553  ;;  %v2564_v39 = vpop.permute.xlu0 %2563  ;;  %4965 = vrcp.f32 %v1799_v10  ;;  %v1805_v25 = vadd.f32 1.0, %v4944_v15 }
 0x248   :  { %v6921_v7 = vpop.eup %4945  ;;  %4967 = vrcp.f32 %v1802_v40 }
 0x249   :  { %2863 = vrot.lane.b32.xlu0 %v2687_v5, %s5108_s6  ;;  %8319 = vst [vmem:[#allocation83_spill] sm:$0xff] %v6921_v7  ;;  %v4948_v30 = vpop.eup %4947  ;;  %v2693_v38 = vmul.f32 %v6921_v7, %v2556_v52  ;;  %4969 = vrcp.f32 %v1805_v25 }
 0x24a   :  { %2869 = vrot.lane.b32.xlu1 %v2690_v59, %s5108_s6  ;;  %v6925_v20 = vpop.eup %4949  ;;  %v1800_v19 = vadd.f32 1.0, %v4948_v30 }
 0x24b   :  { %v2560_v13 = vpop.permute.xlu0 %2559  ;;  %8320 = vst [vmem:[#allocation84_spill] sm:$0xff] %v6925_v20  ;;  %v4952_v45 = vpop.eup %4951  ;;  %v2688_v50 = vmul.f32 %v6925_v20, %v6882_v28 }
 0x24c   :  { %v2566_v8 = vpop.permute.xlu1 %2565  ;;  %v6930_v55 = vpop.eup %4953  ;;  %v1803_v10 = vadd.f32 1.0, %v4952_v45  ;;  %4971 = vrcp.f32 %v1800_v19 }
 0x24d   :  { %2875 = vrot.lane.b32.xlu0 %v2693_v38, %s5108_s6  ;;  %8321 = vst [vmem:[#allocation86_spill] sm:$0xff] %v6930_v55  ;;  %v4956_v4 = vpop.eup %4955  ;;  %v2691_v52 = vmul.f32 %v6930_v55, %v2552_v61  ;;  %v8323_v55 = vld [vmem:[#allocation3_spill] sm:$0xff] }
 0x24e   :  { %2865 = vrot.lane.b32.xlu1 %v2688_v50, %s5108_s6  ;;  %v6934_v59 = vpop.eup %4957  ;;  %v1806_v40 = vadd.f32 1.0, %v4956_v4  ;;  %v2321_v25 = vmul.f32 %v6523_v60, %v8323_v55  ;;  %4973 = vrcp.f32 %v1803_v10  ;;  %v8325_v55 = vld [vmem:[#allocation2_spill] sm:$0xff] }
 0x24f   :  { %v2772_v5 = vpop.permute.xlu0 %2771  ;;  %8322 = vst [vmem:[#allocation85_spill] sm:$0xff] %v6934_v59  ;;  %v6936_v15 = vpop.eup %4959  ;;  %v2694_v28 = vmul.f32 %v6934_v59, %v2558_v0  ;;  %v2319_v10 = vmul.f32 %v6544_v14, %v8325_v55 }
 0x250   :  { %v2562_v20 = vpop.permute.xlu1 %2561  ;;  %v4962_v38 = vpop.eup %4961  ;;  %v2697_v30 = vmul.f32 %v6936_v15, %v2564_v39  ;;  %4975 = vrcp.f32 %v1806_v40  ;;  %v6950_v19 = vadd.f32 %v2772_v5, %v2321_v25  ;;  %v8327_v5 = vld [vmem:[#allocation5_spill] sm:$0xff] }
 0x251   :  { %2871 = vrot.lane.b32.xlu0 %v2691_v52, %s5108_s6  ;;  %v6942_v50 = vpop.eup %4963  ;;  %v1804_v45 = vadd.f32 1.0, %v4962_v38  ;;  %v2322_v40 = vmul.f32 %v6552_v51, %v8327_v5  ;;  %v8332_v5 = vld [vmem:[#allocation4_spill] sm:$0xff] }
 0x252   :  { %2877 = vrot.lane.b32.xlu1 %v2694_v28, %s5108_s6  ;;  %v2692_v0 = vmul.f32 %v6942_v50, %v2554_v47  ;;  %v6948_v52 = vpop.eup %4965  ;;  %8324 = vst [vmem:[#allocation87_spill] sm:$0xff] %v6950_v19 }
 0x253   :  { %v2768_v61 = vpop.permute.xlu0 %2767  ;;  %v2695_v39 = vmul.f32 %v6948_v52, %v2560_v13  ;;  %v6954_v28 = vpop.eup %4967  ;;  %4977 = vrcp.f32 %v1804_v45 }
 0x254   :  { %v2774_v59 = vpop.permute.xlu1 %2773  ;;  %v2698_v47 = vmul.f32 %v6954_v28, %v2566_v8  ;;  %4979 = vtanh.f32 %v6950_v19  ;;  %v6965_v13 = vadd.f32 %v2768_v61, %v2319_v10  ;;  %v2320_v61 = vmul.f32 %v6569_v17, %v8332_v5  ;;  %v8333_v10 = vld [vmem:[#allocation8_spill] sm:$0xff] }
 0x255   :  { %2883 = vrot.lane.b32.xlu0 %v2697_v30, %s5108_s6  ;;  %v6960_v30 = vpop.eup %4969  ;;  %v6971_v8 = vadd.f32 %v2774_v59, %v2322_v40 }
 0x256   :  { %2873 = vrot.lane.b32.xlu1 %v2692_v0, %s5108_s6  ;;  %8326 = vst [vmem:[#allocation88_spill] sm:$0xff] %v6960_v30  ;;  %8328 = vst [vmem:[#allocation3_spill] sm:$0xff] %v6965_v13  ;;  %v6969_v45 = vpop.eup %4971  ;;  %4981 = vtanh.f32 %v6965_v13 }
 0x257   :  { %v2572_v4 = vpop.permute.xlu0 %2571  ;;  %8329 = vst [vmem:[#allocation2_spill] sm:$0xff] %v6969_v45  ;;  %8330 = vst [vmem:[#allocation5_spill] sm:$0xff] %v6971_v8  ;;  %4983 = vtanh.f32 %v6971_v8 }
 0x258   :  { %v2770_v38 = vpop.permute.xlu1 %2769  ;;  %v2701_v25 = vmul.f32 %v6960_v30, %v2572_v4  ;;  %v6975_v14 = vpop.eup %4973  ;;  %v2325_v4 = vmul.f32 %v6578_v62, %v8333_v10  ;;  %v8336_v10 = vld [vmem:[#allocation6_spill] sm:$0xff] }
 0x259   :  { %2879 = vrot.lane.b32.xlu0 %v2695_v39, %s5108_s6  ;;  %v2696_v39 = vmul.f32 %v6969_v45, %v2562_v20  ;;  %8331 = vst [vmem:[#allocation91_spill] sm:$0xff] %v6975_v14  ;;  %v6987_v20 = vadd.f32 %v2770_v38, %v2320_v61  ;;  %v2323_v13 = vmul.f32 %v6588_v43, %v8336_v10  ;;  %v8337_v38 = vld [vmem:[#allocation9_spill] sm:$0xff] }
 0x25a   :  { %2885 = vrot.lane.b32.xlu1 %v2698_v47, %s5108_s6  ;;  %v6984_v40 = vpop.eup %4975  ;;  %v2326_v61 = vmul.f32 %v6594_v48, %v8337_v38  ;;  %v8341_v48 = vld [vmem:[#allocation7_spill] sm:$0xff] }
 0x25b   :  { %v2568_v0 = vpop.permute.xlu0 %2567  ;;  %8334 = vst [vmem:[#allocation4_spill] sm:$0xff] %v6987_v20 }
 0x25c   :  { %v2574_v55 = vpop.permute.xlu1 %2573  ;;  %v2699_v47 = vmul.f32 %v6975_v14, %v2568_v0 }
 0x25d   :  { %2891 = vrot.lane.b32.xlu0 %v2701_v25, %s5108_s6  ;;  %v2702_v5 = vmul.f32 %v6984_v40, %v2574_v55  ;;  %v6996_v0 = vpop.eup %4977 }
 0x25e   :  { %2881 = vrot.lane.b32.xlu1 %v2696_v39, %s5108_s6  ;;  %v4980_v8 = vpop.eup %4979 }
 0x25f   :  { %v2780_v59 = vpop.permute.xlu0 %2779 }
 0x260   :  { %v6989_v25 = vadd.f32 %v2780_v59, %v2325_v4  ;;  %v2570_v19 = vpop.permute.xlu1 %2569  ;;  %v8339_v59 = vld [vmem:[#allocation12_spill] sm:$0xff]  ;;  %v4982_v38 = vpop.eup %4981 }
 0x261   :  { %2887 = vrot.lane.b32.xlu0 %v2699_v47, %s5108_s6  ;;  %v2700_v4 = vmul.f32 %v6996_v0, %v2570_v19  ;;  %v2329_v10 = vmul.f32 %v6613_v6, %v8339_v59  ;;  %v8343_v59 = vld [vmem:[#allocation10_spill] sm:$0xff] }
 0x262   :  { %8335 = vst [vmem:[#allocation8_spill] sm:$0xff] %v6989_v25  ;;  %4985 = vtanh.f32 %v6989_v25  ;;  %2893 = vrot.lane.b32.xlu1 %v2702_v5, %s5108_s6 }
 0x263   :  { %v2776_v39 = vpop.permute.xlu0 %2775  ;;  %4987 = vtanh.f32 %v6987_v20  ;;  %v8358_v20 = vld [vmem:[#allocation54_spill] sm:$0xff] }
 0x264   :  { %v7002_v55 = vadd.f32 %v2776_v39, %v2323_v13  ;;  %v2782_v47 = vpop.permute.xlu1 %2781  ;;  %v2324_v13 = vmul.f32 %v6607_v33, %v8341_v48  ;;  %v8345_v48 = vld [vmem:[#allocation13_spill] sm:$0xff] }
 0x265   :  { %3155 = vrot.lane.b32.xlu0 %v4980_v8, %s5108_s6  ;;  %v7008_v25 = vadd.f32 %v2782_v47, %v2326_v61  ;;  %v4984_v8 = vpop.eup %4983  ;;  %v2327_v61 = vmul.f32 %v6623_v23, %v8343_v59  ;;  %v8347_v59 = vld [vmem:[#allocation16_spill] sm:$0xff] }
 0x266   :  { %8338 = vst [vmem:[#allocation6_spill] sm:$0xff] %v7002_v55  ;;  %4989 = vtanh.f32 %v7002_v55  ;;  %2889 = vrot.lane.b32.xlu1 %v2700_v4, %s5108_s6 }
 0x267   :  { %8340 = vst [vmem:[#allocation9_spill] sm:$0xff] %v7008_v25  ;;  %v2788_v5 = vpop.permute.xlu0 %2787  ;;  %4991 = vtanh.f32 %v7008_v25  ;;  %v2330_v25 = vmul.f32 %v6629_v58, %v8345_v48  ;;  %v8349_v48 = vld [vmem:[#allocation11_spill] sm:$0xff] }
 0x268   :  { %v7015_v19 = vadd.f32 %v2788_v5, %v2329_v10  ;;  %v2778_v39 = vpop.permute.xlu1 %2777 }
 0x269   :  { %3151 = vrot.lane.b32.xlu0 %v4982_v38, %s5108_s6  ;;  %v7020_v47 = vadd.f32 %v2778_v39, %v2324_v13  ;;  %v2333_v13 = vmul.f32 %v6645_v57, %v8347_v59  ;;  %v8351_v59 = vld [vmem:[#allocation14_spill] sm:$0xff] }
 0x26a   :  { %8342 = vst [vmem:[#allocation12_spill] sm:$0xff] %v7015_v19  ;;  %4993 = vtanh.f32 %v7015_v19  ;;  %3157 = vrot.lane.b32.xlu1 %v4984_v8, %s5108_s6 }
 0x26b   :  { %8344 = vst [vmem:[#allocation7_spill] sm:$0xff] %v7020_v47  ;;  %v2784_v4 = vpop.permute.xlu0 %2783  ;;  %4995 = vtanh.f32 %v7020_v47  ;;  %v2328_v47 = vmul.f32 %v6635_v41, %v8349_v48  ;;  %v8353_v48 = vld [vmem:[#allocation17_spill] sm:$0xff] }
 0x26c   :  { %v4986_v55 = vpop.eup %4985  ;;  %v7027_v10 = vadd.f32 %v2784_v4, %v2327_v61  ;;  %v2790_v5 = vpop.permute.xlu1 %2789 }
 0x26d   :  { %3163 = vrot.lane.b32.xlu0 %v4986_v55, %s5108_s6  ;;  %v4988_v38 = vpop.eup %4987  ;;  %v7032_v39 = vadd.f32 %v2790_v5, %v2330_v25  ;;  %v2331_v25 = vmul.f32 %v6655_v12, %v8351_v59  ;;  %v8355_v59 = vld [vmem:[#allocation20_spill] sm:$0xff] }
 0x26e   :  { %8346 = vst [vmem:[#allocation10_spill] sm:$0xff] %v7027_v10  ;;  %4997 = vtanh.f32 %v7027_v10  ;;  %3153 = vrot.lane.b32.xlu1 %v4988_v38, %s5108_s6 }
 0x26f   :  { %8348 = vst [vmem:[#allocation13_spill] sm:$0xff] %v7032_v39  ;;  %v2796_v8 = vpop.permute.xlu0 %2795  ;;  %4999 = vtanh.f32 %v7032_v39  ;;  %v2334_v39 = vmul.f32 %v6664_v2, %v8353_v48  ;;  %v8357_v48 = vld [vmem:[#allocation15_spill] sm:$0xff] }
 0x270   :  { %v4990_v19 = vpop.eup %4989  ;;  %v7039_v61 = vadd.f32 %v2796_v8, %v2333_v13  ;;  %v2786_v55 = vpop.permute.xlu1 %2785 }
 0x271   :  { %3159 = vrot.lane.b32.xlu0 %v4990_v19, %s5108_s6  ;;  %v4992_v4 = vpop.eup %4991  ;;  %v7044_v5 = vadd.f32 %v2786_v55, %v2328_v47  ;;  %v2337_v47 = vmul.f32 %v6670_v44, %v8355_v59  ;;  %v8360_v59 = vld [vmem:[#allocation18_spill] sm:$0xff] }
 0x272   :  { %8350 = vst [vmem:[#allocation16_spill] sm:$0xff] %v7039_v61  ;;  %5001 = vtanh.f32 %v7039_v61  ;;  %3165 = vrot.lane.b32.xlu1 %v4992_v4, %s5108_s6 }
 0x273   :  { %8352 = vst [vmem:[#allocation11_spill] sm:$0xff] %v7044_v5  ;;  %v2792_v38 = vpop.permute.xlu0 %2791  ;;  %5003 = vtanh.f32 %v7044_v5  ;;  %v2332_v5 = vmul.f32 %v8358_v20, %v8357_v48  ;;  %v8362_v48 = vld [vmem:[#allocation21_spill] sm:$0xff]  ;;  %v8363_v20 = vld [vmem:[#allocation59_spill] sm:$0xff] }
 0x274   :  { %v4994_v10 = vpop.eup %4993  ;;  %v7051_v13 = vadd.f32 %v2792_v38, %v2331_v25  ;;  %v2798_v19 = vpop.permute.xlu1 %2797 }
 0x275   :  { %3171 = vrot.lane.b32.xlu0 %v4994_v10, %s5108_s6  ;;  %v4996_v8 = vpop.eup %4995  ;;  %v7056_v55 = vadd.f32 %v2798_v19, %v2334_v39  ;;  %v2335_v39 = vmul.f32 %v6686_v1, %v8360_v59  ;;  %v8365_v59 = vld [vmem:[#allocation24_spill] sm:$0xff] }
 0x276   :  { %8354 = vst [vmem:[#allocation14_spill] sm:$0xff] %v7051_v13  ;;  %5005 = vtanh.f32 %v7051_v13  ;;  %3161 = vrot.lane.b32.xlu1 %v4996_v8, %s5108_s6 }
 0x277   :  { %8356 = vst [vmem:[#allocation17_spill] sm:$0xff] %v7056_v55  ;;  %v2804_v4 = vpop.permute.xlu0 %2803  ;;  %5007 = vtanh.f32 %v7056_v55  ;;  %v2338_v55 = vmul.f32 %v8363_v20, %v8362_v48  ;;  %v8368_v48 = vld [vmem:[#allocation19_spill] sm:$0xff]  ;;  %v8369_v20 = vld [vmem:[#allocation61_spill] sm:$0xff] }
 0x278   :  { %v4998_v61 = vpop.eup %4997  ;;  %v7063_v25 = vadd.f32 %v2804_v4, %v2337_v47  ;;  %v2794_v10 = vpop.permute.xlu1 %2793 }
 0x279   :  { %3167 = vrot.lane.b32.xlu0 %v4998_v61, %s5108_s6  ;;  %v5000_v38 = vpop.eup %4999  ;;  %v7068_v19 = vadd.f32 %v2794_v10, %v2332_v5  ;;  %v8366_v5 = vld [vmem:[#allocation57_spill] sm:$0xff] }
 0x27a   :  { %8359 = vst [vmem:[#allocation20_spill] sm:$0xff] %v7063_v25  ;;  %5009 = vtanh.f32 %v7063_v25  ;;  %3173 = vrot.lane.b32.xlu1 %v5000_v38, %s5108_s6  ;;  %v2341_v10 = vmul.f32 %v8366_v5, %v8365_v59  ;;  %v8371_v59 = vld [vmem:[#allocation22_spill] sm:$0xff] }
 0x27b   :  { %8361 = vst [vmem:[#allocation15_spill] sm:$0xff] %v7068_v19  ;;  %v2800_v8 = vpop.permute.xlu0 %2799  ;;  %5011 = vtanh.f32 %v7068_v19  ;;  %v2336_v19 = vmul.f32 %v8369_v20, %v8368_v48  ;;  %v8373_v48 = vld [vmem:[#allocation25_spill] sm:$0xff] }
 0x27c   :  { %v5002_v13 = vpop.eup %5001  ;;  %v7075_v47 = vadd.f32 %v2800_v8, %v2335_v39  ;;  %v2806_v61 = vpop.permute.xlu1 %2805 }
 0x27d   :  { %3179 = vrot.lane.b32.xlu0 %v5002_v13, %s5108_s6  ;;  %v5004_v4 = vpop.eup %5003  ;;  %v7080_v1 = vadd.f32 %v2806_v61, %v2338_v55  ;;  %v2339_v55 = vmul.f32 %v6710_v46, %v8371_v59  ;;  %v8375_v59 = vld [vmem:[#allocation28_spill] sm:$0xff] }
 0x27e   :  { %8364 = vst [vmem:[#allocation18_spill] sm:$0xff] %v7075_v47  ;;  %5013 = vtanh.f32 %v7075_v47  ;;  %3169 = vrot.lane.b32.xlu1 %v5004_v4, %s5108_s6 }
 0x27f   :  { %8367 = vst [vmem:[#allocation21_spill] sm:$0xff] %v7080_v1  ;;  %v2812_v38 = vpop.permute.xlu0 %2811  ;;  %5015 = vtanh.f32 %v7080_v1  ;;  %v2342_v1 = vmul.f32 %v6716_v21, %v8373_v48  ;;  %v8377_v48 = vld [vmem:[#allocation23_spill] sm:$0xff] }
 0x280   :  { %v5006_v25 = vpop.eup %5005  ;;  %v7087_v39 = vadd.f32 %v2812_v38, %v2341_v10  ;;  %v2802_v13 = vpop.permute.xlu1 %2801 }
 0x281   :  { %3175 = vrot.lane.b32.xlu0 %v5006_v25, %s5108_s6  ;;  %v5008_v8 = vpop.eup %5007  ;;  %v7092_v61 = vadd.f32 %v2802_v13, %v2336_v19  ;;  %v2345_v19 = vmul.f32 %v6733_v22, %v8375_v59  ;;  %v8379_v59 = vld [vmem:[#allocation26_spill] sm:$0xff] }
 0x282   :  { %8370 = vst [vmem:[#allocation24_spill] sm:$0xff] %v7087_v39  ;;  %5017 = vtanh.f32 %v7087_v39  ;;  %3181 = vrot.lane.b32.xlu1 %v5008_v8, %s5108_s6 }
 0x283   :  { %8372 = vst [vmem:[#allocation57_spill] sm:$0xff] %v7092_v61  ;;  %v2808_v4 = vpop.permute.xlu0 %2807  ;;  %5019 = vtanh.f32 %v7092_v61  ;;  %v2340_v61 = vmul.f32 %v6722_v37, %v8377_v48  ;;  %v8381_v48 = vld [vmem:[#allocation29_spill] sm:$0xff] }
 0x284   :  { %v5010_v47 = vpop.eup %5009  ;;  %v7099_v10 = vadd.f32 %v2808_v4, %v2339_v55  ;;  %v2814_v25 = vpop.permute.xlu1 %2813 }
 0x285   :  { %3187 = vrot.lane.b32.xlu0 %v5010_v47, %s5108_s6  ;;  %v5012_v38 = vpop.eup %5011  ;;  %v7104_v13 = vadd.f32 %v2814_v25, %v2342_v1  ;;  %v2343_v1 = vmul.f32 %v6739_v24, %v8379_v59  ;;  %v8383_v59 = vld [vmem:[#allocation32_spill] sm:$0xff] }
 0x286   :  { %8374 = vst [vmem:[#allocation19_spill] sm:$0xff] %v7099_v10  ;;  %5021 = vtanh.f32 %v7099_v10  ;;  %3177 = vrot.lane.b32.xlu1 %v5012_v38, %s5108_s6 }
 0x287   :  { %8376 = vst [vmem:[#allocation61_spill] sm:$0xff] %v7104_v13  ;;  %v2820_v8 = vpop.permute.xlu0 %2819  ;;  %5023 = vtanh.f32 %v7104_v13  ;;  %v2346_v13 = vmul.f32 %v6745_v56, %v8381_v48  ;;  %v8385_v48 = vld [vmem:[#allocation27_spill] sm:$0xff] }
 0x288   :  { %v5014_v39 = vpop.eup %5013  ;;  %v7111_v55 = vadd.f32 %v2820_v8, %v2345_v19  ;;  %v2810_v47 = vpop.permute.xlu1 %2809 }
 0x289   :  { %3183 = vrot.lane.b32.xlu0 %v5014_v39, %s5108_s6  ;;  %v5016_v4 = vpop.eup %5015  ;;  %v7116_v25 = vadd.f32 %v2810_v47, %v2340_v61  ;;  %v2349_v61 = vmul.f32 %v6761_v26, %v8383_v59  ;;  %v8387_v59 = vld [vmem:[#allocation30_spill] sm:$0xff] }
 0x28a   :  { %8378 = vst [vmem:[#allocation22_spill] sm:$0xff] %v7111_v55  ;;  %5025 = vtanh.f32 %v7111_v55  ;;  %3189 = vrot.lane.b32.xlu1 %v5016_v4, %s5108_s6 }
 0x28b   :  { %8380 = vst [vmem:[#allocation25_spill] sm:$0xff] %v7116_v25  ;;  %v2816_v38 = vpop.permute.xlu0 %2815  ;;  %5027 = vtanh.f32 %v7116_v25  ;;  %v2344_v25 = vmul.f32 %v6755_v54, %v8385_v48  ;;  %v8389_v48 = vld [vmem:[#allocation33_spill] sm:$0xff] }
 0x28c   :  { %v5018_v10 = vpop.eup %5017  ;;  %v7123_v19 = vadd.f32 %v2816_v38, %v2343_v1  ;;  %v2822_v39 = vpop.permute.xlu1 %2821  ;;  %v8390_v54 = vld [vmem:[#allocation65_spill] sm:$0xff] }
 0x28d   :  { %3195 = vrot.lane.b32.xlu0 %v5018_v10, %s5108_s6  ;;  %v5020_v8 = vpop.eup %5019  ;;  %v7128_v47 = vadd.f32 %v2822_v39, %v2346_v13  ;;  %v2347_v13 = vmul.f32 %v6767_v18, %v8387_v59  ;;  %v8392_v59 = vld [vmem:[#allocation36_spill] sm:$0xff] }
 0x28e   :  { %8382 = vst [vmem:[#allocation28_spill] sm:$0xff] %v7123_v19  ;;  %5029 = vtanh.f32 %v7123_v19  ;;  %3185 = vrot.lane.b32.xlu1 %v5020_v8, %s5108_s6 }
 0x28f   :  { %8384 = vst [vmem:[#allocation23_spill] sm:$0xff] %v7128_v47  ;;  %v2828_v4 = vpop.permute.xlu0 %2827  ;;  %5031 = vtanh.f32 %v7128_v47  ;;  %v2350_v47 = vmul.f32 %v8390_v54, %v8389_v48  ;;  %v8395_v48 = vld [vmem:[#allocation31_spill] sm:$0xff] }
 0x290   :  { %v5022_v55 = vpop.eup %5021  ;;  %v7135_v1 = vadd.f32 %v2828_v4, %v2349_v61  ;;  %v2818_v10 = vpop.permute.xlu1 %2817 }
 0x291   :  { %3191 = vrot.lane.b32.xlu0 %v5022_v55, %s5108_s6  ;;  %v5024_v38 = vpop.eup %5023  ;;  %v7140_v39 = vadd.f32 %v2818_v10, %v2344_v25  ;;  %v8393_v25 = vld [vmem:[#allocation68_spill] sm:$0xff] }
 0x292   :  { %8386 = vst [vmem:[#allocation26_spill] sm:$0xff] %v7135_v1  ;;  %5033 = vtanh.f32 %v7135_v1  ;;  %3197 = vrot.lane.b32.xlu1 %v5024_v38, %s5108_s6  ;;  %v2353_v10 = vmul.f32 %v8393_v25, %v8392_v59  ;;  %v8397_v59 = vld [vmem:[#allocation34_spill] sm:$0xff] }
 0x293   :  { %8388 = vst [vmem:[#allocation29_spill] sm:$0xff] %v7140_v39  ;;  %v2824_v8 = vpop.permute.xlu0 %2823  ;;  %5035 = vtanh.f32 %v7140_v39  ;;  %v2348_v39 = vmul.f32 %v6796_v27, %v8395_v48  ;;  %v8399_v48 = vld [vmem:[#allocation37_spill] sm:$0xff]  ;;  %v8400_v27 = vld [vmem:[#allocation71_spill] sm:$0xff] }
 0x294   :  { %v5026_v19 = vpop.eup %5025  ;;  %v7147_v61 = vadd.f32 %v2824_v8, %v2347_v13  ;;  %v2830_v55 = vpop.permute.xlu1 %2829 }
 0x295   :  { %3203 = vrot.lane.b32.xlu0 %v5026_v19, %s5108_s6  ;;  %v5028_v4 = vpop.eup %5027  ;;  %v7152_v18 = vadd.f32 %v2830_v55, %v2350_v47  ;;  %v2351_v47 = vmul.f32 %v6802_v34, %v8397_v59  ;;  %v8402_v59 = vld [vmem:[#allocation40_spill] sm:$0xff] }
 0x296   :  { %8391 = vst [vmem:[#allocation32_spill] sm:$0xff] %v7147_v61  ;;  %5037 = vtanh.f32 %v7147_v61  ;;  %3193 = vrot.lane.b32.xlu1 %v5028_v4, %s5108_s6 }
 0x297   :  { %8394 = vst [vmem:[#allocation27_spill] sm:$0xff] %v7152_v18  ;;  %v2836_v38 = vpop.permute.xlu0 %2835  ;;  %5039 = vtanh.f32 %v7152_v18  ;;  %v2354_v18 = vmul.f32 %v8400_v27, %v8399_v48  ;;  %v8404_v48 = vld [vmem:[#allocation35_spill] sm:$0xff] }
 0x298   :  { %v5030_v1 = vpop.eup %5029  ;;  %v7159_v13 = vadd.f32 %v2836_v38, %v2353_v10  ;;  %v2826_v19 = vpop.permute.xlu1 %2825 }
 0x299   :  { %3199 = vrot.lane.b32.xlu0 %v5030_v1, %s5108_s6  ;;  %v5032_v8 = vpop.eup %5031  ;;  %v7164_v55 = vadd.f32 %v2826_v19, %v2348_v39  ;;  %v2357_v39 = vmul.f32 %v6818_v16, %v8402_v59  ;;  %v8406_v59 = vld [vmem:[#allocation38_spill] sm:$0xff] }
 0x29a   :  { %8396 = vst [vmem:[#allocation30_spill] sm:$0xff] %v7159_v13  ;;  %5041 = vtanh.f32 %v7159_v13  ;;  %3205 = vrot.lane.b32.xlu1 %v5032_v8, %s5108_s6 }
 0x29b   :  { %8398 = vst [vmem:[#allocation33_spill] sm:$0xff] %v7164_v55  ;;  %v2832_v4 = vpop.permute.xlu0 %2831  ;;  %5043 = vtanh.f32 %v7164_v55  ;;  %v2352_v55 = vmul.f32 %v6824_v49, %v8404_v48  ;;  %v8408_v48 = vld [vmem:[#allocation41_spill] sm:$0xff]  ;;  %v8409_v49 = vld [vmem:[#allocation80_spill] sm:$0xff] }
 0x29c   :  { %v5034_v61 = vpop.eup %5033  ;;  %v7171_v10 = vadd.f32 %v2832_v4, %v2351_v47  ;;  %v2838_v1 = vpop.permute.xlu1 %2837 }
 0x29d   :  { %3211 = vrot.lane.b32.xlu0 %v5034_v61, %s5108_s6  ;;  %v5036_v38 = vpop.eup %5035  ;;  %v7176_v19 = vadd.f32 %v2838_v1, %v2354_v18  ;;  %v2355_v18 = vmul.f32 %v6830_v9, %v8406_v59  ;;  %v8411_v59 = vld [vmem:[#allocation44_spill] sm:$0xff] }
 0x29e   :  { %8401 = vst [vmem:[#allocation65_spill] sm:$0xff] %v7171_v10  ;;  %5045 = vtanh.f32 %v7171_v10  ;;  %3201 = vrot.lane.b32.xlu1 %v5036_v38, %s5108_s6 }
 0x29f   :  { %8403 = vst [vmem:[#allocation36_spill] sm:$0xff] %v7176_v19  ;;  %v2844_v8 = vpop.permute.xlu0 %2843  ;;  %5047 = vtanh.f32 %v7176_v19  ;;  %v2358_v19 = vmul.f32 %v8409_v49, %v8408_v48  ;;  %v8414_v48 = vld [vmem:[#allocation39_spill] sm:$0xff] }
 0x2a0   :  { %v5038_v13 = vpop.eup %5037  ;;  %v7183_v47 = vadd.f32 %v2844_v8, %v2357_v39  ;;  %v2834_v61 = vpop.permute.xlu1 %2833  ;;  %v8415_v49 = vld [vmem:[#allocation79_spill] sm:$0xff] }
 0x2a1   :  { %3207 = vrot.lane.b32.xlu0 %v5038_v13, %s5108_s6  ;;  %v5040_v4 = vpop.eup %5039  ;;  %v7188_v1 = vadd.f32 %v2834_v61, %v2352_v55  ;;  %v8412_v55 = vld [vmem:[#allocation81_spill] sm:$0xff] }
 0x2a2   :  { %8405 = vst [vmem:[#allocation68_spill] sm:$0xff] %v7183_v47  ;;  %5049 = vtanh.f32 %v7183_v47  ;;  %3213 = vrot.lane.b32.xlu1 %v5040_v4, %s5108_s6  ;;  %v2361_v61 = vmul.f32 %v8412_v55, %v8411_v59  ;;  %v8417_v59 = vld [vmem:[#allocation42_spill] sm:$0xff] }
 0x2a3   :  { %8407 = vst [vmem:[#allocation31_spill] sm:$0xff] %v7188_v1  ;;  %v2840_v38 = vpop.permute.xlu0 %2839  ;;  %5051 = vtanh.f32 %v7188_v1  ;;  %v2356_v1 = vmul.f32 %v8415_v49, %v8414_v48  ;;  %v8419_v48 = vld [vmem:[#allocation45_spill] sm:$0xff] }
 0x2a4   :  { %v5042_v10 = vpop.eup %5041  ;;  %v7195_v39 = vadd.f32 %v2840_v38, %v2355_v18  ;;  %v2846_v13 = vpop.permute.xlu1 %2845 }
 0x2a5   :  { %3219 = vrot.lane.b32.xlu0 %v5042_v10, %s5108_s6  ;;  %v5044_v8 = vpop.eup %5043  ;;  %v7200_v9 = vadd.f32 %v2846_v13, %v2358_v19  ;;  %v2359_v19 = vmul.f32 %v6854_v32, %v8417_v59  ;;  %v8421_v59 = vld [vmem:[#allocation48_spill] sm:$0xff] }
 0x2a6   :  { %8410 = vst [vmem:[#allocation34_spill] sm:$0xff] %v7195_v39  ;;  %5053 = vtanh.f32 %v7195_v39  ;;  %3209 = vrot.lane.b32.xlu1 %v5044_v8, %s5108_s6 }
 0x2a7   :  { %8413 = vst [vmem:[#allocation37_spill] sm:$0xff] %v7200_v9  ;;  %v2852_v4 = vpop.permute.xlu0 %2851  ;;  %5055 = vtanh.f32 %v7200_v9  ;;  %v2362_v9 = vmul.f32 %v6864_v31, %v8419_v48  ;;  %v8423_v48 = vld [vmem:[#allocation43_spill] sm:$0xff] }
 0x2a8   :  { %v5046_v47 = vpop.eup %5045  ;;  %v7207_v18 = vadd.f32 %v2852_v4, %v2361_v61  ;;  %v2842_v10 = vpop.permute.xlu1 %2841 }
 0x2a9   :  { %3215 = vrot.lane.b32.xlu0 %v5046_v47, %s5108_s6  ;;  %v5048_v38 = vpop.eup %5047  ;;  %v7212_v13 = vadd.f32 %v2842_v10, %v2356_v1  ;;  %v2365_v1 = vmul.f32 %v6876_v29, %v8421_v59  ;;  %v8425_v59 = vld [vmem:[#allocation46_spill] sm:$0xff] }
 0x2aa   :  { %8416 = vst [vmem:[#allocation71_spill] sm:$0xff] %v7207_v18  ;;  %5057 = vtanh.f32 %v7207_v18  ;;  %3221 = vrot.lane.b32.xlu1 %v5048_v38, %s5108_s6 }
 0x2ab   :  { %8418 = vst [vmem:[#allocation40_spill] sm:$0xff] %v7212_v13  ;;  %v2848_v8 = vpop.permute.xlu0 %2847  ;;  %5059 = vtanh.f32 %v7212_v13  ;;  %v2360_v13 = vmul.f32 %v6870_v35, %v8423_v48  ;;  %v8427_v48 = vld [vmem:[#allocation49_spill] sm:$0xff] }
 0x2ac   :  { %v5050_v39 = vpop.eup %5049  ;;  %v7219_v61 = vadd.f32 %v2848_v8, %v2359_v19  ;;  %v2854_v47 = vpop.permute.xlu1 %2853 }
 0x2ad   :  { %3227 = vrot.lane.b32.xlu0 %v5050_v39, %s5108_s6  ;;  %v5052_v4 = vpop.eup %5051  ;;  %v7224_v10 = vadd.f32 %v2854_v47, %v2362_v9  ;;  %v2363_v9 = vmul.f32 %v6884_v63, %v8425_v59  ;;  %v8429_v59 = vld [vmem:[#allocation52_spill] sm:$0xff] }
 0x2ae   :  { %8420 = vst [vmem:[#allocation35_spill] sm:$0xff] %v7219_v61  ;;  %5061 = vtanh.f32 %v7219_v61  ;;  %3217 = vrot.lane.b32.xlu1 %v5052_v4, %s5108_s6 }
 0x2af   :  { %8422 = vst [vmem:[#allocation38_spill] sm:$0xff] %v7224_v10  ;;  %v2860_v38 = vpop.permute.xlu0 %2859  ;;  %5063 = vtanh.f32 %v7224_v10  ;;  %v2366_v10 = vmul.f32 %v6890_v11, %v8427_v48  ;;  %v8431_v48 = vld [vmem:[#allocation47_spill] sm:$0xff] }
 0x2b0   :  { %v5054_v18 = vpop.eup %5053  ;;  %v7231_v19 = vadd.f32 %v2860_v38, %v2365_v1  ;;  %v2850_v39 = vpop.permute.xlu1 %2849 }
 0x2b1   :  { %3223 = vrot.lane.b32.xlu0 %v5054_v18, %s5108_s6  ;;  %v5056_v8 = vpop.eup %5055  ;;  %v7236_v47 = vadd.f32 %v2850_v39, %v2360_v13  ;;  %v2369_v13 = vmul.f32 %v6900_v36, %v8429_v59  ;;  %v8433_v59 = vld [vmem:[#allocation50_spill] sm:$0xff] }
 0x2b2   :  { %8424 = vst [vmem:[#allocation41_spill] sm:$0xff] %v7231_v19  ;;  %5065 = vtanh.f32 %v7231_v19  ;;  %3229 = vrot.lane.b32.xlu1 %v5056_v8, %s5108_s6 }
 0x2b3   :  { %8426 = vst [vmem:[#allocation44_spill] sm:$0xff] %v7236_v47  ;;  %v2856_v4 = vpop.permute.xlu0 %2855  ;;  %5067 = vtanh.f32 %v7236_v47  ;;  %v2364_v47 = vmul.f32 %v6905_v53, %v8431_v48  ;;  %v8435_v48 = vld [vmem:[#allocation53_spill] sm:$0xff] }
 0x2b4   :  { %v5058_v61 = vpop.eup %5057  ;;  %v7243_v1 = vadd.f32 %v2856_v4, %v2363_v9  ;;  %v2862_v18 = vpop.permute.xlu1 %2861 }
 0x2b5   :  { %3235 = vrot.lane.b32.xlu0 %v5058_v61, %s5108_s6  ;;  %v5060_v38 = vpop.eup %5059  ;;  %v7248_v39 = vadd.f32 %v2862_v18, %v2366_v10  ;;  %v2367_v10 = vmul.f32 %v6911_v42, %v8433_v59  ;;  %v8437_v59 = vld [vmem:[#allocation60_spill] sm:$0xff] }
 0x2b6   :  { %8428 = vst [vmem:[#allocation81_spill] sm:$0xff] %v7243_v1  ;;  %5069 = vtanh.f32 %v7243_v1  ;;  %3225 = vrot.lane.b32.xlu1 %v5060_v38, %s5108_s6 }
 0x2b7   :  { %8430 = vst [vmem:[#allocation39_spill] sm:$0xff] %v7248_v39  ;;  %v2868_v8 = vpop.permute.xlu0 %2867  ;;  %5071 = vtanh.f32 %v7248_v39  ;;  %v2370_v39 = vmul.f32 %v6916_v3, %v8435_v48  ;;  %v8439_v48 = vld [vmem:[#allocation51_spill] sm:$0xff]  ;;  %v8440_v3 = vld [vmem:[#allocation84_spill] sm:$0xff] }
 0x2b8   :  { %v5062_v19 = vpop.eup %5061  ;;  %v7255_v9 = vadd.f32 %v2868_v8, %v2369_v13  ;;  %v2858_v61 = vpop.permute.xlu1 %2857 }
 0x2b9   :  { %3231 = vrot.lane.b32.xlu0 %v5062_v19, %s5108_s6  ;;  %v5064_v4 = vpop.eup %5063  ;;  %v7260_v18 = vadd.f32 %v2858_v61, %v2364_v47  ;;  %v2373_v47 = vmul.f32 %v6921_v7, %v8437_v59  ;;  %v8442_v59 = vld [vmem:[#allocation55_spill] sm:$0xff] }
 0x2ba   :  { %8432 = vst [vmem:[#allocation79_spill] sm:$0xff] %v7255_v9  ;;  %5073 = vtanh.f32 %v7255_v9  ;;  %3237 = vrot.lane.b32.xlu1 %v5064_v4, %s5108_s6 }
 0x2bb   :  { %8434 = vst [vmem:[#allocation42_spill] sm:$0xff] %v7260_v18  ;;  %v2864_v38 = vpop.permute.xlu0 %2863  ;;  %5075 = vtanh.f32 %v7260_v18  ;;  %v2368_v18 = vmul.f32 %v8440_v3, %v8439_v48  ;;  %v8445_v48 = vld [vmem:[#allocation63_spill] sm:$0xff]  ;;  %v8446_v3 = vld [vmem:[#allocation85_spill] sm:$0xff] }
 0x2bc   :  { %v5066_v1 = vpop.eup %5065  ;;  %v7267_v13 = vadd.f32 %v2864_v38, %v2367_v10  ;;  %v2870_v19 = vpop.permute.xlu1 %2869 }
 0x2bd   :  { %3243 = vrot.lane.b32.xlu0 %v5066_v1, %s5108_s6  ;;  %v5068_v8 = vpop.eup %5067  ;;  %v7272_v61 = vadd.f32 %v2870_v19, %v2370_v39  ;;  %v8443_v39 = vld [vmem:[#allocation86_spill] sm:$0xff] }
 0x2be   :  { %8436 = vst [vmem:[#allocation45_spill] sm:$0xff] %v7267_v13  ;;  %5077 = vtanh.f32 %v7267_v13  ;;  %3233 = vrot.lane.b32.xlu1 %v5068_v8, %s5108_s6  ;;  %v2371_v19 = vmul.f32 %v8443_v39, %v8442_v59  ;;  %v8448_v59 = vld [vmem:[#allocation69_spill] sm:$0xff] }
 0x2bf   :  { %8438 = vst [vmem:[#allocation48_spill] sm:$0xff] %v7272_v61  ;;  %v2876_v4 = vpop.permute.xlu0 %2875  ;;  %5079 = vtanh.f32 %v7272_v61  ;;  %v2374_v61 = vmul.f32 %v8446_v3, %v8445_v48  ;;  %v8450_v48 = vld [vmem:[#allocation58_spill] sm:$0xff] }
 0x2c0   :  { %v5070_v9 = vpop.eup %5069  ;;  %v7279_v10 = vadd.f32 %v2876_v4, %v2373_v47  ;;  %v2866_v1 = vpop.permute.xlu1 %2865 }
 0x2c1   :  { %3239 = vrot.lane.b32.xlu0 %v5070_v9, %s5108_s6  ;;  %v5072_v38 = vpop.eup %5071  ;;  %v7284_v7 = vadd.f32 %v2866_v1, %v2368_v18  ;;  %v2377_v18 = vmul.f32 %v6936_v15, %v8448_v59  ;;  %v8452_v59 = vld [vmem:[#allocation64_spill] sm:$0xff] }
 0x2c2   :  { %8441 = vst [vmem:[#allocation43_spill] sm:$0xff] %v7279_v10  ;;  %5081 = vtanh.f32 %v7279_v10  ;;  %3245 = vrot.lane.b32.xlu1 %v5072_v38, %s5108_s6 }
 0x2c3   :  { %8444 = vst [vmem:[#allocation46_spill] sm:$0xff] %v7284_v7  ;;  %v2872_v8 = vpop.permute.xlu0 %2871  ;;  %5083 = vtanh.f32 %v7284_v7  ;;  %v2372_v7 = vmul.f32 %v6942_v50, %v8450_v48  ;;  %v8454_v48 = vld [vmem:[#allocation72_spill] sm:$0xff] }
 0x2c4   :  { %v5074_v13 = vpop.eup %5073  ;;  %v7291_v47 = vadd.f32 %v2872_v8, %v2371_v19  ;;  %v2878_v9 = vpop.permute.xlu1 %2877 }
 0x2c5   :  { %3251 = vrot.lane.b32.xlu0 %v5074_v13, %s5108_s6  ;;  %v5076_v4 = vpop.eup %5075  ;;  %v7296_v1 = vadd.f32 %v2878_v9, %v2374_v61  ;;  %v2375_v61 = vmul.f32 %v6948_v52, %v8452_v59 }
 0x2c6   :  { %8447 = vst [vmem:[#allocation49_spill] sm:$0xff] %v7291_v47  ;;  %5085 = vtanh.f32 %v7291_v47  ;;  %3241 = vrot.lane.b32.xlu1 %v5076_v4, %s5108_s6 }
 0x2c7   :  { %8449 = vst [vmem:[#allocation52_spill] sm:$0xff] %v7296_v1  ;;  %v2884_v38 = vpop.permute.xlu0 %2883  ;;  %5087 = vtanh.f32 %v7296_v1  ;;  %v2378_v1 = vmul.f32 %v6954_v28, %v8454_v48 }
 0x2c8   :  { %v5078_v10 = vpop.eup %5077  ;;  %v7303_v19 = vadd.f32 %v2884_v38, %v2377_v18  ;;  %v2874_v13 = vpop.permute.xlu1 %2873 }
 0x2c9   :  { %3247 = vrot.lane.b32.xlu0 %v5078_v10, %s5108_s6  ;;  %v5080_v8 = vpop.eup %5079  ;;  %v7308_v9 = vadd.f32 %v2874_v13, %v2372_v7 }
 0x2ca   :  { %8451 = vst [vmem:[#allocation47_spill] sm:$0xff] %v7303_v19  ;;  %5089 = vtanh.f32 %v7303_v19  ;;  %3253 = vrot.lane.b32.xlu1 %v5080_v8, %s5108_s6  ;;  %v8457_v8 = vld [vmem:[#allocation67_spill] sm:$0xff] }
 0x2cb   :  { %8453 = vst [vmem:[#allocation50_spill] sm:$0xff] %v7308_v9  ;;  %v2880_v4 = vpop.permute.xlu0 %2879  ;;  %5091 = vtanh.f32 %v7308_v9  ;;  %v2376_v19 = vmul.f32 %v6969_v45, %v8457_v8 }
 0x2cc   :  { %v5082_v47 = vpop.eup %5081  ;;  %v7315_v18 = vadd.f32 %v2880_v4, %v2375_v61  ;;  %v2886_v10 = vpop.permute.xlu1 %2885 }
 0x2cd   :  { %3259 = vrot.lane.b32.xlu0 %v5082_v47, %s5108_s6  ;;  %v5084_v38 = vpop.eup %5083  ;;  %v7318_v59 = vadd.f32 %v2886_v10, %v2378_v1  ;;  %v8459_v10 = vld [vmem:[#allocation75_spill] sm:$0xff] }
 0x2ce   :  { %8455 = vst [vmem:[#allocation53_spill] sm:$0xff] %v7315_v18  ;;  %5093 = vtanh.f32 %v7315_v18  ;;  %3249 = vrot.lane.b32.xlu1 %v5084_v38, %s5108_s6  ;;  %v2381_v38 = vmul.f32 %v6960_v30, %v8459_v10  ;;  %v8461_v10 = vld [vmem:[#allocation76_spill] sm:$0xff] }
 0x2cf   :  { %8456 = vst [vmem:[#allocation60_spill] sm:$0xff] %v7318_v59  ;;  %v2892_v7 = vpop.permute.xlu0 %2891  ;;  %5095 = vtanh.f32 %v7318_v59 }
 0x2d0   :  { %v5086_v13 = vpop.eup %5085  ;;  %v2882_v48 = vpop.permute.xlu1 %2881  ;;  %v7333_v59 = vadd.f32 %v2892_v7, %v2381_v38 }
 0x2d1   :  { %3255 = vrot.lane.b32.xlu0 %v5086_v13, %s5108_s6  ;;  %v5088_v61 = vpop.eup %5087  ;;  %v7326_v4 = vadd.f32 %v2882_v48, %v2376_v19  ;;  %v8460_v48 = vld [vmem:[#allocation73_spill] sm:$0xff] }
 0x2d2   :  { %3261 = vrot.lane.b32.xlu1 %v5088_v61, %s5108_s6  ;;  %v2379_v61 = vmul.f32 %v6975_v14, %v8460_v48  ;;  %v8462_v48 = vld [vmem:[#allocation74_spill] sm:$0xff] }
 0x2d3   :  { %8458 = vst [vmem:[#allocation51_spill] sm:$0xff] %v7326_v4  ;;  %v2888_v47 = vpop.permute.xlu0 %2887  ;;  %5097 = vtanh.f32 %v7326_v4  ;;  %v2382_v4 = vmul.f32 %v6984_v40, %v8461_v10  ;;  %v2380_v14 = vmul.f32 %v6996_v0, %v8462_v48  ;;  %v8463_v10 = vld [vmem:[#allocation89_spill] sm:$0xff] }
 0x2d4   :  { %v5090_v1 = vpop.eup %5089  ;;  %v2894_v18 = vpop.permute.xlu1 %2893  ;;  %5099 = vtanh.f32 %v7333_v59 }
 0x2d5   :  { %3267 = vrot.lane.b32.xlu0 %v5090_v1, %s5108_s6  ;;  %v5092_v8 = vpop.eup %5091  ;;  %v7342_v1 = vadd.f32 %v2888_v47, %v2379_v61 }
 0x2d6   :  { %3257 = vrot.lane.b32.xlu1 %v5092_v8, %s5108_s6  ;;  %v7346_v8 = vadd.f32 %v2894_v18, %v2382_v4 }
 0x2d7   :  { %v3156_v13 = vpop.permute.xlu0 %3155  ;;  %5101 = vtanh.f32 %v7342_v1 }
 0x2d8   :  { %v5094_v19 = vpop.eup %5093  ;;  %v2890_v9 = vpop.permute.xlu1 %2889  ;;  %v3345_v7 = vmul.f32 %v6523_v60, %v3156_v13  ;;  %5103 = vtanh.f32 %v7346_v8 }
 0x2d9   :  { %3263 = vrot.lane.b32.xlu0 %v5094_v19, %s5108_s6  ;;  %v5096_v45 = vpop.eup %5095 }
 0x2da   :  { %3269 = vrot.lane.b32.xlu1 %v5096_v45, %s5108_s6  ;;  %v7355_v45 = vadd.f32 %v2890_v9, %v2380_v14 }
 0x2db   :  { %v3152_v38 = vpop.permute.xlu0 %3151 }
 0x2dc   :  { %v3158_v30 = vpop.permute.xlu1 %3157  ;;  %v3343_v47 = vmul.f32 %v8463_v10, %v3152_v38  ;;  %5105 = vtanh.f32 %v7355_v45 }
 0x2dd   :  { %3475 = vrot.lane.b32.xlu0 %v3345_v7, %s5109_s2  ;;  %v5098_v19 = vpop.eup %5097  ;;  %v3346_v18 = vmul.f32 %v6552_v51, %v3158_v30 }
 0x2de   :  { %3265 = vrot.lane.b32.xlu1 %v5098_v19, %s5108_s6  ;;  %v5100_v61 = vpop.eup %5099 }
 0x2df   :  { %v3164_v60 = vpop.permute.xlu0 %3163 }
 0x2e0   :  { %v3154_v4 = vpop.permute.xlu1 %3153  ;;  %v3349_v30 = vmul.f32 %v6578_v62, %v3164_v60 }
 0x2e1   :  { %3471 = vrot.lane.b32.xlu0 %v3343_v47, %s5109_s2  ;;  %v3344_v7 = vmul.f32 %v6569_v17, %v3154_v4  ;;  %v5102_v9 = vpop.eup %5101  ;;  %v8464_v4 = vld [vmem:[#allocation90_spill] sm:$0xff] }
 0x2e2   :  { %3477 = vrot.lane.b32.xlu1 %v3346_v18, %s5109_s2  ;;  %v5104_v51 = vpop.eup %5103 }
 0x2e3   :  { %v3160_v13 = vpop.permute.xlu0 %3159 }
 0x2e4   :  { %v3166_v38 = vpop.permute.xlu1 %3165  ;;  %v3347_v47 = vmul.f32 %v6588_v43, %v3160_v13 }
 0x2e5   :  { %3275 = vrot.lane.b32.xlu0 %v5100_v61, %s5108_s6  ;;  %v3350_v61 = vmul.f32 %v8464_v4, %v3166_v38  ;;  %v8466_v4 = vld [vmem:[#allocation56_spill] sm:$0xff] }
 0x2e6   :  { %3473 = vrot.lane.b32.xlu1 %v3344_v7, %s5109_s2  ;;  %v5106_v17 = vpop.eup %5105 }
 0x2e7   :  { %v3172_v14 = vpop.permute.xlu0 %3171 }
 0x2e8   :  { %v3162_v19 = vpop.permute.xlu1 %3161 }
 0x2e9   :  { %3271 = vrot.lane.b32.xlu0 %v5102_v9, %s5108_s6  ;;  %v3353_v9 = vmul.f32 %v6613_v6, %v3172_v14  ;;  %v3348_v60 = vmul.f32 %v6607_v33, %v3162_v19 }
 0x2ea   :  { %3277 = vrot.lane.b32.xlu1 %v5104_v51, %s5108_s6 }
 0x2eb   :  { %v3168_v48 = vpop.permute.xlu0 %3167 }
 0x2ec   :  { %v3174_v10 = vpop.permute.xlu1 %3173  ;;  %v3351_v43 = vmul.f32 %v6623_v23, %v3168_v48 }
 0x2ed   :  { %3483 = vrot.lane.b32.xlu0 %v3349_v30, %s5109_s2  ;;  %v3354_v38 = vmul.f32 %v6629_v58, %v3174_v10 }
 0x2ee   :  { %3273 = vrot.lane.b32.xlu1 %v5106_v17, %s5108_s6 }
 0x2ef   :  { %v3180_v18 = vpop.permute.xlu0 %3179 }
 0x2f0   :  { %v3170_v7 = vpop.permute.xlu1 %3169  ;;  %v3357_v6 = vmul.f32 %v6645_v57, %v3180_v18 }
 0x2f1   :  { %3479 = vrot.lane.b32.xlu0 %v3347_v47, %s5109_s2  ;;  %v3352_v33 = vmul.f32 %v6635_v41, %v3170_v7  ;;  %v8465_v47 = vld [vmem:[#allocation54_spill] sm:$0xff]  ;;  %v8467_v7 = vld [vmem:[#allocation59_spill] sm:$0xff] }
 0x2f2   :  { %3485 = vrot.lane.b32.xlu1 %v3350_v61, %s5109_s2 }
 0x2f3   :  { %v3176_v62 = vpop.permute.xlu0 %3175 }
 0x2f4   :  { %v3182_v51 = vpop.permute.xlu1 %3181  ;;  %v3355_v23 = vmul.f32 %v6655_v12, %v3176_v62 }
 0x2f5   :  { %3491 = vrot.lane.b32.xlu0 %v3353_v9, %s5109_s2  ;;  %v3358_v58 = vmul.f32 %v6664_v2, %v3182_v51 }
 0x2f6   :  { %3481 = vrot.lane.b32.xlu1 %v3348_v60, %s5109_s2 }
 0x2f7   :  { %v3188_v13 = vpop.permute.xlu0 %3187 }
 0x2f8   :  { %v3178_v30 = vpop.permute.xlu1 %3177  ;;  %v3361_v57 = vmul.f32 %v6670_v44, %v3188_v13 }
 0x2f9   :  { %3487 = vrot.lane.b32.xlu0 %v3351_v43, %s5109_s2  ;;  %v3356_v41 = vmul.f32 %v8465_v47, %v3178_v30 }
 0x2fa   :  { %3493 = vrot.lane.b32.xlu1 %v3354_v38, %s5109_s2 }
 0x2fb   :  { %v3184_v14 = vpop.permute.xlu0 %3183 }
 0x2fc   :  { %v3190_v19 = vpop.permute.xlu1 %3189  ;;  %v3359_v12 = vmul.f32 %v8466_v4, %v3184_v14 }
 0x2fd   :  { %3499 = vrot.lane.b32.xlu0 %v3357_v6, %s5109_s2  ;;  %v3362_v2 = vmul.f32 %v8467_v7, %v3190_v19 }
 0x2fe   :  { %3489 = vrot.lane.b32.xlu1 %v3352_v33, %s5109_s2 }
 0x2ff   :  { %v3196_v48 = vpop.permute.xlu0 %3195 }
 0x300   :  { %v3186_v10 = vpop.permute.xlu1 %3185  ;;  %v3365_v44 = vmul.f32 %v8366_v5, %v3196_v48  ;;  %v8468_v48 = vld [vmem:[#allocation62_spill] sm:$0xff] }
 0x301   :  { %3495 = vrot.lane.b32.xlu0 %v3355_v23, %s5109_s2  ;;  %v3360_v60 = vmul.f32 %v8369_v20, %v3186_v10  ;;  %v8469_v10 = vld [vmem:[#allocation66_spill] sm:$0xff] }
 0x302   :  { %3501 = vrot.lane.b32.xlu1 %v3358_v58, %s5109_s2 }
 0x303   :  { %v3192_v17 = vpop.permute.xlu0 %3191 }
 0x304   :  { %v3198_v18 = vpop.permute.xlu1 %3197  ;;  %v3363_v43 = vmul.f32 %v6710_v46, %v3192_v17 }
 0x305   :  { %3507 = vrot.lane.b32.xlu0 %v3361_v57, %s5109_s2  ;;  %v3366_v38 = vmul.f32 %v6716_v21, %v3198_v18 }
 0x306   :  { %3497 = vrot.lane.b32.xlu1 %v3356_v41, %s5109_s2  ;;  %v8470_v41 = vld [vmem:[#allocation70_spill] sm:$0xff] }
 0x307   :  { %v3204_v61 = vpop.permute.xlu0 %3203 }
 0x308   :  { %v3194_v9 = vpop.permute.xlu1 %3193  ;;  %v3369_v5 = vmul.f32 %v6733_v22, %v3204_v61 }
 0x309   :  { %3503 = vrot.lane.b32.xlu0 %v3359_v12, %s5109_s2  ;;  %v3364_v20 = vmul.f32 %v6722_v37, %v3194_v9  ;;  %v8471_v9 = vld [vmem:[#allocation77_spill] sm:$0xff] }
 0x30a   :  { %3509 = vrot.lane.b32.xlu1 %v3362_v2, %s5109_s2 }
 0x30b   :  { %v3200_v62 = vpop.permute.xlu0 %3199 }
 0x30c   :  { %v3206_v51 = vpop.permute.xlu1 %3205  ;;  %v3367_v46 = vmul.f32 %v6739_v24, %v3200_v62 }
 0x30d   :  { %3515 = vrot.lane.b32.xlu0 %v3365_v44, %s5109_s2  ;;  %v3370_v21 = vmul.f32 %v6745_v56, %v3206_v51 }
 0x30e   :  { %3505 = vrot.lane.b32.xlu1 %v3360_v60, %s5109_s2  ;;  %v8472_v60 = vld [vmem:[#allocation78_spill] sm:$0xff] }
 0x30f   :  { %v3212_v13 = vpop.permute.xlu0 %3211 }
 0x310   :  { %v3202_v30 = vpop.permute.xlu1 %3201  ;;  %v3373_v22 = vmul.f32 %v6761_v26, %v3212_v13 }
 0x311   :  { %3511 = vrot.lane.b32.xlu0 %v3363_v43, %s5109_s2  ;;  %v3368_v37 = vmul.f32 %v8468_v48, %v3202_v30  ;;  %v8473_v43 = vld [vmem:[#allocation80_spill] sm:$0xff] }
 0x312   :  { %3517 = vrot.lane.b32.xlu1 %v3366_v38, %s5109_s2 }
 0x313   :  { %v3208_v6 = vpop.permute.xlu0 %3207 }
 0x314   :  { %v3214_v14 = vpop.permute.xlu1 %3213  ;;  %v3371_v24 = vmul.f32 %v8469_v10, %v3208_v6 }
 0x315   :  { %3523 = vrot.lane.b32.xlu0 %v3369_v5, %s5109_s2  ;;  %v3374_v56 = vmul.f32 %v8390_v54, %v3214_v14 }
 0x316   :  { %3513 = vrot.lane.b32.xlu1 %v3364_v20, %s5109_s2 }
 0x317   :  { %v3220_v33 = vpop.permute.xlu0 %3219 }
 0x318   :  { %v3210_v19 = vpop.permute.xlu1 %3209  ;;  %v3377_v26 = vmul.f32 %v8393_v25, %v3220_v33 }
 0x319   :  { %3519 = vrot.lane.b32.xlu0 %v3367_v46, %s5109_s2  ;;  %v3372_v18 = vmul.f32 %v8470_v41, %v3210_v19 }
 0x31a   :  { %3525 = vrot.lane.b32.xlu1 %v3370_v21, %s5109_s2 }
 0x31b   :  { %v3216_v23 = vpop.permute.xlu0 %3215 }
 0x31c   :  { %v3222_v58 = vpop.permute.xlu1 %3221  ;;  %v3375_v12 = vmul.f32 %v6802_v34, %v3216_v23 }
 0x31d   :  { %3531 = vrot.lane.b32.xlu0 %v3373_v22, %s5109_s2  ;;  %v3378_v54 = vmul.f32 %v8400_v27, %v3222_v58  ;;  %v8474_v58 = vld [vmem:[#allocation82_spill] sm:$0xff] }
 0x31e   :  { %3521 = vrot.lane.b32.xlu1 %v3368_v37, %s5109_s2 }
 0x31f   :  { %v3228_v57 = vpop.permute.xlu0 %3227 }
 0x320   :  { %v3218_v17 = vpop.permute.xlu1 %3217  ;;  %v3381_v25 = vmul.f32 %v6818_v16, %v3228_v57 }
 0x321   :  { %3527 = vrot.lane.b32.xlu0 %v3371_v24, %s5109_s2  ;;  %v3376_v44 = vmul.f32 %v8471_v9, %v3218_v17  ;;  %v8475_v24 = vld [vmem:[#allocation83_spill] sm:$0xff] }
 0x322   :  { %3533 = vrot.lane.b32.xlu1 %v3374_v56, %s5109_s2  ;;  %v8476_v56 = vld [vmem:[#allocation84_spill] sm:$0xff]  ;;  %v8481_v9 = vld [vmem:[#allocation91_spill] sm:$0xff] }
 0x323   :  { %v3224_v47 = vpop.permute.xlu0 %3223 }
 0x324   :  { %v3230_v4 = vpop.permute.xlu1 %3229  ;;  %v3379_v34 = vmul.f32 %v8472_v60, %v3224_v47 }
 0x325   :  { %3539 = vrot.lane.b32.xlu0 %v3377_v26, %s5109_s2  ;;  %v3382_v27 = vmul.f32 %v8473_v43, %v3230_v4 }
 0x326   :  { %3529 = vrot.lane.b32.xlu1 %v3372_v18, %s5109_s2  ;;  %v8477_v18 = vld [vmem:[#allocation87_spill] sm:$0xff] }
 0x327   :  { %v3236_v61 = vpop.permute.xlu0 %3235 }
 0x328   :  { %v3226_v7 = vpop.permute.xlu1 %3225  ;;  %v3385_v16 = vmul.f32 %v8412_v55, %v3236_v61  ;;  %v8478_v61 = vld [vmem:[#allocation3_spill] sm:$0xff] }
 0x329   :  { %3535 = vrot.lane.b32.xlu0 %v3375_v12, %s5109_s2  ;;  %v3380_v30 = vmul.f32 %v8415_v49, %v3226_v7 }
 0x32a   :  { %3541 = vrot.lane.b32.xlu1 %v3378_v54, %s5109_s2  ;;  %v8479_v54 = vld [vmem:[#allocation5_spill] sm:$0xff] }
 0x32b   :  { %v3232_v2 = vpop.permute.xlu0 %3231 }
 0x32c   :  { %v3238_v62 = vpop.permute.xlu1 %3237  ;;  %v3383_v6 = vmul.f32 %v6854_v32, %v3232_v2 }
 0x32d   :  { %3547 = vrot.lane.b32.xlu0 %v3381_v25, %s5109_s2  ;;  %v3386_v14 = vmul.f32 %v6864_v31, %v3238_v62 }
 0x32e   :  { %3537 = vrot.lane.b32.xlu1 %v3376_v44, %s5109_s2 }
 0x32f   :  { %v3244_v51 = vpop.permute.xlu0 %3243 }
 0x330   :  { %v3234_v13 = vpop.permute.xlu1 %3233  ;;  %v3389_v55 = vmul.f32 %v6876_v29, %v3244_v51  ;;  %v8483_v51 = vld [vmem:[#allocation88_spill] sm:$0xff] }
 0x331   :  { %3543 = vrot.lane.b32.xlu0 %v3379_v34, %s5109_s2  ;;  %v3384_v49 = vmul.f32 %v6870_v35, %v3234_v13  ;;  %v8484_v13 = vld [vmem:[#allocation8_spill] sm:$0xff] }
 0x332   :  { %3549 = vrot.lane.b32.xlu1 %v3382_v27, %s5109_s2 }
 0x333   :  { %v3240_v38 = vpop.permute.xlu0 %3239 }
 0x334   :  { %v3246_v5 = vpop.permute.xlu1 %3245  ;;  %v3387_v32 = vmul.f32 %v6884_v63, %v3240_v38 }
 0x335   :  { %3555 = vrot.lane.b32.xlu0 %v3385_v16, %s5109_s2  ;;  %v3390_v31 = vmul.f32 %v6890_v11, %v3246_v5  ;;  %v8485_v5 = vld [vmem:[#allocation6_spill] sm:$0xff] }
 0x336   :  { %3545 = vrot.lane.b32.xlu1 %v3380_v30, %s5109_s2 }
 0x337   :  { %v3252_v20 = vpop.permute.xlu0 %3251 }
 0x338   :  { %v3242_v46 = vpop.permute.xlu1 %3241  ;;  %v3393_v29 = vmul.f32 %v6900_v36, %v3252_v20 }
 0x339   :  { %3551 = vrot.lane.b32.xlu0 %v3383_v6, %s5109_s2  ;;  %v3388_v35 = vmul.f32 %v6905_v53, %v3242_v46  ;;  %v8488_v46 = vld [vmem:[#allocation7_spill] sm:$0xff] }
 0x33a   :  { %3557 = vrot.lane.b32.xlu1 %v3386_v14, %s5109_s2  ;;  %v8487_v14 = vld [vmem:[#allocation12_spill] sm:$0xff] }
 0x33b   :  { %v3248_v33 = vpop.permute.xlu0 %3247 }
 0x33c   :  { %v3254_v21 = vpop.permute.xlu1 %3253  ;;  %v3391_v63 = vmul.f32 %v6911_v42, %v3248_v33 }
 0x33d   :  { %3563 = vrot.lane.b32.xlu0 %v3389_v55, %s5109_s2  ;;  %v3394_v11 = vmul.f32 %v8474_v58, %v3254_v21  ;;  %v8490_v21 = vld [vmem:[#allocation13_spill] sm:$0xff]  ;;  %v8495_v58 = vld [vmem:[#allocation20_spill] sm:$0xff] }
 0x33e   :  { %3553 = vrot.lane.b32.xlu1 %v3384_v49, %s5109_s2  ;;  %v8489_v49 = vld [vmem:[#allocation10_spill] sm:$0xff] }
 0x33f   :  { %v3260_v19 = vpop.permute.xlu0 %3259 }
 0x340   :  { %v3250_v22 = vpop.permute.xlu1 %3249  ;;  %v3397_v36 = vmul.f32 %v8475_v24, %v3260_v19 }
 0x341   :  { %3559 = vrot.lane.b32.xlu0 %v3387_v32, %s5109_s2  ;;  %v3392_v53 = vmul.f32 %v8476_v56, %v3250_v22  ;;  %v8492_v22 = vld [vmem:[#allocation11_spill] sm:$0xff] }
 0x342   :  { %3565 = vrot.lane.b32.xlu1 %v3390_v31, %s5109_s2  ;;  %v8491_v31 = vld [vmem:[#allocation16_spill] sm:$0xff] }
 0x343   :  { %v3256_v23 = vpop.permute.xlu0 %3255 }
 0x344   :  { %v3262_v48 = vpop.permute.xlu1 %3261  ;;  %v3395_v42 = vmul.f32 %v8443_v39, %v3256_v23 }
 0x345   :  { %3571 = vrot.lane.b32.xlu0 %v3393_v29, %s5109_s2  ;;  %v3398_v47 = vmul.f32 %v8446_v3, %v3262_v48  ;;  %v8494_v48 = vld [vmem:[#allocation17_spill] sm:$0xff] }
 0x346   :  { %3561 = vrot.lane.b32.xlu1 %v3388_v35, %s5109_s2  ;;  %v8493_v35 = vld [vmem:[#allocation14_spill] sm:$0xff] }
 0x347   :  { %v3268_v37 = vpop.permute.xlu0 %3267 }
 0x348   :  { %v3258_v10 = vpop.permute.xlu1 %3257  ;;  %v3401_v39 = vmul.f32 %v6936_v15, %v3268_v37 }
 0x349   :  { %3567 = vrot.lane.b32.xlu0 %v3391_v63, %s5109_s2  ;;  %v3396_v3 = vmul.f32 %v6942_v50, %v3258_v10 }
 0x34a   :  { %3573 = vrot.lane.b32.xlu1 %v3394_v11, %s5109_s2  ;;  %v8496_v11 = vld [vmem:[#allocation15_spill] sm:$0xff] }
 0x34b   :  { %v3264_v57 = vpop.permute.xlu0 %3263 }
 0x34c   :  { %v3270_v17 = vpop.permute.xlu1 %3269  ;;  %v3399_v15 = vmul.f32 %v6948_v52, %v3264_v57  ;;  %v8480_v52 = vld [vmem:[#allocation4_spill] sm:$0xff]  ;;  %v8498_v57 = vld [vmem:[#allocation21_spill] sm:$0xff] }
 0x34d   :  { %3579 = vrot.lane.b32.xlu0 %v3397_v36, %s5109_s2  ;;  %v3402_v7 = vmul.f32 %v6954_v28, %v3270_v17  ;;  %v8482_v28 = vld [vmem:[#allocation2_spill] sm:$0xff]  ;;  %v8499_v17 = vld [vmem:[#allocation24_spill] sm:$0xff] }
 0x34e   :  { %3569 = vrot.lane.b32.xlu1 %v3392_v53, %s5109_s2  ;;  %v8497_v36 = vld [vmem:[#allocation18_spill] sm:$0xff] }
 0x34f   :  { %v3476_v26 = vpop.permute.xlu0 %3475 }
 0x350   :  { %3666 = vst.msk [vmem:[%s8067_s4 + $0x10] sm:$0xff] %vm3663_vm1, %v3476_v26  ;;  %v3266_v41 = vpop.permute.xlu1 %3265 }
 0x351   :  { %3731 = vst.msk [vmem:[%s8067_s4 + $0x10] sm:$0xff] %vm3728_vm2, %v8477_v18  ;;  %3575 = vrot.lane.b32.xlu0 %v3395_v42, %s5109_s2  ;;  %v3400_v62 = vmul.f32 %v8482_v28, %v3266_v41  ;;  %v8500_v42 = vld [vmem:[#allocation57_spill] sm:$0xff]  ;;  %v8501_v41 = vld [vmem:[#allocation19_spill] sm:$0xff]  ;;  %v8509_v28 = vld [vmem:[#allocation32_spill] sm:$0xff] }
 0x352   :  { %3581 = vrot.lane.b32.xlu1 %v3398_v47, %s5109_s2  ;;  %v8502_v18 = vld [vmem:[#allocation61_spill] sm:$0xff] }
 0x353   :  { %v3472_v4 = vpop.permute.xlu0 %3471 }
 0x354   :  { %3664 = vst.msk [vmem:[%s8067_s4] sm:$0xff] %vm3663_vm1, %v3472_v4  ;;  %v3478_v12 = vpop.permute.xlu1 %3477 }
 0x355   :  { %3729 = vst.msk [vmem:[%s8067_s4] sm:$0xff] %vm3728_vm2, %v8478_v61  ;;  %3587 = vrot.lane.b32.xlu0 %v3401_v39, %s5109_s2 }
 0x356   :  { %3667 = vst.msk [vmem:[%s8067_s4 + $0x18] sm:$0xff] %vm3663_vm1, %v3478_v12  ;;  %3577 = vrot.lane.b32.xlu1 %v3396_v3, %s5109_s2  ;;  %v8503_v3 = vld [vmem:[#allocation22_spill] sm:$0xff]  ;;  %v8504_v12 = vld [vmem:[#allocation25_spill] sm:$0xff] }
 0x357   :  { %3732 = vst.msk [vmem:[%s8067_s4 + $0x18] sm:$0xff] %vm3728_vm2, %v8479_v54  ;;  %v3276_v50 = vpop.permute.xlu0 %3275  ;;  %v8505_v54 = vld [vmem:[#allocation28_spill] sm:$0xff] }
 0x358   :  { %v3474_v25 = vpop.permute.xlu1 %3473  ;;  %v3405_v43 = vmul.f32 %v8483_v51, %v3276_v50  ;;  %v8506_v50 = vld [vmem:[#allocation23_spill] sm:$0xff]  ;;  %v8511_v51 = vld [vmem:[#allocation30_spill] sm:$0xff] }
 0x359   :  { %3583 = vrot.lane.b32.xlu0 %v3399_v15, %s5109_s2  ;;  %3665 = vst.msk [vmem:[%s8067_s4 + $0x8] sm:$0xff] %vm3663_vm1, %v3474_v25 }
 0x35a   :  { %3730 = vst.msk [vmem:[%s8067_s4 + $0x8] sm:$0xff] %vm3728_vm2, %v8480_v52  ;;  %3589 = vrot.lane.b32.xlu1 %v3402_v7, %s5109_s2  ;;  %v8507_v52 = vld [vmem:[#allocation26_spill] sm:$0xff] }
 0x35b   :  { %v3272_v2 = vpop.permute.xlu0 %3271 }
 0x35c   :  { %v3403_v44 = vmul.f32 %v8481_v9, %v3272_v2  ;;  %v3278_v60 = vpop.permute.xlu1 %3277  ;;  %v8508_v2 = vld [vmem:[#allocation29_spill] sm:$0xff] }
 0x35d   :  { %v3406_v6 = vmul.f32 %v6984_v40, %v3278_v60 }
 0x35e   :  { %3591 = vrot.lane.b32.xlu0 %v3403_v44, %s5109_s2  ;;  %3585 = vrot.lane.b32.xlu1 %v3400_v62, %s5109_s2  ;;  %v8510_v62 = vld [vmem:[#allocation27_spill] sm:$0xff] }
 0x35f   :  { %v3484_v34 = vpop.permute.xlu0 %3483 }
 0x360   :  { %3670 = vst.msk [vmem:[%s8067_s4 + $0x30] sm:$0xff] %vm3663_vm1, %v3484_v34  ;;  %v3274_v27 = vpop.permute.xlu1 %3273 }
 0x361   :  { %3735 = vst.msk [vmem:[%s8067_s4 + $0x30] sm:$0xff] %vm3728_vm2, %v8484_v13  ;;  %v3404_v16 = vmul.f32 %v6996_v0, %v3274_v27  ;;  %v8486_v0 = vld [vmem:[#allocation9_spill] sm:$0xff] }
 0x362   :  { %3595 = vrot.lane.b32.xlu0 %v3405_v43, %s5109_s2  ;;  %v8512_v43 = vld [vmem:[#allocation33_spill] sm:$0xff] }
 0x363   :  { %v3480_v38 = vpop.permute.xlu0 %3479  ;;  %3593 = vrot.lane.b32.xlu1 %v3404_v16, %s5109_s2  ;;  %v8513_v16 = vld [vmem:[#allocation65_spill] sm:$0xff] }
 0x364   :  { %3668 = vst.msk [vmem:[%s8067_s4 + $0x20] sm:$0xff] %vm3663_vm1, %v3480_v38  ;;  %v3486_v30 = vpop.permute.xlu1 %3485  ;;  %v8514_v38 = vld [vmem:[#allocation36_spill] sm:$0xff] }
 0x365   :  { %3733 = vst.msk [vmem:[%s8067_s4 + $0x20] sm:$0xff] %vm3728_vm2, %v8485_v5 }
 0x366   :  { %3671 = vst.msk [vmem:[%s8067_s4 + $0x38] sm:$0xff] %vm3663_vm1, %v3486_v30 }
 0x367   :  { %3736 = vst.msk [vmem:[%s8067_s4 + $0x38] sm:$0xff] %vm3728_vm2, %v8486_v0  ;;  %v3492_v20 = vpop.permute.xlu0 %3491  ;;  %3597 = vrot.lane.b32.xlu1 %v3406_v6, %s5109_s2  ;;  %v8515_v6 = vld [vmem:[#allocation68_spill] sm:$0xff]  ;;  %v8516_v0 = vld [vmem:[#allocation31_spill] sm:$0xff] }
 0x368   :  { %3674 = vst.msk [vmem:[%s8067_s4 + $0x50] sm:$0xff] %vm3663_vm1, %v3492_v20  ;;  %v3482_v40 = vpop.permute.xlu1 %3481 }
 0x369   :  { %3739 = vst.msk [vmem:[%s8067_s4 + $0x50] sm:$0xff] %vm3728_vm2, %v8487_v14  ;;  %v8517_v14 = vld [vmem:[#allocation34_spill] sm:$0xff] }
 0x36a   :  { %3669 = vst.msk [vmem:[%s8067_s4 + $0x28] sm:$0xff] %vm3663_vm1, %v3482_v40 }
 0x36b   :  { %3734 = vst.msk [vmem:[%s8067_s4 + $0x28] sm:$0xff] %vm3728_vm2, %v8488_v46  ;;  %v3488_v55 = vpop.permute.xlu0 %3487  ;;  %v8518_v46 = vld [vmem:[#allocation37_spill] sm:$0xff] }
 0x36c   :  { %3672 = vst.msk [vmem:[%s8067_s4 + $0x40] sm:$0xff] %vm3663_vm1, %v3488_v55  ;;  %v3494_v33 = vpop.permute.xlu1 %3493 }
 0x36d   :  { %3737 = vst.msk [vmem:[%s8067_s4 + $0x40] sm:$0xff] %vm3728_vm2, %v8489_v49  ;;  %v8519_v49 = vld [vmem:[#allocation71_spill] sm:$0xff] }
 0x36e   :  { %3675 = vst.msk [vmem:[%s8067_s4 + $0x58] sm:$0xff] %vm3663_vm1, %v3494_v33 }
 0x36f   :  { %3740 = vst.msk [vmem:[%s8067_s4 + $0x58] sm:$0xff] %vm3728_vm2, %v8490_v21  ;;  %v3500_v32 = vpop.permute.xlu0 %3499  ;;  %v8520_v21 = vld [vmem:[#allocation40_spill] sm:$0xff] }
 0x370   :  { %3678 = vst.msk [vmem:[%s8067_s4 + $0x70] sm:$0xff] %vm3663_vm1, %v3500_v32  ;;  %v3490_v19 = vpop.permute.xlu1 %3489 }
 0x371   :  { %3743 = vst.msk [vmem:[%s8067_s4 + $0x70] sm:$0xff] %vm3728_vm2, %v8491_v31  ;;  %v8521_v31 = vld [vmem:[#allocation35_spill] sm:$0xff] }
 0x372   :  { %3673 = vst.msk [vmem:[%s8067_s4 + $0x48] sm:$0xff] %vm3663_vm1, %v3490_v19 }
 0x373   :  { %3738 = vst.msk [vmem:[%s8067_s4 + $0x48] sm:$0xff] %vm3728_vm2, %v8492_v22  ;;  %v3496_v29 = vpop.permute.xlu0 %3495  ;;  %v8522_v22 = vld [vmem:[#allocation38_spill] sm:$0xff] }
 0x374   :  { %3676 = vst.msk [vmem:[%s8067_s4 + $0x60] sm:$0xff] %vm3663_vm1, %v3496_v29  ;;  %v3502_v23 = vpop.permute.xlu1 %3501 }
 0x375   :  { %3741 = vst.msk [vmem:[%s8067_s4 + $0x60] sm:$0xff] %vm3728_vm2, %v8493_v35  ;;  %v8523_v35 = vld [vmem:[#allocation41_spill] sm:$0xff] }
 0x376   :  { %3679 = vst.msk [vmem:[%s8067_s4 + $0x78] sm:$0xff] %vm3663_vm1, %v3502_v23 }
 0x377   :  { %3744 = vst.msk [vmem:[%s8067_s4 + $0x78] sm:$0xff] %vm3728_vm2, %v8494_v48  ;;  %v3508_v63 = vpop.permute.xlu0 %3507  ;;  %v8524_v48 = vld [vmem:[#allocation44_spill] sm:$0xff] }
 0x378   :  { %3682 = vst.msk [vmem:[%s8067_s4 + $0x90] sm:$0xff] %vm3663_vm1, %v3508_v63  ;;  %v3498_v37 = vpop.permute.xlu1 %3497 }
 0x379   :  { %3747 = vst.msk [vmem:[%s8067_s4 + $0x90] sm:$0xff] %vm3728_vm2, %v8495_v58  ;;  %v8525_v58 = vld [vmem:[#allocation81_spill] sm:$0xff] }
 0x37a   :  { %3677 = vst.msk [vmem:[%s8067_s4 + $0x68] sm:$0xff] %vm3663_vm1, %v3498_v37 }
 0x37b   :  { %3742 = vst.msk [vmem:[%s8067_s4 + $0x68] sm:$0xff] %vm3728_vm2, %v8496_v11  ;;  %v3504_v10 = vpop.permute.xlu0 %3503  ;;  %v8526_v11 = vld [vmem:[#allocation39_spill] sm:$0xff] }
 0x37c   :  { %3680 = vst.msk [vmem:[%s8067_s4 + $0x80] sm:$0xff] %vm3663_vm1, %v3504_v10  ;;  %v3510_v24 = vpop.permute.xlu1 %3509 }
 0x37d   :  { %3745 = vst.msk [vmem:[%s8067_s4 + $0x80] sm:$0xff] %vm3728_vm2, %v8497_v36  ;;  %v8527_v36 = vld [vmem:[#allocation79_spill] sm:$0xff] }
 0x37e   :  { %3683 = vst.msk [vmem:[%s8067_s4 + $0x98] sm:$0xff] %vm3663_vm1, %v3510_v24 }
 0x37f   :  { %3748 = vst.msk [vmem:[%s8067_s4 + $0x98] sm:$0xff] %vm3728_vm2, %v8498_v57  ;;  %v3516_v56 = vpop.permute.xlu0 %3515  ;;  %v8528_v57 = vld [vmem:[#allocation42_spill] sm:$0xff] }
 0x380   :  { %3686 = vst.msk [vmem:[%s8067_s4 + $0xb0] sm:$0xff] %vm3663_vm1, %v3516_v56  ;;  %v3506_v53 = vpop.permute.xlu1 %3505 }
 0x381   :  { %3751 = vst.msk [vmem:[%s8067_s4 + $0xb0] sm:$0xff] %vm3728_vm2, %v8499_v17  ;;  %v8529_v17 = vld [vmem:[#allocation45_spill] sm:$0xff] }
 0x382   :  { %3681 = vst.msk [vmem:[%s8067_s4 + $0x88] sm:$0xff] %vm3663_vm1, %v3506_v53 }
 0x383   :  { %3746 = vst.msk [vmem:[%s8067_s4 + $0x88] sm:$0xff] %vm3728_vm2, %v8500_v42  ;;  %v3512_v26 = vpop.permute.xlu0 %3511  ;;  %v8530_v42 = vld [vmem:[#allocation48_spill] sm:$0xff] }
 0x384   :  { %3684 = vst.msk [vmem:[%s8067_s4 + $0xa0] sm:$0xff] %vm3663_vm1, %v3512_v26  ;;  %v3518_v47 = vpop.permute.xlu1 %3517 }
 0x385   :  { %3749 = vst.msk [vmem:[%s8067_s4 + $0xa0] sm:$0xff] %vm3728_vm2, %v8501_v41  ;;  %v8531_v41 = vld [vmem:[#allocation43_spill] sm:$0xff] }
 0x386   :  { %3687 = vst.msk [vmem:[%s8067_s4 + $0xb8] sm:$0xff] %vm3663_vm1, %v3518_v47 }
 0x387   :  { %3752 = vst.msk [vmem:[%s8067_s4 + $0xb8] sm:$0xff] %vm3728_vm2, %v8502_v18  ;;  %v3524_v39 = vpop.permute.xlu0 %3523  ;;  %v8532_v18 = vld [vmem:[#allocation46_spill] sm:$0xff] }
 0x388   :  { %3690 = vst.msk [vmem:[%s8067_s4 + $0xd0] sm:$0xff] %vm3663_vm1, %v3524_v39  ;;  %v3514_v4 = vpop.permute.xlu1 %3513 }
 0x389   :  { %3755 = vst.msk [vmem:[%s8067_s4 + $0xd0] sm:$0xff] %vm3728_vm2, %v8503_v3  ;;  %v8533_v3 = vld [vmem:[#allocation49_spill] sm:$0xff] }
 0x38a   :  { %3685 = vst.msk [vmem:[%s8067_s4 + $0xa8] sm:$0xff] %vm3663_vm1, %v3514_v4 }
 0x38b   :  { %3750 = vst.msk [vmem:[%s8067_s4 + $0xa8] sm:$0xff] %vm3728_vm2, %v8504_v12  ;;  %v3520_v61 = vpop.permute.xlu0 %3519  ;;  %v8534_v12 = vld [vmem:[#allocation52_spill] sm:$0xff] }
 0x38c   :  { %3688 = vst.msk [vmem:[%s8067_s4 + $0xc0] sm:$0xff] %vm3663_vm1, %v3520_v61  ;;  %v3526_v15 = vpop.permute.xlu1 %3525 }
 0x38d   :  { %3753 = vst.msk [vmem:[%s8067_s4 + $0xc0] sm:$0xff] %vm3728_vm2, %v8505_v54  ;;  %v8535_v54 = vld [vmem:[#allocation47_spill] sm:$0xff] }
 0x38e   :  { %3691 = vst.msk [vmem:[%s8067_s4 + $0xd8] sm:$0xff] %vm3663_vm1, %v3526_v15 }
 0x38f   :  { %3756 = vst.msk [vmem:[%s8067_s4 + $0xd8] sm:$0xff] %vm3728_vm2, %v8506_v50  ;;  %v3532_v7 = vpop.permute.xlu0 %3531  ;;  %v8536_v50 = vld [vmem:[#allocation50_spill] sm:$0xff] }
 0x390   :  { %3694 = vst.msk [vmem:[%s8067_s4 + $0xf0] sm:$0xff] %vm3663_vm1, %v3532_v7  ;;  %v3522_v25 = vpop.permute.xlu1 %3521 }
 0x391   :  { %3759 = vst.msk [vmem:[%s8067_s4 + $0xf0] sm:$0xff] %vm3728_vm2, %v8507_v52  ;;  %v8537_v52 = vld [vmem:[#allocation53_spill] sm:$0xff] }
 0x392   :  { %3689 = vst.msk [vmem:[%s8067_s4 + $0xc8] sm:$0xff] %vm3663_vm1, %v3522_v25 }
 0x393   :  { %3754 = vst.msk [vmem:[%s8067_s4 + $0xc8] sm:$0xff] %vm3728_vm2, %v8508_v2  ;;  %v3528_v9 = vpop.permute.xlu0 %3527  ;;  %v8538_v2 = vld [vmem:[#allocation60_spill] sm:$0xff] }
 0x394   :  { %3692 = vst.msk [vmem:[%s8067_s4 + $0xe0] sm:$0xff] %vm3663_vm1, %v3528_v9  ;;  %v3534_v44 = vpop.permute.xlu1 %3533 }
 0x395   :  { %3757 = vst.msk [vmem:[%s8067_s4 + $0xe0] sm:$0xff] %vm3728_vm2, %v8509_v28  ;;  %v8539_v28 = vld [vmem:[#allocation51_spill] sm:$0xff] }
 0x396   :  { %3695 = vst.msk [vmem:[%s8067_s4 + $0xf8] sm:$0xff] %vm3663_vm1, %v3534_v44 }
 0x397   :  { %3760 = vst.msk [vmem:[%s8067_s4 + $0xf8] sm:$0xff] %vm3728_vm2, %v8510_v62  ;;  %v3540_v60 = vpop.permute.xlu0 %3539 }
 0x398   :  { %3698 = vst.msk [vmem:[%s8067_s4 + $0x110] sm:$0xff] %vm3663_vm1, %v3540_v60  ;;  %v3530_v34 = vpop.permute.xlu1 %3529 }
 0x399   :  { %3763 = vst.msk [vmem:[%s8067_s4 + $0x110] sm:$0xff] %vm3728_vm2, %v8511_v51 }
 0x39a   :  { %3693 = vst.msk [vmem:[%s8067_s4 + $0xe8] sm:$0xff] %vm3663_vm1, %v3530_v34 }
 0x39b   :  { %3758 = vst.msk [vmem:[%s8067_s4 + $0xe8] sm:$0xff] %vm3728_vm2, %v8512_v43  ;;  %v3536_v27 = vpop.permute.xlu0 %3535 }
 0x39c   :  { %3696 = vst.msk [vmem:[%s8067_s4 + $0x100] sm:$0xff] %vm3663_vm1, %v3536_v27  ;;  %v3542_v13 = vpop.permute.xlu1 %3541 }
 0x39d   :  { %3761 = vst.msk [vmem:[%s8067_s4 + $0x100] sm:$0xff] %vm3728_vm2, %v8513_v16 }
 0x39e   :  { %3699 = vst.msk [vmem:[%s8067_s4 + $0x118] sm:$0xff] %vm3663_vm1, %v3542_v13 }
 0x39f   :  { %3764 = vst.msk [vmem:[%s8067_s4 + $0x118] sm:$0xff] %vm3728_vm2, %v8514_v38  ;;  %v3548_v30 = vpop.permute.xlu0 %3547 }
 0x3a0   :  { %3702 = vst.msk [vmem:[%s8067_s4 + $0x130] sm:$0xff] %vm3663_vm1, %v3548_v30  ;;  %v3538_v5 = vpop.permute.xlu1 %3537 }
 0x3a1   :  { %3767 = vst.msk [vmem:[%s8067_s4 + $0x130] sm:$0xff] %vm3728_vm2, %v8515_v6 }
 0x3a2   :  { %3697 = vst.msk [vmem:[%s8067_s4 + $0x108] sm:$0xff] %vm3663_vm1, %v3538_v5 }
 0x3a3   :  { %3762 = vst.msk [vmem:[%s8067_s4 + $0x108] sm:$0xff] %vm3728_vm2, %v8516_v0  ;;  %v3544_v20 = vpop.permute.xlu0 %3543 }
 0x3a4   :  { %3700 = vst.msk [vmem:[%s8067_s4 + $0x120] sm:$0xff] %vm3663_vm1, %v3544_v20  ;;  %v3550_v40 = vpop.permute.xlu1 %3549 }
 0x3a5   :  { %3765 = vst.msk [vmem:[%s8067_s4 + $0x120] sm:$0xff] %vm3728_vm2, %v8517_v14 }
 0x3a6   :  { %3703 = vst.msk [vmem:[%s8067_s4 + $0x138] sm:$0xff] %vm3663_vm1, %v3550_v40 }
 0x3a7   :  { %3768 = vst.msk [vmem:[%s8067_s4 + $0x138] sm:$0xff] %vm3728_vm2, %v8518_v46  ;;  %v3556_v55 = vpop.permute.xlu0 %3555 }
 0x3a8   :  { %3706 = vst.msk [vmem:[%s8067_s4 + $0x150] sm:$0xff] %vm3663_vm1, %v3556_v55  ;;  %v3546_v33 = vpop.permute.xlu1 %3545 }
 0x3a9   :  { %3771 = vst.msk [vmem:[%s8067_s4 + $0x150] sm:$0xff] %vm3728_vm2, %v8519_v49 }
 0x3aa   :  { %3701 = vst.msk [vmem:[%s8067_s4 + $0x128] sm:$0xff] %vm3663_vm1, %v3546_v33 }
 0x3ab   :  { %3766 = vst.msk [vmem:[%s8067_s4 + $0x128] sm:$0xff] %vm3728_vm2, %v8520_v21  ;;  %v3552_v32 = vpop.permute.xlu0 %3551 }
 0x3ac   :  { %3704 = vst.msk [vmem:[%s8067_s4 + $0x140] sm:$0xff] %vm3663_vm1, %v3552_v32  ;;  %v3558_v19 = vpop.permute.xlu1 %3557 }
 0x3ad   :  { %3769 = vst.msk [vmem:[%s8067_s4 + $0x140] sm:$0xff] %vm3728_vm2, %v8521_v31 }
 0x3ae   :  { %3707 = vst.msk [vmem:[%s8067_s4 + $0x158] sm:$0xff] %vm3663_vm1, %v3558_v19 }
 0x3af   :  { %3772 = vst.msk [vmem:[%s8067_s4 + $0x158] sm:$0xff] %vm3728_vm2, %v8522_v22  ;;  %v3564_v29 = vpop.permute.xlu0 %3563 }
 0x3b0   :  { %3710 = vst.msk [vmem:[%s8067_s4 + $0x170] sm:$0xff] %vm3663_vm1, %v3564_v29  ;;  %v3554_v23 = vpop.permute.xlu1 %3553 }
 0x3b1   :  { %3775 = vst.msk [vmem:[%s8067_s4 + $0x170] sm:$0xff] %vm3728_vm2, %v8523_v35 }
 0x3b2   :  { %3705 = vst.msk [vmem:[%s8067_s4 + $0x148] sm:$0xff] %vm3663_vm1, %v3554_v23 }
 0x3b3   :  { %3770 = vst.msk [vmem:[%s8067_s4 + $0x148] sm:$0xff] %vm3728_vm2, %v8524_v48  ;;  %v3560_v63 = vpop.permute.xlu0 %3559 }
 0x3b4   :  { %3708 = vst.msk [vmem:[%s8067_s4 + $0x160] sm:$0xff] %vm3663_vm1, %v3560_v63  ;;  %v3566_v37 = vpop.permute.xlu1 %3565 }
 0x3b5   :  { %3773 = vst.msk [vmem:[%s8067_s4 + $0x160] sm:$0xff] %vm3728_vm2, %v8525_v58 }
 0x3b6   :  { %3711 = vst.msk [vmem:[%s8067_s4 + $0x178] sm:$0xff] %vm3663_vm1, %v3566_v37 }
 0x3b7   :  { %3776 = vst.msk [vmem:[%s8067_s4 + $0x178] sm:$0xff] %vm3728_vm2, %v8526_v11  ;;  %v3572_v10 = vpop.permute.xlu0 %3571 }
 0x3b8   :  { %3714 = vst.msk [vmem:[%s8067_s4 + $0x190] sm:$0xff] %vm3663_vm1, %v3572_v10  ;;  %v3562_v24 = vpop.permute.xlu1 %3561 }
 0x3b9   :  { %3779 = vst.msk [vmem:[%s8067_s4 + $0x190] sm:$0xff] %vm3728_vm2, %v8527_v36 }
 0x3ba   :  { %3709 = vst.msk [vmem:[%s8067_s4 + $0x168] sm:$0xff] %vm3663_vm1, %v3562_v24 }
 0x3bb   :  { %3774 = vst.msk [vmem:[%s8067_s4 + $0x168] sm:$0xff] %vm3728_vm2, %v8528_v57  ;;  %v3568_v56 = vpop.permute.xlu0 %3567 }
 0x3bc   :  { %3712 = vst.msk [vmem:[%s8067_s4 + $0x180] sm:$0xff] %vm3663_vm1, %v3568_v56  ;;  %v3574_v53 = vpop.permute.xlu1 %3573 }
 0x3bd   :  { %3777 = vst.msk [vmem:[%s8067_s4 + $0x180] sm:$0xff] %vm3728_vm2, %v8529_v17 }
 0x3be   :  { %3715 = vst.msk [vmem:[%s8067_s4 + $0x198] sm:$0xff] %vm3663_vm1, %v3574_v53 }
 0x3bf   :  { %3780 = vst.msk [vmem:[%s8067_s4 + $0x198] sm:$0xff] %vm3728_vm2, %v8530_v42  ;;  %v3580_v26 = vpop.permute.xlu0 %3579 }
 0x3c0   :  { %3718 = vst.msk [vmem:[%s8067_s4 + $0x1b0] sm:$0xff] %vm3663_vm1, %v3580_v26  ;;  %v3570_v47 = vpop.permute.xlu1 %3569 }
 0x3c1   :  { %3783 = vst.msk [vmem:[%s8067_s4 + $0x1b0] sm:$0xff] %vm3728_vm2, %v8531_v41 }
 0x3c2   :  { %3713 = vst.msk [vmem:[%s8067_s4 + $0x188] sm:$0xff] %vm3663_vm1, %v3570_v47 }
 0x3c3   :  { %3778 = vst.msk [vmem:[%s8067_s4 + $0x188] sm:$0xff] %vm3728_vm2, %v8532_v18  ;;  %v3576_v39 = vpop.permute.xlu0 %3575 }
 0x3c4   :  { %3716 = vst.msk [vmem:[%s8067_s4 + $0x1a0] sm:$0xff] %vm3663_vm1, %v3576_v39  ;;  %v3582_v4 = vpop.permute.xlu1 %3581 }
 0x3c5   :  { %3781 = vst.msk [vmem:[%s8067_s4 + $0x1a0] sm:$0xff] %vm3728_vm2, %v8533_v3 }
 0x3c6   :  { %3719 = vst.msk [vmem:[%s8067_s4 + $0x1b8] sm:$0xff] %vm3663_vm1, %v3582_v4 }
 0x3c7   :  { %3784 = vst.msk [vmem:[%s8067_s4 + $0x1b8] sm:$0xff] %vm3728_vm2, %v8534_v12  ;;  %v3588_v61 = vpop.permute.xlu0 %3587 }
 0x3c8   :  { %3722 = vst.msk [vmem:[%s8067_s4 + $0x1d0] sm:$0xff] %vm3663_vm1, %v3588_v61  ;;  %v3578_v15 = vpop.permute.xlu1 %3577 }
 0x3c9   :  { %3787 = vst.msk [vmem:[%s8067_s4 + $0x1d0] sm:$0xff] %vm3728_vm2, %v8535_v54 }
 0x3ca   :  { %3717 = vst.msk [vmem:[%s8067_s4 + $0x1a8] sm:$0xff] %vm3663_vm1, %v3578_v15 }
 0x3cb   :  { %3782 = vst.msk [vmem:[%s8067_s4 + $0x1a8] sm:$0xff] %vm3728_vm2, %v8536_v50  ;;  %v3584_v7 = vpop.permute.xlu0 %3583 }
 0x3cc   :  { %3720 = vst.msk [vmem:[%s8067_s4 + $0x1c0] sm:$0xff] %vm3663_vm1, %v3584_v7  ;;  %v3590_v25 = vpop.permute.xlu1 %3589 }
 0x3cd   :  { %3785 = vst.msk [vmem:[%s8067_s4 + $0x1c0] sm:$0xff] %vm3728_vm2, %v8537_v52 }
 0x3ce   :  { %3723 = vst.msk [vmem:[%s8067_s4 + $0x1d8] sm:$0xff] %vm3663_vm1, %v3590_v25 }
 0x3cf   :  { %3788 = vst.msk [vmem:[%s8067_s4 + $0x1d8] sm:$0xff] %vm3728_vm2, %v8538_v2 }
 0x3d0   :  { %v3592_v9 = vpop.permute.xlu0 %3591  ;;  %v3586_v44 = vpop.permute.xlu1 %3585 }
 0x3d1   :  { %3724 = vst.msk [vmem:[%s8067_s4 + $0x1e0] sm:$0xff] %vm3663_vm1, %v3592_v9  ;;  %3721 = vst.msk [vmem:[%s8067_s4 + $0x1c8] sm:$0xff] %vm3663_vm1, %v3586_v44 }
 0x3d2   :  { %3789 = vst.msk [vmem:[%s8067_s4 + $0x1e0] sm:$0xff] %vm3728_vm2, %v7342_v1  ;;  %3786 = vst.msk [vmem:[%s8067_s4 + $0x1c8] sm:$0xff] %vm3728_vm2, %v8539_v28 }
 0x3d4   :  { %v3596_v62 = vpop.permute.xlu0 %3595 }
 0x3d5   :  { %3726 = vst.msk [vmem:[%s8067_s4 + $0x1f0] sm:$0xff] %vm3663_vm1, %v3596_v62  ;;  %v3594_v60 = vpop.permute.xlu1 %3593 }
 0x3d6   :  { %3791 = vst.msk [vmem:[%s8067_s4 + $0x1f0] sm:$0xff] %vm3728_vm2, %v7333_v59 }
 0x3d7   :  { %3725 = vst.msk [vmem:[%s8067_s4 + $0x1e8] sm:$0xff] %vm3663_vm1, %v3594_v60 }
 0x3d8   :  { %3790 = vst.msk [vmem:[%s8067_s4 + $0x1e8] sm:$0xff] %vm3728_vm2, %v7355_v45 }
 0x3d9   :  { %v3598_v1 = vpop.permute.xlu1 %3597 }
 0x3da   :  { %3727 = vst.msk [vmem:[%s8067_s4 + $0x1f8] sm:$0xff] %vm3663_vm1, %v3598_v1 }
 0x3db   :  { %3792 = vst.msk [vmem:[%s8067_s4 + $0x1f8] sm:$0xff] %vm3728_vm2, %v7346_v8 }

</bundles_post_ra>
